<compile_context>
chip_gen: v7x
topology: tpu7x:2x2x1
jax: 0.10.0
libtpu: 0.0.40
codegen_flags: <defaults>
</compile_context>

<pallas_src>
import jax
import jax.numpy as jnp
import numpy as np
from jax import lax
from jax.experimental import pallas as pl
from jax.experimental.pallas import tpu as pltpu

D = 384          # model dim
H = 6            # heads
DQK = 64         # per-head Q/K dim (384 / 6)
DV = 16          # per-head V dim   (96 / 6)
DVTOT = H * DV   # 96
DVP = 32         # padded V width: [v(16) | ones(16)]; column DV carries the softmax denom


def _head_mean_matrix_np():
    # Block-diagonal (384, 384): y = |p-b| @ R puts, in every lane of head h, the
    # per-head mean of |p-b| (keeps the weight computation lane-dense / MXU-only).
    r = np.zeros((D, D), np.float32)
    for h in range(H):
        r[h * DQK:(h + 1) * DQK, h * DQK:(h + 1) * DQK] = 1.0 / DQK
    return r


_RBLK_NP = _head_mean_matrix_np()


# --------------------------------------------------------------------------- kernel 1
def _proj_quant_kernel(x_ref, uq1_ref, uq2_ref, uk1_ref, uk2_ref,
                       wq_ref, bq_ref, wk_ref, bk_ref, wv_ref, bv_ref, rblk_ref,
                       qs_ref, ks_ref, vv_ref):
    f32, bf16 = jnp.float32, jnp.bfloat16
    x = x_ref[...].astype(bf16)                                       # (TN, 384)

    # bf16 MXU projections, f32 accumulation.
    q = jnp.dot(x, wq_ref[...], preferred_element_type=f32) + bq_ref[...]
    k = jnp.dot(x, wk_ref[...], preferred_element_type=f32) + bk_ref[...]
    v = jnp.dot(x, wv_ref[...], preferred_element_type=f32) + bv_ref[...]

    rblk = rblk_ref[...]                                              # (384, 384) bf16

    def quantise(a, u1, u2):
        # bilinaer_quantise: two Bernoulli draws + per-head L1 interpolation weights.
        p = 0.5 * jnp.tanh(a) + 0.5
        pc = jnp.clip(p, 0.0, 1.0)
        b1 = (u1 < pc).astype(f32)
        b2 = (u2 < pc).astype(f32)
        # per-head mean of |p-b| broadcast back across each head's 64 lanes,
        # via a bf16 block-diagonal matmul with f32 accumulation.
        d1 = jnp.dot(jnp.abs(p - b1).astype(bf16), rblk,
                     preferred_element_type=f32) + 1e-12
        d2 = jnp.dot(jnp.abs(p - b2).astype(bf16), rblk,
                     preferred_element_type=f32) + 1e-12
        # (2*b1-1)*w1 + (2*b2-1)*w2  with  w1 = d2/(d1+d2), w2 = d1/(d1+d2)
        return ((2.0 * b1 - 1.0) * d2 + (2.0 * b2 - 1.0) * d1) / (d1 + d2)

    # Fold the SDPA scale (the torch module passes scale = 1/sqrt(64) = 0.125) into q.
    qs = (quantise(q, uq1_ref[...].astype(f32), uq2_ref[...].astype(f32))
          * 0.125).astype(bf16)
    ks = quantise(k, uk1_ref[...].astype(f32), uk2_ref[...].astype(f32)).astype(bf16)
    v_bf = v.astype(bf16)
    ones = jnp.ones((v_bf.shape[0], DVP - DV), bf16)

    # Head-major staging: one bulk store per output (static lane slices only).
    qs_ref[...] = jnp.stack([qs[:, h * DQK:(h + 1) * DQK] for h in range(H)], axis=0)
    ks_ref[...] = jnp.stack([ks[:, h * DQK:(h + 1) * DQK] for h in range(H)], axis=0)
    vv_ref[...] = jnp.stack(
        [jnp.concatenate([v_bf[:, h * DV:(h + 1) * DV], ones], axis=-1)
         for h in range(H)], axis=0)


# --------------------------------------------------------------------------- kernel 2
def _attn_kernel(qs_ref, ks_ref, vv_ref, o_ref, acc_sc):
    # qs_ref: (H, TQ, 64) bf16 (scale folded); ks_ref: (H, TK, 64); vv_ref: (H, TK, 32)
    # acc_sc: (H, TQ, 32) f32 running [P·V | softmax denom] accumulator
    ki = pl.program_id(2)

    @pl.when(ki == 0)
    def _():
        acc_sc[...] = jnp.zeros(acc_sc.shape, acc_sc.dtype)

    def head_step(h, carry):
        q = qs_ref[h]                                    # (TQ, 64) bf16
        k = ks_ref[h]                                    # (TK, 64) bf16
        s = lax.dot_general(q, k, (((1,), (1,)), ((), ())),
                            preferred_element_type=jnp.float32)   # (TQ, TK)
        # |s| <= 64 * 0.125 * 1 = 8, so no online max / rescale is needed: exp(s) is
        # f32-safe (range ~[3e-4, 3e3]) and exp(s_i)/sum_j exp(s_j) is exact softmax.
        p = jnp.exp(s).astype(jnp.bfloat16)
        # vv's columns >= DV are all ones, so this matmul also accumulates the softmax
        # denominator into acc[:, DV] (no separate per-step XLU row-sum).
        acc_sc[h] = acc_sc[h] + jnp.dot(p, vv_ref[h],
                                        preferred_element_type=jnp.float32)
        return carry

    lax.fori_loop(0, H, head_step, 0)

    @pl.when(ki == pl.num_programs(2) - 1)
    def _():
        acc = acc_sc[...]                                            # (H, TQ, 32)
        out = acc[:, :, :DV] * pl.reciprocal(acc[:, :, DV:DV + 1], approx=False)
        # single (TQ, 96) store per query tile
        o_ref[...] = jnp.concatenate([out[h] for h in range(H)],
                                     axis=-1).astype(o_ref.dtype)


# ----------------------------------------------------------------------------- wrapper
def _tile(n, target):
    """Largest tile <= target dividing n, preferring multiples of 128, then 16, then 8."""
    if n <= target:
        return n
    for align in (128, 16, 8):
        t = (target // align) * align
        while t >= align:
            if n % t == 0:
                return t
            t -= align
    return n


def binary_attention_b(x, y, z, params, uniforms):
    """Pallas forward of BinaryAttentionB.  y, z are accepted (like the PyTorch module)
    but unused.  `uniforms` = (uq1, uq2, uk1, uk2) U[0,1) Bernoulli thresholds (bf16;
    the reference uses the same tensors so both sides sample identical bits)."""
    # TODO(synk): the module's `activate` ctor arg is unspecified; tanh is assumed.
    # TODO(synk): thresholds could be drawn in-kernel with pltpu.prng_random_bits to
    # remove their DMA entirely, at the cost of bit-parity with a host-side reference.
    del y, z
    uq1, uq2, uk1, uk2 = uniforms
    B, N, _ = x.shape
    f32, bf16 = jnp.float32, jnp.bfloat16

    wq = params["wq"].astype(bf16)
    wk = params["wk"].astype(bf16)
    wv = params["wv"].astype(bf16)
    bq, bk, bv = params["bq"], params["bk"], params["bv"]
    rblk = jnp.asarray(_RBLK_NP, dtype=bf16)
    uq1, uq2, uk1, uk2 = (u.astype(bf16) for u in (uq1, uq2, uk1, uk2))

    tn = _tile(N, 256)
    tq = _tile(N, 512)
    tk = _tile(N, 256)
    if B * (N // tq) < 2:           # keep >= 2 parallel grid iterations for 2-TC chips
        tq = _tile(N, max(128, tq // 2))

    def seq_spec():
        return pl.BlockSpec((None, tn, D), lambda b, i: (b, i, 0))

    def const_spec(shp):
        return pl.BlockSpec(shp, lambda b, i: (0, 0))

    # NOTE: the constant weight/bias/rblk blocks could be single-buffered
    # (pipeline_mode=pl.Buffered(1)); the total VMEM footprint here is only a few MiB,
    # so default double-buffering is kept for simplicity.
    qs, ks, vv = pl.pallas_call(
        _proj_quant_kernel,
        out_shape=(jax.ShapeDtypeStruct((B, H, N, DQK), bf16),
                   jax.ShapeDtypeStruct((B, H, N, DQK), bf16),
                   jax.ShapeDtypeStruct((B, H, N, DVP), bf16)),
        grid=(B, N // tn),
        in_specs=[seq_spec(), seq_spec(), seq_spec(), seq_spec(), seq_spec(),
                  const_spec((D, D)), const_spec((1, D)),
                  const_spec((D, D)), const_spec((1, D)),
                  const_spec((D, DVTOT)), const_spec((1, DVTOT)),
                  const_spec((D, D))],
        out_specs=(pl.BlockSpec((None, H, tn, DQK), lambda b, i: (b, 0, i, 0)),
                   pl.BlockSpec((None, H, tn, DQK), lambda b, i: (b, 0, i, 0)),
                   pl.BlockSpec((None, H, tn, DVP), lambda b, i: (b, 0, i, 0))),
        compiler_params=pltpu.CompilerParams(
            dimension_semantics=("parallel", "parallel"),
            vmem_limit_bytes=24 * 1024 * 1024),
    )(x, uq1, uq2, uk1, uk2, wq, bq, wk, bk, wv, bv, rblk)

    out = pl.pallas_call(
        _attn_kernel,
        out_shape=jax.ShapeDtypeStruct((B, N, DVTOT), f32),
        grid=(B, N // tq, N // tk),
        in_specs=[pl.BlockSpec((None, H, tq, DQK), lambda b, qi, ki: (b, 0, qi, 0)),
                  pl.BlockSpec((None, H, tk, DQK), lambda b, qi, ki: (b, 0, ki, 0)),
                  pl.BlockSpec((None, H, tk, DVP), lambda b, qi, ki: (b, 0, ki, 0))],
        out_specs=pl.BlockSpec((None, tq, DVTOT), lambda b, qi, ki: (b, qi, 0)),
        scratch_shapes=[pltpu.VMEM((H, tq, DVP), f32)],   # running [P·V | denom]
        compiler_params=pltpu.CompilerParams(
            dimension_semantics=("parallel", "parallel", "arbitrary"),
            vmem_limit_bytes=24 * 1024 * 1024),
    )(qs, ks, vv)
    return (out,)


# ----------------------------------------------------------------------------- params
def init_params(key):
    ks = jax.random.split(key, 6)

    def linear(kw, kb, fan_in, fan_out):
        bound = 1.0 / np.sqrt(fan_in)
        w = jax.random.uniform(kw, (fan_in, fan_out), jnp.float32, -bound, bound)
        b = jax.random.uniform(kb, (1, fan_out), jnp.float32, -bound, bound)
        return w, b

    wq, bq = linear(ks[0], ks[1], D, D)
    wk, bk = linear(ks[2], ks[3], D, D)
    wv, bv = linear(ks[4], ks[5], D, DVTOT)
    return dict(wq=wq, bq=bq, wk=wk, bk=bk, wv=wv, bv=bv)


# --------------------------------------------------------------------------- reference
def reference(x, uniforms, params):
    """Pure-JAX reference mirroring the PyTorch forward op-for-op.  The projections use
    bf16 operands with f32 accumulation (same numerics as the kernel) so both sides
    sample identical Bernoulli bits from the shared bf16 thresholds."""
    uq1, uq2, uk1, uk2 = uniforms
    B, N, _ = x.shape
    f32, bf16 = jnp.float32, jnp.bfloat16
    hi = jax.lax.Precision.HIGHEST
    xb = x.astype(bf16)
    q = jnp.dot(xb, params["wq"].astype(bf16), preferred_element_type=f32) + params["bq"][0]
    k = jnp.dot(xb, params["wk"].astype(bf16), preferred_element_type=f32) + params["bk"][0]
    v = jnp.dot(xb, params["wv"].astype(bf16), preferred_element_type=f32) + params["bv"][0]

    def heads(t, dh):  # .view(B,N,6,dh).transpose(2,1).flatten(0,1)
        return t.reshape(B, N, H, dh).transpose(0, 2, 1, 3).reshape(B * H, N, dh)

    def bilinaer_quantise(p1, u1, u2):
        p = p1 * 0.5 + 0.5
        pc = jnp.clip(p, 0.0, 1.0)
        b1 = (u1.astype(f32) < pc).astype(f32)
        b2 = (u2.astype(f32) < pc).astype(f32)
        d1 = jnp.abs(p - b1).mean(-1) + 1e-12
        d2 = jnp.abs(p - b2).mean(-1) + 1e-12
        return b1, b2, d2 / (d1 + d2), d1 / (d1 + d2)

    q_ = jnp.tanh(heads(q, DQK))
    k_ = jnp.tanh(heads(k, DQK))
    v_ = heads(v, DV)
    q1, q2, w_q1, w_q2 = bilinaer_quantise(q_, heads(uq1, DQK), heads(uq2, DQK))
    qw1 = (2.0 * q1 - 1.0) * w_q1[..., None]
    qw2 = (2.0 * q2 - 1.0) * w_q2[..., None]
    k1, k2, w_k1, w_k2 = bilinaer_quantise(k_, heads(uk1, DQK), heads(uk2, DQK))
    kw1 = (2.0 * k1 - 1.0) * w_k1[..., None]
    kw2 = (2.0 * k2 - 1.0) * w_k2[..., None]
    qq = jnp.concatenate([qw1, qw2, qw1, qw2], axis=-1)
    kk = jnp.concatenate([kw1, kw1, kw2, kw2], axis=-1)
    scores = jnp.einsum("gnd,gmd->gnm", qq, kk, precision=hi) * 0.125  # scale=1/sqrt(64)
    attn = jax.nn.softmax(scores, axis=-1)
    out = jnp.einsum("gnm,gmd->gnd", attn, v_, precision=hi)
    return out.reshape(B, H, N, DV).transpose(0, 2, 1, 3).reshape(B, N, DVTOT)


if __name__ == "__main__":
    B, N = 2, 8
    key = jax.random.PRNGKey(0)
    kx, kp, ku = jax.random.split(key, 3)
    x = jax.random.normal(kx, (B, N, D), jnp.float32)
    y_unused = jnp.zeros((B, N, D), jnp.float32)   # module args y, z are unused
    z_unused = jnp.zeros((B, N, D), jnp.float32)
    params = init_params(kp)
    # Bernoulli thresholds for bilinaer_quantise (two draws for q, two for k), bf16 so
    # kernel and reference sample identical bits while halving the threshold DMA.
    uniforms = tuple(jax.random.uniform(k_, (B, N, D), jnp.float32).astype(jnp.bfloat16)
                     for k_ in jax.random.split(ku, 4))

    fwd = jax.jit(binary_attention_b)
    (out,) = fwd(x, y_unused, z_unused, params, uniforms)
    out = np.asarray(jax.block_until_ready(out))

    ref = np.asarray(reference(x, uniforms, params))
    assert out.shape == (B, N, DVTOT)
    assert np.all(np.isfinite(out))
    err = np.abs(out - ref)
    tol = 2e-2 + 2e-2 * np.abs(ref)   # headroom for bf16 QK^T / P.V staging
    frac_ok = float(np.mean(err <= tol))
    med_err = float(np.median(err))
    # An isolated Bernoulli draw can still flip if a threshold lands within one f32 ulp
    # of p (MXU vs XLA reduction order), so use a robust fraction/median check.
    assert frac_ok >= 0.95 and med_err <= 1e-2, (frac_ok, med_err)
    print("KERNEL_OK")
</pallas_src>

<mosaic_0001>
module attributes {stable_mosaic.version = 11 : i64} {
  func.func @_proj_quant_kernel(%arg0: i32, %arg1: i32, %arg2: memref<1x8x384xf32, #tpu.memory_space<vmem>>, %arg3: memref<1x8x384xbf16, #tpu.memory_space<vmem>>, %arg4: memref<1x8x384xbf16, #tpu.memory_space<vmem>>, %arg5: memref<1x8x384xbf16, #tpu.memory_space<vmem>>, %arg6: memref<1x8x384xbf16, #tpu.memory_space<vmem>>, %arg7: memref<384x384xbf16, #tpu.memory_space<vmem>>, %arg8: memref<1x384xf32, #tpu.memory_space<vmem>>, %arg9: memref<384x384xbf16, #tpu.memory_space<vmem>>, %arg10: memref<1x384xf32, #tpu.memory_space<vmem>>, %arg11: memref<384x96xbf16, #tpu.memory_space<vmem>>, %arg12: memref<1x96xf32, #tpu.memory_space<vmem>>, %arg13: memref<384x384xbf16, #tpu.memory_space<vmem>>, %arg14: memref<1x6x8x64xbf16, #tpu.memory_space<vmem>>, %arg15: memref<1x6x8x64xbf16, #tpu.memory_space<vmem>>, %arg16: memref<1x6x8x32xbf16, #tpu.memory_space<vmem>>) attributes {dimension_semantics = [#tpu.dimension_semantics<parallel>, #tpu.dimension_semantics<parallel>], iteration_bounds = array<i64: 2, 1>, scalar_prefetch = 0 : i64, scratch_operands = 0 : i64, tpu.core_type = #tpu.core_type<tc>, window_params = [{transform_indices = @transform_0, window_bounds = array<i64: 1, 8, 384>}, {transform_indices = @transform_1, window_bounds = array<i64: 1, 8, 384>}, {transform_indices = @transform_2, window_bounds = array<i64: 1, 8, 384>}, {transform_indices = @transform_3, window_bounds = array<i64: 1, 8, 384>}, {transform_indices = @transform_4, window_bounds = array<i64: 1, 8, 384>}, {pipeline_mode = #tpu.pipeline_mode<synchronous>, transform_indices = @transform_5, window_bounds = array<i64: 384, 384>}, {pipeline_mode = #tpu.pipeline_mode<synchronous>, transform_indices = @transform_6, window_bounds = array<i64: 1, 384>}, {pipeline_mode = #tpu.pipeline_mode<synchronous>, transform_indices = @transform_7, window_bounds = array<i64: 384, 384>}, {pipeline_mode = #tpu.pipeline_mode<synchronous>, transform_indices = @transform_8, window_bounds = array<i64: 1, 384>}, {pipeline_mode = #tpu.pipeline_mode<synchronous>, transform_indices = @transform_9, window_bounds = array<i64: 384, 96>}, {pipeline_mode = #tpu.pipeline_mode<synchronous>, transform_indices = @transform_10, window_bounds = array<i64: 1, 96>}, {pipeline_mode = #tpu.pipeline_mode<synchronous>, transform_indices = @transform_11, window_bounds = array<i64: 384, 384>}, {transform_indices = @transform_12, window_bounds = array<i64: 1, 6, 8, 64>}, {transform_indices = @transform_13, window_bounds = array<i64: 1, 6, 8, 64>}, {transform_indices = @transform_14, window_bounds = array<i64: 1, 6, 8, 32>}]} {
    %c0 = arith.constant 0 : index
    %c0_0 = arith.constant 0 : index
    %c0_1 = arith.constant 0 : index
    %0 = vector.load %arg2[%c0, %c0_0, %c0_1] : memref<1x8x384xf32, #tpu.memory_space<vmem>>, vector<1x8x384xf32>
    %1 = vector.shape_cast %0 : vector<1x8x384xf32> to vector<8x384xf32>
    %2 = arith.truncf %1 : vector<8x384xf32> to vector<8x384xbf16>
    %c0_2 = arith.constant 0 : index
    %c0_3 = arith.constant 0 : index
    %3 = vector.load %arg7[%c0_2, %c0_3] : memref<384x384xbf16, #tpu.memory_space<vmem>>, vector<384x384xbf16>
    %cst = arith.constant dense<0.000000e+00> : vector<8x384xf32>
    %4 = tpu.matmul %2, %3, %cst {dimension_numbers = #tpu.dot_dimension_numbers<[1], [0], [0], [1], [0, 0, 1, 1], [], []>} : vector<8x384xbf16>, vector<384x384xbf16>, vector<8x384xf32> -> vector<8x384xf32>
    %c0_4 = arith.constant 0 : index
    %c0_5 = arith.constant 0 : index
    %5 = vector.load %arg8[%c0_4, %c0_5] : memref<1x384xf32, #tpu.memory_space<vmem>>, vector<1x384xf32>
    %6 = vector.broadcast %5 : vector<1x384xf32> to vector<8x384xf32>
    %7 = arith.addf %4, %6 : vector<8x384xf32>
    %c0_6 = arith.constant 0 : index
    %c0_7 = arith.constant 0 : index
    %8 = vector.load %arg9[%c0_6, %c0_7] : memref<384x384xbf16, #tpu.memory_space<vmem>>, vector<384x384xbf16>
    %cst_8 = arith.constant dense<0.000000e+00> : vector<8x384xf32>
    %9 = tpu.matmul %2, %8, %cst_8 {dimension_numbers = #tpu.dot_dimension_numbers<[1], [0], [0], [1], [0, 0, 1, 1], [], []>} : vector<8x384xbf16>, vector<384x384xbf16>, vector<8x384xf32> -> vector<8x384xf32>
    %c0_9 = arith.constant 0 : index
    %c0_10 = arith.constant 0 : index
    %10 = vector.load %arg10[%c0_9, %c0_10] : memref<1x384xf32, #tpu.memory_space<vmem>>, vector<1x384xf32>
    %11 = vector.broadcast %10 : vector<1x384xf32> to vector<8x384xf32>
    %12 = arith.addf %9, %11 : vector<8x384xf32>
    %c0_11 = arith.constant 0 : index
    %c0_12 = arith.constant 0 : index
    %13 = vector.load %arg11[%c0_11, %c0_12] : memref<384x96xbf16, #tpu.memory_space<vmem>>, vector<384x96xbf16>
    %cst_13 = arith.constant dense<0.000000e+00> : vector<8x96xf32>
    %14 = tpu.matmul %2, %13, %cst_13 {dimension_numbers = #tpu.dot_dimension_numbers<[1], [0], [0], [1], [0, 0, 1, 1], [], []>} : vector<8x384xbf16>, vector<384x96xbf16>, vector<8x96xf32> -> vector<8x96xf32>
    %c0_14 = arith.constant 0 : index
    %c0_15 = arith.constant 0 : index
    %15 = vector.load %arg12[%c0_14, %c0_15] : memref<1x96xf32, #tpu.memory_space<vmem>>, vector<1x96xf32>
    %16 = vector.broadcast %15 : vector<1x96xf32> to vector<8x96xf32>
    %17 = arith.addf %14, %16 : vector<8x96xf32>
    %c0_16 = arith.constant 0 : index
    %c0_17 = arith.constant 0 : index
    %18 = vector.load %arg13[%c0_16, %c0_17] : memref<384x384xbf16, #tpu.memory_space<vmem>>, vector<384x384xbf16>
    %c0_18 = arith.constant 0 : index
    %c0_19 = arith.constant 0 : index
    %c0_20 = arith.constant 0 : index
    %19 = vector.load %arg3[%c0_18, %c0_19, %c0_20] : memref<1x8x384xbf16, #tpu.memory_space<vmem>>, vector<1x8x384xbf16>
    %20 = vector.shape_cast %19 : vector<1x8x384xbf16> to vector<8x384xbf16>
    %21 = arith.extf %20 : vector<8x384xbf16> to vector<8x384xf32>
    %c0_21 = arith.constant 0 : index
    %c0_22 = arith.constant 0 : index
    %c0_23 = arith.constant 0 : index
    %22 = vector.load %arg4[%c0_21, %c0_22, %c0_23] : memref<1x8x384xbf16, #tpu.memory_space<vmem>>, vector<1x8x384xbf16>
    %23 = vector.shape_cast %22 : vector<1x8x384xbf16> to vector<8x384xbf16>
    %24 = arith.extf %23 : vector<8x384xbf16> to vector<8x384xf32>
    %25 = math.tanh %7 : vector<8x384xf32>
    %cst_24 = arith.constant 5.000000e-01 : f32
    %26 = vector.broadcast %cst_24 : f32 to vector<8x384xf32>
    %27 = arith.mulf %26, %25 : vector<8x384xf32>
    %cst_25 = arith.constant 5.000000e-01 : f32
    %28 = vector.broadcast %cst_25 : f32 to vector<8x384xf32>
    %29 = arith.addf %27, %28 : vector<8x384xf32>
    %cst_26 = arith.constant 0.000000e+00 : f32
    %cst_27 = arith.constant 1.000000e+00 : f32
    %30 = vector.broadcast %cst_26 : f32 to vector<8x384xf32>
    %31 = arith.maximumf %30, %29 : vector<8x384xf32>
    %32 = vector.broadcast %cst_27 : f32 to vector<8x384xf32>
    %33 = arith.minimumf %32, %31 : vector<8x384xf32>
    %34 = arith.cmpf olt, %21, %33 : vector<8x384xf32>
    %35 = arith.extui %34 : vector<8x384xi1> to vector<8x384xi32>
    %36 = arith.sitofp %35 : vector<8x384xi32> to vector<8x384xf32>
    %37 = arith.cmpf olt, %24, %33 : vector<8x384xf32>
    %38 = arith.extui %37 : vector<8x384xi1> to vector<8x384xi32>
    %39 = arith.sitofp %38 : vector<8x384xi32> to vector<8x384xf32>
    %40 = arith.subf %29, %36 : vector<8x384xf32>
    %41 = math.absf %40 : vector<8x384xf32>
    %42 = arith.truncf %41 : vector<8x384xf32> to vector<8x384xbf16>
    %cst_28 = arith.constant dense<0.000000e+00> : vector<8x384xf32>
    %43 = tpu.matmul %42, %18, %cst_28 {dimension_numbers = #tpu.dot_dimension_numbers<[1], [0], [0], [1], [0, 0, 1, 1], [], []>} : vector<8x384xbf16>, vector<384x384xbf16>, vector<8x384xf32> -> vector<8x384xf32>
    %cst_29 = arith.constant 9.99999996E-13 : f32
    %44 = vector.broadcast %cst_29 : f32 to vector<8x384xf32>
    %45 = arith.addf %43, %44 : vector<8x384xf32>
    %46 = arith.subf %29, %39 : vector<8x384xf32>
    %47 = math.absf %46 : vector<8x384xf32>
    %48 = arith.truncf %47 : vector<8x384xf32> to vector<8x384xbf16>
    %cst_30 = arith.constant dense<0.000000e+00> : vector<8x384xf32>
    %49 = tpu.matmul %48, %18, %cst_30 {dimension_numbers = #tpu.dot_dimension_numbers<[1], [0], [0], [1], [0, 0, 1, 1], [], []>} : vector<8x384xbf16>, vector<384x384xbf16>, vector<8x384xf32> -> vector<8x384xf32>
    %cst_31 = arith.constant 9.99999996E-13 : f32
    %50 = vector.broadcast %cst_31 : f32 to vector<8x384xf32>
    %51 = arith.addf %49, %50 : vector<8x384xf32>
    %cst_32 = arith.constant 2.000000e+00 : f32
    %52 = vector.broadcast %cst_32 : f32 to vector<8x384xf32>
    %53 = arith.mulf %52, %36 : vector<8x384xf32>
    %cst_33 = arith.constant 1.000000e+00 : f32
    %54 = vector.broadcast %cst_33 : f32 to vector<8x384xf32>
    %55 = arith.subf %53, %54 : vector<8x384xf32>
    %56 = arith.mulf %55, %51 : vector<8x384xf32>
    %cst_34 = arith.constant 2.000000e+00 : f32
    %57 = vector.broadcast %cst_34 : f32 to vector<8x384xf32>
    %58 = arith.mulf %57, %39 : vector<8x384xf32>
    %cst_35 = arith.constant 1.000000e+00 : f32
    %59 = vector.broadcast %cst_35 : f32 to vector<8x384xf32>
    %60 = arith.subf %58, %59 : vector<8x384xf32>
    %61 = arith.mulf %60, %45 : vector<8x384xf32>
    %62 = arith.addf %56, %61 : vector<8x384xf32>
    %63 = arith.addf %45, %51 : vector<8x384xf32>
    %64 = arith.divf %62, %63 : vector<8x384xf32>
    %cst_36 = arith.constant 1.250000e-01 : f32
    %65 = vector.broadcast %cst_36 : f32 to vector<8x384xf32>
    %66 = arith.mulf %64, %65 : vector<8x384xf32>
    %67 = arith.truncf %66 : vector<8x384xf32> to vector<8x384xbf16>
    %c0_37 = arith.constant 0 : index
    %c0_38 = arith.constant 0 : index
    %c0_39 = arith.constant 0 : index
    %68 = vector.load %arg5[%c0_37, %c0_38, %c0_39] : memref<1x8x384xbf16, #tpu.memory_space<vmem>>, vector<1x8x384xbf16>
    %69 = vector.shape_cast %68 : vector<1x8x384xbf16> to vector<8x384xbf16>
    %70 = arith.extf %69 : vector<8x384xbf16> to vector<8x384xf32>
    %c0_40 = arith.constant 0 : index
    %c0_41 = arith.constant 0 : index
    %c0_42 = arith.constant 0 : index
    %71 = vector.load %arg6[%c0_40, %c0_41, %c0_42] : memref<1x8x384xbf16, #tpu.memory_space<vmem>>, vector<1x8x384xbf16>
    %72 = vector.shape_cast %71 : vector<1x8x384xbf16> to vector<8x384xbf16>
    %73 = arith.extf %72 : vector<8x384xbf16> to vector<8x384xf32>
    %74 = math.tanh %12 : vector<8x384xf32>
    %cst_43 = arith.constant 5.000000e-01 : f32
    %75 = vector.broadcast %cst_43 : f32 to vector<8x384xf32>
    %76 = arith.mulf %75, %74 : vector<8x384xf32>
    %cst_44 = arith.constant 5.000000e-01 : f32
    %77 = vector.broadcast %cst_44 : f32 to vector<8x384xf32>
    %78 = arith.addf %76, %77 : vector<8x384xf32>
    %cst_45 = arith.constant 0.000000e+00 : f32
    %cst_46 = arith.constant 1.000000e+00 : f32
    %79 = vector.broadcast %cst_45 : f32 to vector<8x384xf32>
    %80 = arith.maximumf %79, %78 : vector<8x384xf32>
    %81 = vector.broadcast %cst_46 : f32 to vector<8x384xf32>
    %82 = arith.minimumf %81, %80 : vector<8x384xf32>
    %83 = arith.cmpf olt, %70, %82 : vector<8x384xf32>
    %84 = arith.extui %83 : vector<8x384xi1> to vector<8x384xi32>
    %85 = arith.sitofp %84 : vector<8x384xi32> to vector<8x384xf32>
    %86 = arith.cmpf olt, %73, %82 : vector<8x384xf32>
    %87 = arith.extui %86 : vector<8x384xi1> to vector<8x384xi32>
    %88 = arith.sitofp %87 : vector<8x384xi32> to vector<8x384xf32>
    %89 = arith.subf %78, %85 : vector<8x384xf32>
    %90 = math.absf %89 : vector<8x384xf32>
    %91 = arith.truncf %90 : vector<8x384xf32> to vector<8x384xbf16>
    %cst_47 = arith.constant dense<0.000000e+00> : vector<8x384xf32>
    %92 = tpu.matmul %91, %18, %cst_47 {dimension_numbers = #tpu.dot_dimension_numbers<[1], [0], [0], [1], [0, 0, 1, 1], [], []>} : vector<8x384xbf16>, vector<384x384xbf16>, vector<8x384xf32> -> vector<8x384xf32>
    %cst_48 = arith.constant 9.99999996E-13 : f32
    %93 = vector.broadcast %cst_48 : f32 to vector<8x384xf32>
    %94 = arith.addf %92, %93 : vector<8x384xf32>
    %95 = arith.subf %78, %88 : vector<8x384xf32>
    %96 = math.absf %95 : vector<8x384xf32>
    %97 = arith.truncf %96 : vector<8x384xf32> to vector<8x384xbf16>
    %cst_49 = arith.constant dense<0.000000e+00> : vector<8x384xf32>
    %98 = tpu.matmul %97, %18, %cst_49 {dimension_numbers = #tpu.dot_dimension_numbers<[1], [0], [0], [1], [0, 0, 1, 1], [], []>} : vector<8x384xbf16>, vector<384x384xbf16>, vector<8x384xf32> -> vector<8x384xf32>
    %cst_50 = arith.constant 9.99999996E-13 : f32
    %99 = vector.broadcast %cst_50 : f32 to vector<8x384xf32>
    %100 = arith.addf %98, %99 : vector<8x384xf32>
    %cst_51 = arith.constant 2.000000e+00 : f32
    %101 = vector.broadcast %cst_51 : f32 to vector<8x384xf32>
    %102 = arith.mulf %101, %85 : vector<8x384xf32>
    %cst_52 = arith.constant 1.000000e+00 : f32
    %103 = vector.broadcast %cst_52 : f32 to vector<8x384xf32>
    %104 = arith.subf %102, %103 : vector<8x384xf32>
    %105 = arith.mulf %104, %100 : vector<8x384xf32>
    %cst_53 = arith.constant 2.000000e+00 : f32
    %106 = vector.broadcast %cst_53 : f32 to vector<8x384xf32>
    %107 = arith.mulf %106, %88 : vector<8x384xf32>
    %cst_54 = arith.constant 1.000000e+00 : f32
    %108 = vector.broadcast %cst_54 : f32 to vector<8x384xf32>
    %109 = arith.subf %107, %108 : vector<8x384xf32>
    %110 = arith.mulf %109, %94 : vector<8x384xf32>
    %111 = arith.addf %105, %110 : vector<8x384xf32>
    %112 = arith.addf %94, %100 : vector<8x384xf32>
    %113 = arith.divf %111, %112 : vector<8x384xf32>
    %114 = arith.truncf %113 : vector<8x384xf32> to vector<8x384xbf16>
    %115 = arith.truncf %17 : vector<8x96xf32> to vector<8x96xbf16>
    %cst_55 = arith.constant 1.000000e+00 : bf16
    %116 = vector.broadcast %cst_55 : bf16 to vector<8x16xbf16>
    %117 = vector.extract_strided_slice %67 {offsets = [0, 0], sizes = [8, 64], strides = [1, 1]} : vector<8x384xbf16> to vector<8x64xbf16>
    %118 = vector.extract_strided_slice %67 {offsets = [0, 64], sizes = [8, 64], strides = [1, 1]} : vector<8x384xbf16> to vector<8x64xbf16>
    %119 = vector.extract_strided_slice %67 {offsets = [0, 128], sizes = [8, 64], strides = [1, 1]} : vector<8x384xbf16> to vector<8x64xbf16>
    %120 = vector.extract_strided_slice %67 {offsets = [0, 192], sizes = [8, 64], strides = [1, 1]} : vector<8x384xbf16> to vector<8x64xbf16>
    %121 = vector.extract_strided_slice %67 {offsets = [0, 256], sizes = [8, 64], strides = [1, 1]} : vector<8x384xbf16> to vector<8x64xbf16>
    %122 = vector.extract_strided_slice %67 {offsets = [0, 320], sizes = [8, 64], strides = [1, 1]} : vector<8x384xbf16> to vector<8x64xbf16>
    %123 = vector.shape_cast %117 : vector<8x64xbf16> to vector<1x8x64xbf16>
    %124 = vector.shape_cast %118 : vector<8x64xbf16> to vector<1x8x64xbf16>
    %125 = vector.shape_cast %119 : vector<8x64xbf16> to vector<1x8x64xbf16>
    %126 = vector.shape_cast %120 : vector<8x64xbf16> to vector<1x8x64xbf16>
    %127 = vector.shape_cast %121 : vector<8x64xbf16> to vector<1x8x64xbf16>
    %128 = vector.shape_cast %122 : vector<8x64xbf16> to vector<1x8x64xbf16>
    %129 = tpu.concatenate %123, %124, %125, %126, %127, %128 in 0 : vector<1x8x64xbf16>, vector<1x8x64xbf16>, vector<1x8x64xbf16>, vector<1x8x64xbf16>, vector<1x8x64xbf16>, vector<1x8x64xbf16> -> vector<6x8x64xbf16>
    %c0_56 = arith.constant 0 : index
    %c0_57 = arith.constant 0 : index
    %c0_58 = arith.constant 0 : index
    %c0_59 = arith.constant 0 : index
    %130 = vector.load %arg14[%c0_56, %c0_57, %c0_58, %c0_59] : memref<1x6x8x64xbf16, #tpu.memory_space<vmem>>, vector<1x6x8x64xbf16>
    %131 = vector.shape_cast %130 : vector<1x6x8x64xbf16> to vector<6x8x64xbf16>
    %132 = vector.shape_cast %129 : vector<6x8x64xbf16> to vector<1x6x8x64xbf16>
    tpu.vector_store %arg14[%c0_56, %c0_57, %c0_58, %c0_59], %132 {strides = array<i32>} : memref<1x6x8x64xbf16, #tpu.memory_space<vmem>>, vector<1x6x8x64xbf16>,
    %133 = vector.extract_strided_slice %114 {offsets = [0, 0], sizes = [8, 64], strides = [1, 1]} : vector<8x384xbf16> to vector<8x64xbf16>
    %134 = vector.extract_strided_slice %114 {offsets = [0, 64], sizes = [8, 64], strides = [1, 1]} : vector<8x384xbf16> to vector<8x64xbf16>
    %135 = vector.extract_strided_slice %114 {offsets = [0, 128], sizes = [8, 64], strides = [1, 1]} : vector<8x384xbf16> to vector<8x64xbf16>
    %136 = vector.extract_strided_slice %114 {offsets = [0, 192], sizes = [8, 64], strides = [1, 1]} : vector<8x384xbf16> to vector<8x64xbf16>
    %137 = vector.extract_strided_slice %114 {offsets = [0, 256], sizes = [8, 64], strides = [1, 1]} : vector<8x384xbf16> to vector<8x64xbf16>
    %138 = vector.extract_strided_slice %114 {offsets = [0, 320], sizes = [8, 64], strides = [1, 1]} : vector<8x384xbf16> to vector<8x64xbf16>
    %139 = vector.shape_cast %133 : vector<8x64xbf16> to vector<1x8x64xbf16>
    %140 = vector.shape_cast %134 : vector<8x64xbf16> to vector<1x8x64xbf16>
    %141 = vector.shape_cast %135 : vector<8x64xbf16> to vector<1x8x64xbf16>
    %142 = vector.shape_cast %136 : vector<8x64xbf16> to vector<1x8x64xbf16>
    %143 = vector.shape_cast %137 : vector<8x64xbf16> to vector<1x8x64xbf16>
    %144 = vector.shape_cast %138 : vector<8x64xbf16> to vector<1x8x64xbf16>
    %145 = tpu.concatenate %139, %140, %141, %142, %143, %144 in 0 : vector<1x8x64xbf16>, vector<1x8x64xbf16>, vector<1x8x64xbf16>, vector<1x8x64xbf16>, vector<1x8x64xbf16>, vector<1x8x64xbf16> -> vector<6x8x64xbf16>
    %c0_60 = arith.constant 0 : index
    %c0_61 = arith.constant 0 : index
    %c0_62 = arith.constant 0 : index
    %c0_63 = arith.constant 0 : index
    %146 = vector.load %arg15[%c0_60, %c0_61, %c0_62, %c0_63] : memref<1x6x8x64xbf16, #tpu.memory_space<vmem>>, vector<1x6x8x64xbf16>
    %147 = vector.shape_cast %146 : vector<1x6x8x64xbf16> to vector<6x8x64xbf16>
    %148 = vector.shape_cast %145 : vector<6x8x64xbf16> to vector<1x6x8x64xbf16>
    tpu.vector_store %arg15[%c0_60, %c0_61, %c0_62, %c0_63], %148 {strides = array<i32>} : memref<1x6x8x64xbf16, #tpu.memory_space<vmem>>, vector<1x6x8x64xbf16>,
    %149 = vector.extract_strided_slice %115 {offsets = [0, 0], sizes = [8, 16], strides = [1, 1]} : vector<8x96xbf16> to vector<8x16xbf16>
    %150 = tpu.concatenate %149, %116 in 1 : vector<8x16xbf16>, vector<8x16xbf16> -> vector<8x32xbf16>
    %151 = vector.extract_strided_slice %115 {offsets = [0, 16], sizes = [8, 16], strides = [1, 1]} : vector<8x96xbf16> to vector<8x16xbf16>
    %152 = tpu.concatenate %151, %116 in 1 : vector<8x16xbf16>, vector<8x16xbf16> -> vector<8x32xbf16>
    %153 = vector.extract_strided_slice %115 {offsets = [0, 32], sizes = [8, 16], strides = [1, 1]} : vector<8x96xbf16> to vector<8x16xbf16>
    %154 = tpu.concatenate %153, %116 in 1 : vector<8x16xbf16>, vector<8x16xbf16> -> vector<8x32xbf16>
    %155 = vector.extract_strided_slice %115 {offsets = [0, 48], sizes = [8, 16], strides = [1, 1]} : vector<8x96xbf16> to vector<8x16xbf16>
    %156 = tpu.concatenate %155, %116 in 1 : vector<8x16xbf16>, vector<8x16xbf16> -> vector<8x32xbf16>
    %157 = vector.extract_strided_slice %115 {offsets = [0, 64], sizes = [8, 16], strides = [1, 1]} : vector<8x96xbf16> to vector<8x16xbf16>
    %158 = tpu.concatenate %157, %116 in 1 : vector<8x16xbf16>, vector<8x16xbf16> -> vector<8x32xbf16>
    %159 = vector.extract_strided_slice %115 {offsets = [0, 80], sizes = [8, 16], strides = [1, 1]} : vector<8x96xbf16> to vector<8x16xbf16>
    %160 = tpu.concatenate %159, %116 in 1 : vector<8x16xbf16>, vector<8x16xbf16> -> vector<8x32xbf16>
    %161 = vector.shape_cast %150 : vector<8x32xbf16> to vector<1x8x32xbf16>
    %162 = vector.shape_cast %152 : vector<8x32xbf16> to vector<1x8x32xbf16>
    %163 = vector.shape_cast %154 : vector<8x32xbf16> to vector<1x8x32xbf16>
    %164 = vector.shape_cast %156 : vector<8x32xbf16> to vector<1x8x32xbf16>
    %165 = vector.shape_cast %158 : vector<8x32xbf16> to vector<1x8x32xbf16>
    %166 = vector.shape_cast %160 : vector<8x32xbf16> to vector<1x8x32xbf16>
    %167 = tpu.concatenate %161, %162, %163, %164, %165, %166 in 0 : vector<1x8x32xbf16>, vector<1x8x32xbf16>, vector<1x8x32xbf16>, vector<1x8x32xbf16>, vector<1x8x32xbf16>, vector<1x8x32xbf16> -> vector<6x8x32xbf16>
    %c0_64 = arith.constant 0 : index
    %c0_65 = arith.constant 0 : index
    %c0_66 = arith.constant 0 : index
    %c0_67 = arith.constant 0 : index
    %168 = vector.load %arg16[%c0_64, %c0_65, %c0_66, %c0_67] : memref<1x6x8x32xbf16, #tpu.memory_space<vmem>>, vector<1x6x8x32xbf16>
    %169 = vector.shape_cast %168 : vector<1x6x8x32xbf16> to vector<6x8x32xbf16>
    %170 = vector.shape_cast %167 : vector<6x8x32xbf16> to vector<1x6x8x32xbf16>
    tpu.vector_store %arg16[%c0_64, %c0_65, %c0_66, %c0_67], %170 {strides = array<i32>} : memref<1x6x8x32xbf16, #tpu.memory_space<vmem>>, vector<1x6x8x32xbf16>,
    return
  }
  func.func @transform_0(%arg0: i32, %arg1: i32) -> (i32, i32, i32) {
    %c0_i32 = arith.constant 0 : i32
    %c0_i32_0 = arith.constant 0 : i32
    return %arg0, %arg1, %c0_i32 : i32, i32, i32
  }
  func.func @transform_1(%arg0: i32, %arg1: i32) -> (i32, i32, i32) {
    %c0_i32 = arith.constant 0 : i32
    %c0_i32_0 = arith.constant 0 : i32
    return %arg0, %arg1, %c0_i32 : i32, i32, i32
  }
  func.func @transform_2(%arg0: i32, %arg1: i32) -> (i32, i32, i32) {
    %c0_i32 = arith.constant 0 : i32
    %c0_i32_0 = arith.constant 0 : i32
    return %arg0, %arg1, %c0_i32 : i32, i32, i32
  }
  func.func @transform_3(%arg0: i32, %arg1: i32) -> (i32, i32, i32) {
    %c0_i32 = arith.constant 0 : i32
    %c0_i32_0 = arith.constant 0 : i32
    return %arg0, %arg1, %c0_i32 : i32, i32, i32
  }
  func.func @transform_4(%arg0: i32, %arg1: i32) -> (i32, i32, i32) {
    %c0_i32 = arith.constant 0 : i32
    %c0_i32_0 = arith.constant 0 : i32
    return %arg0, %arg1, %c0_i32 : i32, i32, i32
  }
  func.func @transform_5(%arg0: i32, %arg1: i32) -> (i32, i32) {
    %c0_i32 = arith.constant 0 : i32
    %c0_i32_0 = arith.constant 0 : i32
    %c0_i32_1 = arith.constant 0 : i32
    return %c0_i32, %c0_i32_0 : i32, i32
  }
  func.func @transform_6(%arg0: i32, %arg1: i32) -> (i32, i32) {
    %c0_i32 = arith.constant 0 : i32
    %c0_i32_0 = arith.constant 0 : i32
    %c0_i32_1 = arith.constant 0 : i32
    return %c0_i32, %c0_i32_0 : i32, i32
  }
  func.func @transform_7(%arg0: i32, %arg1: i32) -> (i32, i32) {
    %c0_i32 = arith.constant 0 : i32
    %c0_i32_0 = arith.constant 0 : i32
    %c0_i32_1 = arith.constant 0 : i32
    return %c0_i32, %c0_i32_0 : i32, i32
  }
  func.func @transform_8(%arg0: i32, %arg1: i32) -> (i32, i32) {
    %c0_i32 = arith.constant 0 : i32
    %c0_i32_0 = arith.constant 0 : i32
    %c0_i32_1 = arith.constant 0 : i32
    return %c0_i32, %c0_i32_0 : i32, i32
  }
  func.func @transform_9(%arg0: i32, %arg1: i32) -> (i32, i32) {
    %c0_i32 = arith.constant 0 : i32
    %c0_i32_0 = arith.constant 0 : i32
    %c0_i32_1 = arith.constant 0 : i32
    return %c0_i32, %c0_i32_0 : i32, i32
  }
  func.func @transform_10(%arg0: i32, %arg1: i32) -> (i32, i32) {
    %c0_i32 = arith.constant 0 : i32
    %c0_i32_0 = arith.constant 0 : i32
    %c0_i32_1 = arith.constant 0 : i32
    return %c0_i32, %c0_i32_0 : i32, i32
  }
  func.func @transform_11(%arg0: i32, %arg1: i32) -> (i32, i32) {
    %c0_i32 = arith.constant 0 : i32
    %c0_i32_0 = arith.constant 0 : i32
    %c0_i32_1 = arith.constant 0 : i32
    return %c0_i32, %c0_i32_0 : i32, i32
  }
  func.func @transform_12(%arg0: i32, %arg1: i32) -> (i32, i32, i32, i32) {
    %c0_i32 = arith.constant 0 : i32
    %c0_i32_0 = arith.constant 0 : i32
    %c0_i32_1 = arith.constant 0 : i32
    return %arg0, %c0_i32, %arg1, %c0_i32_0 : i32, i32, i32, i32
  }
  func.func @transform_13(%arg0: i32, %arg1: i32) -> (i32, i32, i32, i32) {
    %c0_i32 = arith.constant 0 : i32
    %c0_i32_0 = arith.constant 0 : i32
    %c0_i32_1 = arith.constant 0 : i32
    return %arg0, %c0_i32, %arg1, %c0_i32_0 : i32, i32, i32, i32
  }
  func.func @transform_14(%arg0: i32, %arg1: i32) -> (i32, i32, i32, i32) {
    %c0_i32 = arith.constant 0 : i32
    %c0_i32_0 = arith.constant 0 : i32
    %c0_i32_1 = arith.constant 0 : i32
    return %arg0, %c0_i32, %arg1, %c0_i32_0 : i32, i32, i32, i32
  }
}

module attributes {stable_mosaic.version = 11 : i64} {
  func.func @_attn_kernel(%arg0: i32, %arg1: i32, %arg2: i32, %arg3: memref<1x6x8x64xbf16, #tpu.memory_space<vmem>>, %arg4: memref<1x6x8x64xbf16, #tpu.memory_space<vmem>>, %arg5: memref<1x6x8x32xbf16, #tpu.memory_space<vmem>>, %arg6: memref<1x8x96xf32, #tpu.memory_space<vmem>>, %arg7: memref<6x8x32xf32, #tpu.memory_space<vmem>>) attributes {dimension_semantics = [#tpu.dimension_semantics<parallel>, #tpu.dimension_semantics<parallel>, #tpu.dimension_semantics<arbitrary>], iteration_bounds = array<i64: 2, 1, 1>, scalar_prefetch = 0 : i64, scratch_operands = 1 : i64, tpu.core_type = #tpu.core_type<tc>, window_params = [{transform_indices = @transform_0, window_bounds = array<i64: 1, 6, 8, 64>}, {transform_indices = @transform_1, window_bounds = array<i64: 1, 6, 8, 64>}, {transform_indices = @transform_2, window_bounds = array<i64: 1, 6, 8, 32>}, {transform_indices = @transform_3, window_bounds = array<i64: 1, 8, 96>}]} {
    %c0_i32 = arith.constant 0 : i32
    %0 = arith.cmpi eq, %arg2, %c0_i32 : i32
    %1 = arith.extui %0 : i1 to i32
    %c0_i32_0 = arith.constant 0 : i32
    %2 = arith.cmpi ne, %1, %c0_i32_0 : i32
    scf.if %2 {
      %cst = arith.constant 0.000000e+00 : f32
      %7 = vector.broadcast %cst : f32 to vector<6x8x32xf32>
      %c0 = arith.constant 0 : index
      %c0_5 = arith.constant 0 : index
      %c0_6 = arith.constant 0 : index
      %8 = vector.load %arg7[%c0, %c0_5, %c0_6] : memref<6x8x32xf32, #tpu.memory_space<vmem>>, vector<6x8x32xf32>
      tpu.vector_store %arg7[%c0, %c0_5, %c0_6], %7 {strides = array<i32>} : memref<6x8x32xf32, #tpu.memory_space<vmem>>, vector<6x8x32xf32>,
    } else {
    }
    %c0_i32_1 = arith.constant 0 : i32
    %c6_i32 = arith.constant 6 : i32
    %3 = arith.addi %c0_i32_1, %c6_i32 : i32
    %c1_i32 = arith.constant 1 : i32
    scf.for %arg8 = %c0_i32_1 to %3 step %c1_i32  : i32 {
      %c0 = arith.constant 0 : index
      %7 = arith.index_cast %arg8 : i32 to index
      %c0_5 = arith.constant 0 : index
      %c0_6 = arith.constant 0 : index
      %8 = vector.load %arg3[%c0, %7, %c0_5, %c0_6] : memref<1x6x8x64xbf16, #tpu.memory_space<vmem>>, vector<1x1x8x64xbf16>
      %9 = vector.shape_cast %8 : vector<1x1x8x64xbf16> to vector<8x64xbf16>
      %c0_7 = arith.constant 0 : index
      %10 = arith.index_cast %arg8 : i32 to index
      %c0_8 = arith.constant 0 : index
      %c0_9 = arith.constant 0 : index
      %11 = vector.load %arg4[%c0_7, %10, %c0_8, %c0_9] : memref<1x6x8x64xbf16, #tpu.memory_space<vmem>>, vector<1x1x8x64xbf16>
      %12 = vector.shape_cast %11 : vector<1x1x8x64xbf16> to vector<8x64xbf16>
      %cst = arith.constant dense<0.000000e+00> : vector<8x8xf32>
      %13 = tpu.matmul %9, %12, %cst {dimension_numbers = #tpu.dot_dimension_numbers<[1], [1], [0], [0], [0, 0, 1, 0], [], []>} : vector<8x64xbf16>, vector<8x64xbf16>, vector<8x8xf32> -> vector<8x8xf32>
      %14 = math.exp %13 : vector<8x8xf32>
      %15 = arith.truncf %14 : vector<8x8xf32> to vector<8x8xbf16>
      %16 = arith.index_cast %arg8 : i32 to index
      %c0_10 = arith.constant 0 : index
      %c0_11 = arith.constant 0 : index
      %17 = vector.load %arg7[%16, %c0_10, %c0_11] : memref<6x8x32xf32, #tpu.memory_space<vmem>>, vector<1x8x32xf32>
      %18 = vector.shape_cast %17 : vector<1x8x32xf32> to vector<8x32xf32>
      %c0_12 = arith.constant 0 : index
      %19 = arith.index_cast %arg8 : i32 to index
      %c0_13 = arith.constant 0 : index
      %c0_14 = arith.constant 0 : index
      %20 = vector.load %arg5[%c0_12, %19, %c0_13, %c0_14] : memref<1x6x8x32xbf16, #tpu.memory_space<vmem>>, vector<1x1x8x32xbf16>
      %21 = vector.shape_cast %20 : vector<1x1x8x32xbf16> to vector<8x32xbf16>
      %cst_15 = arith.constant dense<0.000000e+00> : vector<8x32xf32>
      %22 = tpu.matmul %15, %21, %cst_15 {dimension_numbers = #tpu.dot_dimension_numbers<[1], [0], [0], [1], [0, 0, 1, 1], [], []>} : vector<8x8xbf16>, vector<8x32xbf16>, vector<8x32xf32> -> vector<8x32xf32>
      %23 = arith.addf %18, %22 : vector<8x32xf32>
      %24 = arith.index_cast %arg8 : i32 to index
      %c0_16 = arith.constant 0 : index
      %c0_17 = arith.constant 0 : index
      %25 = vector.load %arg7[%24, %c0_16, %c0_17] : memref<6x8x32xf32, #tpu.memory_space<vmem>>, vector<1x8x32xf32>
      %26 = vector.shape_cast %25 : vector<1x8x32xf32> to vector<8x32xf32>
      %27 = vector.shape_cast %23 : vector<8x32xf32> to vector<1x8x32xf32>
      tpu.vector_store %arg7[%24, %c0_16, %c0_17], %27 {strides = array<i32>} : memref<6x8x32xf32, #tpu.memory_space<vmem>>, vector<1x8x32xf32>,
    }
    %c6_i32_2 = arith.constant 6 : i32
    %c0_i32_3 = arith.constant 0 : i32
    %4 = arith.cmpi eq, %arg2, %c0_i32_3 : i32
    %5 = arith.extui %4 : i1 to i32
    %c0_i32_4 = arith.constant 0 : i32
    %6 = arith.cmpi ne, %5, %c0_i32_4 : i32
    scf.if %6 {
      %c0 = arith.constant 0 : index
      %c0_5 = arith.constant 0 : index
      %c0_6 = arith.constant 0 : index
      %7 = vector.load %arg7[%c0, %c0_5, %c0_6] : memref<6x8x32xf32, #tpu.memory_space<vmem>>, vector<6x8x32xf32>
      %8 = vector.extract_strided_slice %7 {offsets = [0, 0, 0], sizes = [6, 8, 16], strides = [1, 1, 1]} : vector<6x8x32xf32> to vector<6x8x16xf32>
      %9 = vector.extract_strided_slice %7 {offsets = [0, 0, 16], sizes = [6, 8, 1], strides = [1, 1, 1]} : vector<6x8x32xf32> to vector<6x8x1xf32>
      %10 = tpu.reciprocal %9 : vector<6x8x1xf32> -> vector<6x8x1xf32>
      %11 = vector.broadcast %10 : vector<6x8x1xf32> to vector<6x8x16xf32>
      %12 = arith.mulf %8, %11 : vector<6x8x16xf32>
      %13 = vector.extract_strided_slice %12 {offsets = [0, 0, 0], sizes = [1, 8, 16], strides = [1, 1, 1]} : vector<6x8x16xf32> to vector<1x8x16xf32>
      %14 = vector.shape_cast %13 : vector<1x8x16xf32> to vector<8x16xf32>
      %15 = vector.extract_strided_slice %12 {offsets = [1, 0, 0], sizes = [1, 8, 16], strides = [1, 1, 1]} : vector<6x8x16xf32> to vector<1x8x16xf32>
      %16 = vector.shape_cast %15 : vector<1x8x16xf32> to vector<8x16xf32>
      %17 = vector.extract_strided_slice %12 {offsets = [2, 0, 0], sizes = [1, 8, 16], strides = [1, 1, 1]} : vector<6x8x16xf32> to vector<1x8x16xf32>
      %18 = vector.shape_cast %17 : vector<1x8x16xf32> to vector<8x16xf32>
      %19 = vector.extract_strided_slice %12 {offsets = [3, 0, 0], sizes = [1, 8, 16], strides = [1, 1, 1]} : vector<6x8x16xf32> to vector<1x8x16xf32>
      %20 = vector.shape_cast %19 : vector<1x8x16xf32> to vector<8x16xf32>
      %21 = vector.extract_strided_slice %12 {offsets = [4, 0, 0], sizes = [1, 8, 16], strides = [1, 1, 1]} : vector<6x8x16xf32> to vector<1x8x16xf32>
      %22 = vector.shape_cast %21 : vector<1x8x16xf32> to vector<8x16xf32>
      %23 = vector.extract_strided_slice %12 {offsets = [5, 0, 0], sizes = [1, 8, 16], strides = [1, 1, 1]} : vector<6x8x16xf32> to vector<1x8x16xf32>
      %24 = vector.shape_cast %23 : vector<1x8x16xf32> to vector<8x16xf32>
      %25 = tpu.concatenate %14, %16, %18, %20, %22, %24 in 1 : vector<8x16xf32>, vector<8x16xf32>, vector<8x16xf32>, vector<8x16xf32>, vector<8x16xf32>, vector<8x16xf32> -> vector<8x96xf32>
      %c0_7 = arith.constant 0 : index
      %c0_8 = arith.constant 0 : index
      %c0_9 = arith.constant 0 : index
      %26 = vector.load %arg6[%c0_7, %c0_8, %c0_9] : memref<1x8x96xf32, #tpu.memory_space<vmem>>, vector<1x8x96xf32>
      %27 = vector.shape_cast %26 : vector<1x8x96xf32> to vector<8x96xf32>
      %28 = vector.shape_cast %25 : vector<8x96xf32> to vector<1x8x96xf32>
      tpu.vector_store %arg6[%c0_7, %c0_8, %c0_9], %28 {strides = array<i32>} : memref<1x8x96xf32, #tpu.memory_space<vmem>>, vector<1x8x96xf32>,
    } else {
    }
    return
  }
  func.func @transform_0(%arg0: i32, %arg1: i32, %arg2: i32) -> (i32, i32, i32, i32) {
    %c0_i32 = arith.constant 0 : i32
    %c0_i32_0 = arith.constant 0 : i32
    %c0_i32_1 = arith.constant 0 : i32
    return %arg0, %c0_i32, %arg1, %c0_i32_0 : i32, i32, i32, i32
  }
  func.func @transform_1(%arg0: i32, %arg1: i32, %arg2: i32) -> (i32, i32, i32, i32) {
    %c0_i32 = arith.constant 0 : i32
    %c0_i32_0 = arith.constant 0 : i32
    %c0_i32_1 = arith.constant 0 : i32
    return %arg0, %c0_i32, %arg2, %c0_i32_0 : i32, i32, i32, i32
  }
  func.func @transform_2(%arg0: i32, %arg1: i32, %arg2: i32) -> (i32, i32, i32, i32) {
    %c0_i32 = arith.constant 0 : i32
    %c0_i32_0 = arith.constant 0 : i32
    %c0_i32_1 = arith.constant 0 : i32
    return %arg0, %c0_i32, %arg2, %c0_i32_0 : i32, i32, i32, i32
  }
  func.func @transform_3(%arg0: i32, %arg1: i32, %arg2: i32) -> (i32, i32, i32) {
    %c0_i32 = arith.constant 0 : i32
    %c0_i32_0 = arith.constant 0 : i32
    return %arg0, %arg1, %c0_i32 : i32, i32, i32
  }
}

</mosaic_0001>

<bundles_post_ra>
// kernel: binary_attention_b.3
= control target key start
LH: loop header
LB: loop body
LE: loop exit
PB: predicated region body
PF: predicated region fallthrough
CT: control target
= control target key end

     0   :  { %8 = vsyncpa [#allocation4], 0  ;;  %s1030_s0 = inlined_call_operand.vmem [shape: bf16[2,6,8,64], index: 0, kind: input, shape index: {}]   ;;  %s1031_s1 = inlined_call_operand.vmem [shape: bf16[2,6,8,64], index: 1, kind: input, shape index: {}]   ;;  %s1032_s2 = inlined_call_operand.vmem [shape: bf16[2,6,8,32], index: 2, kind: input, shape index: {}]   ;;  %s1033_s3 = inlined_call_operand.hbm [shape: f32[2,8,96], index: 3, kind: output, shape index: {}]  }
   0x1   :  { %10 = vsyncpa [#allocation4 + $0x1], 0  ;;  %s860_s12 = smov 0   ;;  %s862_s13 = smov 0  }
   0x2   :  { %s864_s14 = smov 0   ;;  %s866_s15 = smov 0  }
   0x3   :  { %s868_s16 = smov 0   ;;  %s870_s17 = smov 0  }
   0x4 LB: > { %s618_s18 = sadd.s32 4294967295, %s824_s17   ;;  %s619_s19 = sadd.s32 4294967294, %s824_s17   ;;  %s824_s17 = sphi %s870_s17, %s16_s17   ;;  %s820_s16 = sphi %s868_s16, %s1040_s16   ;;  %s816_s15 = sphi %s866_s15, %s1039_s15   ;;  %s812_s14 = sphi %s864_s14, %s1038_s14   ;;  %s808_s13 = sphi %s862_s13, %s1037_s13   ;;  %s804_s12 = sphi %s860_s12, %s1036_s12  }
   0x5   : > { %s35_s20 = sadd.s32 1, %s820_s16  ;;  %s128_s21 = sadd.s32 1, %s812_s14 }
   0x6   : > { %p37_p0 = scmp.ge.s32.totalorder %s35_s20, 2  ;;  %p138_p1 = scmp.ne.s32.totalorder %s812_s14, %s808_s13 }
   0x7   : > { %p139_p2 = scmp.eq.s32.totalorder %s618_s18, 1  ;;  %p144_p3 = scmp.ne.s32.totalorder %s808_s13, %s804_s12 }
   0x8   : > { %s1042_s20 = smov (%p37_p0, %s35_s20), 0  ;;  %p145_p5 = scmp.eq.s32.totalorder %s619_s19, 1 }
   0x9   : > { %p900_p4 = por %p139_p2, %p138_p1  ;;  %s123_s23 = ssub.s32 %s820_s16, %s1042_s20 }
   0xa   : > { %p622_p6 = scmp.ge.s32.totalorder %s824_s17, 1  ;;  %p126_p7 = scmp.eq.s32.totalorder %s123_s23, 0 }
   0xb   : > { %p907_p8 = por %p145_p5, %p144_p3  ;;  %p196_p9 = scmp.lt.s32.totalorder %s824_s17, 3 }
   0xc   : > { %s913_s25 = scalar_select %p126_p7, %s812_s14, %s128_s21  }
   0xd   : > { %p197_p10 = pnand %p622_p6, %p196_p9 }
   0xe   : > { %s236_s26 = sand.u32 (!%p197_p10), 1, %s808_s13   ;;  %p239_p11 = scmp.lt.s32.totalorder (!%p197_p10), %s816_s15, 1  ;;  %vm268_vm0 = vcmask (!%p197_p10), 261120   ;;  %v830_v0 = vmov (!%p197_p10), 0.0  }
   0xf   : > { %200 = sbr.rel (%p197_p10) target bundleno = 769 (0x301), region = 32  ;;  %s919_s27 = sshll.u32 (!%p197_p10), %s236_s26, 3  ;;  %269 = vst.msk [vmem:[#allocation2] sm:$0xff] (!%p197_p10), %vm268_vm0, %v830_v0  ;;  %270 = vst.msk [vmem:[#allocation2 + $0x8] sm:$0xff] (!%p197_p10), %vm268_vm0, %v830_v0 }
  0x10   : > { %271 = vst.msk [vmem:[#allocation2 + $0x10] sm:$0xff] (!%p197_p10), %vm268_vm0, %v830_v0  ;;  %272 = vst.msk [vmem:[#allocation2 + $0x18] sm:$0xff] (!%p197_p10), %vm268_vm0, %v830_v0  ;;  %s238_s18 = scalar_lea.vmem (!%p197_p10), [#allocation3], %s919_s27  ;;  %s943_s19 = smov (!%p197_p10), 0  }
  0x11   : > { %273 = vst.msk [vmem:[#allocation2 + $0x20] sm:$0xff] (!%p197_p10), %vm268_vm0, %v830_v0  ;;  %274 = vst.msk [vmem:[#allocation2 + $0x28] sm:$0xff] (!%p197_p10), %vm268_vm0, %v830_v0 }
  0x16   : > { %s240_s28 = scalar_select %p239_p11, %s816_s15, 1 }
  0x18   : > { %s928_s29 = smul.u32 24, %s240_s28 }
  0x1a   : > { %s246_s5 = scalar_lea.vmem %s1030_s0, %s928_s29  ;;  %s254_s8 = scalar_lea.vmem %s1031_s1, %s928_s29 }
  0x1b   : > { %s262_s11 = scalar_lea.vmem %s1032_s2, %s928_s29 }
  0x1c LB: >> { %v831_v1 = vmov 0.0   ;;  %vm832_vm1 = vmmov 0   ;;  %s627_s21 = sshll.u32 %s828_s19, 2  ;;  %vm287_vm2 = vcmask 523264   ;;  %vm347_vm3 = vcmask 1043456   ;;  %s630_s28 = sshll.u32 %s828_s19, 3  ;;  %s828_s19 = sphi %s943_s19, %s280_s19  }
  0x1d   : >> { %641 = vmatprep.subr.bf16.mxu0 %v831_v1  ;;  %643 = vmatprep.mubr.msk.bf16.mxu0 %vm832_vm1, %v831_v1  ;;  %s285_s30 = scalar_lea.vmem %s254_s8, %s627_s21  ;;  %s282_s7 = scalar_lea.vmem %s246_s5, %s627_s21  ;;  %vm343_vm4 = vcmask 64512  }
  0x1e   : >> { %647 = vmatprep.subr.bf16.mxu1 %v831_v1  ;;  %649 = vmatprep.mubr.msk.bf16.mxu1 %vm832_vm1, %v831_v1  ;;  %v286_v2 = vld [vmem:[%s285_s30] sm:$0xf]  ;;  %s341_s23 = scalar_lea.vmem %s262_s11, %s627_s21  ;;  %s338_s30 = scalar_lea.vmem [#allocation2], %s630_s28 }
  0x1f   : >> { %v292_v3 = vsel %vm287_vm2, %v286_v2, 0  ;;  %v283_v4 = vld [vmem:[%s282_s7] sm:$0xf]  ;;  %s280_s19 = sadd.s32 1, %s828_s19  }
  0x20   : >> { %642 = vmatpush3.bf16.xpose.msra.mxu0 %v292_v3  ;;  %v342_v5 = vld [vmem:[%s341_s23] sm:$0xf]  ;;  %p277_p12 = scmp.ge.s32.totalorder %s280_s19, 6  }
  0x21   : >> { %v349_v6 = vsel %vm347_vm3, %v342_v5, 0  ;;  %v339_v14 = vld [vmem:[%s338_s30] sm:$0xff]  ;;  %v833_v23 = vmov (%p277_p12), 16   ;;  %s834_s29 = smov (%p277_p12), 16   ;;  %s835_s5 = smov (%p277_p12), 48   ;;  %vm465_vm5 = vcmask (%p277_p12), 130048  }
  0x22   : >> { %648 = vmatpush3.bf16.msra.mxu1 %v349_v6  ;;  %729 = vset.pattern.permute.xlu1 (%p277_p12), %v833_v23  ;;  %s836_s8 = smov (%p277_p12), 32   ;;  %s837_s11 = smov (%p277_p12), 80   ;;  %vm469_vm6 = vcmask (%p277_p12), 392192   ;;  %vm473_vm7 = vcmask (%p277_p12), 654336   ;;  %vm475_vm8 = vcmask (%p277_p12), 785408  }
  0x23   : > { %728 = vset.pattern.permute.xlu0 (%p277_p12), %v833_v23  ;;  %s838_s19 = smov (%p277_p12), 64   ;;  %s634_s21 = sshll.u32 (%p277_p12), %s816_s15, 7 }
  0x24   : > { %s492_s4 = sshll.u32 (%p277_p12), %s238_s18, 4  ;;  %s979_s9 = scalar_lea.hbm (%p277_p12), %s1033_s3, %s634_s21  ;;  %s981_s4 = int_to_ptr.vmem [resolvable:$true] %s492_s4 }
  0x25   : > { %s478_s15 = scalar_lea.sflag (%p277_p12), [#allocation4], %s236_s26  ;;  %s742_s10 = scalar_lea.vmem (%p277_p12), %s981_s4, 128 }
  0x26   : > { %p743_p13 = scmp.ne.s32.totalorder (%p277_p12), %s981_s4, %s742_s10  ;;  %s839_s23 = smov (%p277_p12), [#allocation3]  }
  0x27   : >> { %644 = vmatmul.mubr.msk.bf16.vlgmr.msra.gmra.mrb[0].mxu0 %vm287_vm2, %v283_v4  ;;  %s746_s28 = sshll.u32 (%p277_p12), %s839_s23, 4  ;;  %s747_s28 = int_to_ptr.vmem [resolvable:$false] %s746_s28 }
  0x28   : > { %p744_p0 = pnand (%p277_p12), %p743_p13, %p900_p4  ;;  %p749_p2 = scmp.lt.s32.totalorder (%p277_p12), %s981_s4, %s747_s28 }
  0x2a   : > { %p745_p1 = pneg (%p277_p12), %p744_p0 }
  0xfa   : >> { %v328_v7 = vpop.f32.mrb[0].mxu0 }
  0xfb   : >> { %v334_v8 = vmul.f32 1.442695, %v328_v7  ;;  %v645_v9 = vpop.f32.mrb[1].mxu0 }
  0xfc   : >> { %v331_v10 = vpop.f32.mrb[2].mxu0 }
  0xfd   : >> { %726 = vpow2.f32 %v334_v8  ;;  %v646_v11 = vpop.f32.mrb[3].mxu0 }
 0x107   : >> { %v727_v12 = vpop.eup %726 }
 0x108   : >> { %v336_v13 = vpack.c.bf16 %v727_v12, %v727_v12 }
 0x10a   : >> { %650 = vmatmul.mubr.msk.bf16.vlgmr.msra.gmra.mrb[0].mxu1 %vm343_vm4, %v336_v13 }
 0x1da   : > { %279 = sbr.rel (!%p277_p12) target bundleno = 28 (0x1c), region = 92 }
 0x1dd   : >> { %v385_v15 = vpop.f32.mrb[0].mxu1 }
 0x1de   : >> { %v391_v16 = vadd.f32 %v385_v15, %v339_v14  ;;  %v651_v17 = vpop.f32.mrb[1].mxu1 }
 0x1df   : >> { %v388_v18 = vpop.f32.mrb[2].mxu1 }
 0x1e0   : >> { %393 = vst.msk [vmem:[%s338_s30] sm:$0xff] %vm268_vm0, %v391_v16  ;;  %v652_v19 = vpop.f32.mrb[3].mxu1  ;;  %s748_s30 = scalar_lea.vmem (%p277_p12), %s747_s28, 256 }
 0x1e1   : > { %p750_p3 = scmp.lt.s32.totalorder %s748_s30, %s742_s10 }
 0x1e3   : > { %p751_p5 = por %p750_p3, %p749_p2 }
 0x1e5   : > { %p752_p6 = pnand %p751_p5, %p745_p1 }
 0x1e7   : > { %v400_v20 = vld [vmem:[#allocation2 + $0x18] sm:$0xff]  ;;  %v398_v21 = vld [vmem:[#allocation2 + $0x8] sm:$0xff]  ;;  %v401_v22 = vld [vmem:[#allocation2 + $0x20] sm:$0xff] }
 0x1e8   : > { %730 = vrcp.f32 %v400_v20  ;;  %v399_v24 = vld [vmem:[#allocation2 + $0x10] sm:$0xff]  ;;  %v397_v25 = vld [vmem:[#allocation2] sm:$0xff]  ;;  %v402_v26 = vld [vmem:[#allocation2 + $0x28] sm:$0xff] }
 0x1e9   : > { %732 = vrcp.f32 %v398_v21 }
 0x1ea   : > { %734 = vrcp.f32 %v401_v22 }
 0x1eb   : > { %736 = vrcp.f32 %v399_v24 }
 0x1ec   : > { %738 = vrcp.f32 %v397_v25 }
 0x1ed   : > { %740 = vrcp.f32 %v402_v26 }
 0x1f2   : > { %v731_v27 = vpop.eup %730 }
 0x1f3   : > { %v733_v28 = vpop.eup %732  ;;  %426 = vperm.xlu1 %729, %v731_v27  }
 0x1f4   : > { %v735_v29 = vpop.eup %734  ;;  %416 = vperm.xlu0 %728, %v733_v28  }
 0x1f5   : > { %v737_v30 = vpop.eup %736 }
 0x1f6   : > { %v739_v31 = vpop.eup %738 }
 0x1f7   : > { %431 = vperm.xlu1 %729, %v735_v29   ;;  %v741_v32 = vpop.eup %740 }
 0x1f8   : > { %421 = vperm.xlu0 %728, %v737_v30  }
 0x1fb   : > { %411 = vperm.xlu1 %729, %v739_v31  }
 0x1fc   : > { %436 = vperm.xlu0 %728, %v741_v32  }
 0x272   : > { %v427_v33 = vpop.permute.xlu1 %426 }
 0x273   : > { %v417_v34 = vpop.permute.xlu0 %416  ;;  %v442_v36 = vmul.f32 %v427_v33, %v400_v20 }
 0x274   : > { %v440_v35 = vmul.f32 %v417_v34, %v398_v21 }
 0x276   : > { %446 = vrot.lane.b32.xlu0 %v440_v35, %s834_s29  ;;  %v432_v39 = vpop.permute.xlu1 %431 }
 0x277   : > { %v422_v37 = vpop.permute.xlu0 %421  ;;  %v443_v41 = vmul.f32 %v432_v39, %v401_v22 }
 0x278   : > { %v441_v38 = vmul.f32 %v422_v37, %v399_v24 }
 0x27a   : > { %454 = vrot.lane.b32.xlu0 %v442_v36, %s835_s5  ;;  %450 = vrot.lane.b32.xlu1 %v441_v38, %s836_s8  ;;  %v412_v43 = vpop.permute.xlu1 %411 }
 0x27b   : > { %v437_v40 = vpop.permute.xlu0 %436  ;;  %v439_v45 = vmul.f32 %v412_v43, %v397_v25 }
 0x27c   : > { %v444_v42 = vmul.f32 %v437_v40, %v402_v26 }
 0x27e   : > { %462 = vrot.lane.b32.xlu0 %v444_v42, %s837_s11  ;;  %458 = vrot.lane.b32.xlu1 %v443_v41, %s838_s19 }
 0x2e8   : > { %v447_v44 = vpop.permute.xlu0 %446 }
 0x2e9   : > { %v466_v47 = vsel %vm465_vm5, %v439_v45, %v447_v44 }
 0x2ec   : > { %v455_v46 = vpop.permute.xlu0 %454  ;;  %v451_v48 = vpop.permute.xlu1 %450 }
 0x2ed   : > { %v468_v49 = vsel %vm268_vm0, %v466_v47, %v451_v48 }
 0x2ee   : > { %v470_v51 = vsel %vm469_vm6, %v468_v49, %v455_v46 }
 0x2f0   : > { %v463_v50 = vpop.permute.xlu0 %462  ;;  %v459_v52 = vpop.permute.xlu1 %458 }
 0x2f1   : > { %v472_v53 = vsel %vm287_vm2, %v470_v51, %v459_v52 }
 0x2f2   : > { %v474_v54 = vsel %vm473_vm7, %v472_v53, %v463_v50 }
 0x2f3   : > { %476 = vst.msk [vmem:[%s238_s18] sm:$0xff] %vm475_vm8, %v474_v54 }
 0x2f4   : > { %755 = shalt.err (!%p752_p6)
}
 0x2f5   : > { %s756_s26 = scalar_lea.hbm %s979_s9, 128  ;;  %s760_s29 = scalar_lea.hbm %s1033_s3, 256 }
 0x2f6   : > { %p757_p7 = scmp.ne.s32.totalorder %s979_s9, %s756_s26  ;;  %p761_p11 = scmp.lt.u32.totalorder %s979_s9, %s1033_s3 }
 0x2f7   : > { %p762_p12 = scmp.lt.u32.totalorder %s760_s29, %s756_s26  ;;  %p764_p0 = scmp.lt.u32.totalorder %s756_s26, %s979_s9 }
 0x2f8   : > { %p758_p9 = pnand %p757_p7, %p900_p4 }
 0x2f9   : > { %p763_p13 = por %p762_p12, %p761_p11 }
 0x2fa   : > { %p759_p10 = pneg %p758_p9 }
 0x2fb   : > { %p765_p1 = por %p764_p0, %p763_p13 }
 0x2fd   : > { %p766_p2 = pnand %p765_p1, %p759_p10 }
 0x2ff   : > { %769 = shalt.err (!%p766_p2)
}
 0x300   : > { %654 = dma.vmem_to_hbm [thread:$0]  (%p900_p4), %s981_s4, 128, %s979_s9, %s478_s15  }
 0x301 PF: > { %p660_p3 = scmp.ge.s32.totalorder %s824_s17, 2  ;;  %s504_s11 = sand.u32 1, %s804_s12  }
 0x302   : > { %s505_s19 = scalar_lea.sflag [#allocation4], %s504_s11 }
 0x303   : > { %p657_p5 = pnand %p660_p3, %p907_p8 }
 0x305   : > { %799 = dma.done.wait (!%p657_p5), %s505_s19, 128  }
 0x306   : > { %801 = vsyncadd (!%p657_p5), %s505_s19, 4294967168  ;;  %s16_s17 = sadd.s32 1, %s824_s17   ;;  %s1036_s12 = smov %s808_s13 }
 0x307   : > { %p13_p6 = scmp.ge.s32.totalorder %s16_s17, 4   ;;  %s1037_s13 = smov %s812_s14 }
 0x308   : > { %s1038_s14 = smov %s913_s25  ;;  %s1039_s15 = smov %s820_s16 }
 0x309   : > { %s1040_s16 = smov %s1042_s20  ;;  %15 = sbr.rel (!%p13_p6) target bundleno = 4 (0x4), region = 103 }
 0x310   :  { %510 = vsyncpa [#allocation4], 1 }
 0x311   :  { %512 = vsyncpa [#allocation4 + $0x1], 1 }

// kernel: binary_attention_b.2
= control target key start
LH: loop header
LB: loop body
LE: loop exit
PB: predicated region body
PF: predicated region fallthrough
CT: control target
= control target key end

     0   :  { %s5142_s29 = smov 0   ;;  %s5144_s30 = smov 0   ;;  %s6820_s0 = inlined_call_operand.vmem [shape: f32[2,8,384], index: 0, kind: input, shape index: {}]   ;;  %s6821_s1 = inlined_call_operand.vmem [shape: bf16[2,8,384], index: 1, kind: input, shape index: {}]   ;;  %s6822_s2 = inlined_call_operand.vmem [shape: bf16[2,8,384], index: 2, kind: input, shape index: {}]   ;;  %s6823_s3 = inlined_call_operand.vmem [shape: bf16[2,8,384], index: 3, kind: input, shape index: {}]   ;;  %s6824_s4 = inlined_call_operand.vmem [shape: bf16[2,8,384], index: 4, kind: input, shape index: {}]   ;;  %s6825_s5 = inlined_call_operand.vmem [shape: bf16[384,384], index: 5, kind: input, shape index: {}]   ;;  %s6826_s6 = inlined_call_operand.vmem [shape: f32[1,384], index: 6, kind: input, shape index: {}]   ;;  %s6827_s7 = inlined_call_operand.vmem [shape: bf16[384,384], index: 7, kind: input, shape index: {}]   ;;  %s6828_s8 = inlined_call_operand.vmem [shape: f32[1,384], index: 8, kind: input, shape index: {}]   ;;  %s6829_s9 = inlined_call_operand.vmem [shape: bf16[384,96], index: 9, kind: input, shape index: {}]   ;;  %s6830_s10 = inlined_call_operand.vmem [shape: f32[1,96], index: 10, kind: input, shape index: {}]   ;;  %s6831_s11 = inlined_call_operand.vmem [shape: bf16[384,384], index: 11, kind: input, shape index: {}]   ;;  %s6832_s12 = inlined_call_operand.vmem [shape: bf16[2,6,8,64], index: 12, kind: output, shape index: {0}]   ;;  %s6833_s13 = inlined_call_operand.vmem [shape: bf16[2,6,8,64], index: 13, kind: output, shape index: {1}]   ;;  %s6834_s14 = inlined_call_operand.vmem [shape: bf16[2,6,8,32], index: 14, kind: output, shape index: {2}]  }
   0x1   :  { %s5146_s15 = smov 0  }
   0x2 LB: > { %s37_s16 = sadd.s32 1, %s5053_s30  ;;  %p3947_p0 = scmp.ge.s32.totalorder %s5057_s15, 1  ;;  %s5057_s15 = sphi %s5146_s15, %s25_s15   ;;  %s5053_s30 = sphi %s5144_s30, %s7017_s30   ;;  %s5049_s29 = sphi %s5142_s29, %s7016_s29  }
   0x3   : > { %p39_p1 = scmp.ge.s32.totalorder %s37_s16, 2  ;;  %p505_p2 = scmp.lt.s32.totalorder %s5057_s15, 3 }
   0x5   : > { %s7019_s16 = smov (%p39_p1, %s37_s16), 0  ;;  %p506_p3 = pnand %p3947_p0, %p505_p2 }
   0x7   : > { %509 = sbr.rel (%p506_p3) target bundleno = 993 (0x3e1), region = 68 }
   0xe   : > { %v4650_v0 = vld [vmem:[%s6825_s5 + $0x4] ss:$12 sps:$4 sm:$0xff]   ;;  %v4652_v1 = vld [vmem:[%s6825_s5] ss:$12 sps:$4 sm:$0xff]   ;;  %v4653_v2 = vld [vmem:[%s6825_s5 + $0x1c] ss:$12 sps:$4 sm:$0xff]  }
   0xf   : > { %1184 = vmatprep.subr.bf16.mxu0 %v4650_v0  ;;  %v4655_v3 = vld [vmem:[%s6825_s5 + $0x18] ss:$12 sps:$4 sm:$0xff]   ;;  %v4656_v4 = vld [vmem:[%s6825_s5 + $0x34] ss:$12 sps:$4 sm:$0xff]   ;;  %v4658_v5 = vld [vmem:[%s6825_s5 + $0x30] ss:$12 sps:$4 sm:$0xff]  }
  0x10   : > { %1185 = vmatpush1.bf16.msra.mxu0 %v4652_v1  ;;  %v4659_v6 = vld [vmem:[%s6825_s5 + $0x4c] ss:$12 sps:$4 sm:$0xff]   ;;  %v4661_v7 = vld [vmem:[%s6825_s5 + $0x48] ss:$12 sps:$4 sm:$0xff]   ;;  %v4662_v8 = vld [vmem:[%s6825_s5 + $0x64] ss:$12 sps:$4 sm:$0xff]  }
  0x11   : > { %1186 = vmatprep.subr.bf16.mxu0 %v4653_v2  ;;  %v4677_v9 = vld [vmem:[%s6825_s5 + $0xc8] ss:$12 sps:$4 sm:$0xff]   ;;  %v4664_v11 = vld [vmem:[%s6825_s5 + $0x60] ss:$12 sps:$4 sm:$0xff]   ;;  %v4667_v15 = vld [vmem:[%s6825_s5 + $0x78] ss:$12 sps:$4 sm:$0xff]  }
  0x12   : > { %v4678_v10 = vld [vmem:[%s6825_s5 + $0x8] ss:$12 sps:$4 sm:$0xff]   ;;  %4223 = vmatprep.subr.bf16.mxu1 %v4677_v9  ;;  %v4682_v13 = vld [vmem:[%s6825_s5 + $0xe0] ss:$12 sps:$4 sm:$0xff]   ;;  %v4687_v17 = vld [vmem:[%s6825_s5 + $0xf8] ss:$12 sps:$4 sm:$0xff]  }
  0x13   : > { %v4665_v12 = vld [vmem:[%s6825_s5 + $0x7c] ss:$12 sps:$4 sm:$0xff]   ;;  %4224 = vmatpush3.bf16.msra.mxu1 %v4678_v10  ;;  %v4683_v14 = vld [vmem:[%s6825_s5 + $0x20] ss:$12 sps:$4 sm:$0xff]   ;;  %v4688_v18 = vld [vmem:[%s6825_s5 + $0x38] ss:$12 sps:$4 sm:$0xff]  }
  0x14   : > { %1187 = vmatpush1.bf16.msra.mxu0 %v4655_v3  ;;  %v4668_v16 = vld [vmem:[%s6825_s5 + $0x94] ss:$12 sps:$4 sm:$0xff]   ;;  %4225 = vmatprep.subr.bf16.mxu1 %v4682_v13  ;;  %p610_p4 = scmp.lt.s32.totalorder %s5049_s29, 1  ;;  %v4670_v19 = vld [vmem:[%s6825_s5 + $0x90] ss:$12 sps:$4 sm:$0xff]   ;;  %v6837_v46 = vmov 0.0  }
  0x15   : > { %1188 = vmatprep.subr.bf16.mxu0 %v4656_v4  ;;  %v4692_v20 = vld [vmem:[%s6825_s5 + $0x110] ss:$12 sps:$4 sm:$0xff]   ;;  %v4671_v22 = vld [vmem:[%s6825_s5 + $0xac] ss:$12 sps:$4 sm:$0xff]   ;;  %v4673_v23 = vld [vmem:[%s6825_s5 + $0xa8] ss:$12 sps:$4 sm:$0xff]  }
  0x16   : > { %v4693_v21 = vld [vmem:[%s6825_s5 + $0x50] ss:$12 sps:$4 sm:$0xff]   ;;  %s7021_s29 = smov (!%p610_p4, %s5049_s29), 1  ;;  %v4697_v24 = vld [vmem:[%s6825_s5 + $0x128] ss:$12 sps:$4 sm:$0xff]   ;;  %vm5060_vm0 = vmmov 0  }
  0x17   : > { %4226 = vmatpush3.bf16.msra.mxu1 %v4683_v14  ;;  %v4698_v25 = vld [vmem:[%s6825_s5 + $0x68] ss:$12 sps:$4 sm:$0xff]   ;;  %v4674_v26 = vld [vmem:[%s6825_s5 + $0xc4] ss:$12 sps:$4 sm:$0xff]   ;;  %v4702_v27 = vld [vmem:[%s6825_s5 + $0x140] ss:$12 sps:$4 sm:$0xff]  }
  0x18   : > { %1189 = vmatpush1.bf16.msra.mxu0 %v4658_v5  ;;  %4227 = vmatprep.subr.bf16.mxu1 %v4687_v17  ;;  %v4676_v28 = vld [vmem:[%s6825_s5 + $0xc0] ss:$12 sps:$4 sm:$0xff]   ;;  %s5254_s27 = smul.u32 24, %s7021_s29  ;;  %v4679_v29 = vld [vmem:[%s6825_s5 + $0xdc] ss:$12 sps:$4 sm:$0xff]   ;;  %v6835_v1 = vmov 0  }
  0x19   : > { %1190 = vmatprep.subr.bf16.mxu0 %v4659_v6  ;;  %v4703_v30 = vld [vmem:[%s6825_s5 + $0x80] ss:$12 sps:$4 sm:$0xff]   ;;  %v4707_v31 = vld [vmem:[%s6825_s5 + $0x158] ss:$12 sps:$4 sm:$0xff]   ;;  %v4712_v35 = vld [vmem:[%s6825_s5 + $0x170] ss:$12 sps:$4 sm:$0xff]  }
  0x1a   : > { %v4681_v32 = vld [vmem:[%s6825_s5 + $0xd8] ss:$12 sps:$4 sm:$0xff]   ;;  %v4684_v33 = vld [vmem:[%s6825_s5 + $0xf4] ss:$12 sps:$4 sm:$0xff]   ;;  %s5275_s17 = scalar_lea.vmem %s6820_s0, %s5254_s27  ;;  %v4686_v37 = vld [vmem:[%s6825_s5 + $0xf0] ss:$12 sps:$4 sm:$0xff]   ;;  %s6391_s28 = scalar_lea.vmem %s6834_s14, %s5254_s27 }
  0x1b   : > { %4228 = vmatpush3.bf16.msra.mxu1 %v4688_v18  ;;  %v4708_v34 = vld [vmem:[%s6825_s5 + $0x98] ss:$12 sps:$4 sm:$0xff]   ;;  %v682_v36 = vld [vmem:[%s5275_s17 + $0x8] sm:$0xff]  ;;  %v4713_v38 = vld [vmem:[%s6825_s5 + $0xb0] ss:$12 sps:$4 sm:$0xff]   ;;  %s6039_s18 = smul.u32 12, %s7021_s29  ;;  %s6761_s25 = scalar_lea.vmem %s6832_s12, %s5254_s27 }
  0x1c   : > { %1191 = vmatpush1.bf16.msra.mxu0 %v4661_v7  ;;  %4229 = vmatprep.subr.bf16.mxu1 %v4692_v20  ;;  %v5290_v39 = vpack.c.bf16 %v682_v36, %v682_v36  ;;  %v681_v40 = vld [vmem:[%s5275_s17] sm:$0xff]  ;;  %v4689_v41 = vld [vmem:[%s6825_s5 + $0x10c] ss:$12 sps:$4 sm:$0xff]   ;;  %v4691_v43 = vld [vmem:[%s6825_s5 + $0x108] ss:$12 sps:$4 sm:$0xff]   ;;  %vm3641_vm11 = vcmask 130048  }
  0x1d   : > { %1192 = vmatprep.subr.bf16.mxu0 %v4662_v8  ;;  %v5298_v42 = vpack.c.bf16 %v681_v40, %v681_v40  ;;  %v4717_v44 = vld [vmem:[%s6825_s5 + $0x188] ss:$12 sps:$4 sm:$0xff]   ;;  %v4694_v45 = vld [vmem:[%s6825_s5 + $0x124] ss:$12 sps:$4 sm:$0xff]   ;;  %v4696_v47 = vld [vmem:[%s6825_s5 + $0x120] ss:$12 sps:$4 sm:$0xff]   ;;  %s636_s20 = scalar_lea.vmem %s6822_s2, %s6039_s18  ;;  %s6066_s22 = scalar_lea.vmem %s6821_s1, %s6039_s18 }
  0x1e   : > { %1216 = vmatprep.mubr.bf16.mxu0 %v5290_v39  ;;  %1298 = vmatprep.mubr.bf16.mxu1 %v5290_v39  ;;  %v4721_v48 = vld [vmem:[%s6825_s5 + $0x1a0] ss:$12 sps:$4 sm:$0xff]   ;;  %v4699_v49 = vld [vmem:[%s6825_s5 + $0x13c] ss:$12 sps:$4 sm:$0xff]   ;;  %v4701_v50 = vld [vmem:[%s6825_s5 + $0x138] ss:$12 sps:$4 sm:$0xff]   ;;  %s6303_s23 = scalar_lea.vmem %s6824_s4, %s6039_s18 }
  0x1f   : > { %4230 = vmatpush3.bf16.msra.mxu1 %v4693_v21  ;;  %v4725_v51 = vld [vmem:[%s6825_s5 + $0x1b8] ss:$12 sps:$4 sm:$0xff]   ;;  %v4704_v52 = vld [vmem:[%s6825_s5 + $0x154] ss:$12 sps:$4 sm:$0xff]   ;;  %v4706_v53 = vld [vmem:[%s6825_s5 + $0x150] ss:$12 sps:$4 sm:$0xff]  }
  0x20   : > { %1193 = vmatpush1.bf16.msra.mxu0 %v4664_v11  ;;  %4231 = vmatprep.subr.bf16.mxu1 %v4697_v24  ;;  %v4729_v54 = vld [vmem:[%s6825_s5 + $0x1d0] ss:$12 sps:$4 sm:$0xff]   ;;  %v4709_v55 = vld [vmem:[%s6825_s5 + $0x16c] ss:$12 sps:$4 sm:$0xff]   ;;  %v4711_v56 = vld [vmem:[%s6825_s5 + $0x168] ss:$12 sps:$4 sm:$0xff]  }
  0x21   : > { %1194 = vmatprep.subr.bf16.mxu0 %v4665_v12  ;;  %v4733_v57 = vld [vmem:[%s6825_s5 + $0x1e8] ss:$12 sps:$4 sm:$0xff]   ;;  %v4716_v58 = vld [vmem:[%s6825_s5 + $0x184] ss:$12 sps:$4 sm:$0xff]   ;;  %v4714_v59 = vld [vmem:[%s6825_s5 + $0x180] ss:$12 sps:$4 sm:$0xff]  }
  0x22   : > { %v4737_v60 = vld [vmem:[%s6825_s5 + $0x200] ss:$12 sps:$4 sm:$0xff]   ;;  %v4720_v61 = vld [vmem:[%s6825_s5 + $0x19c] ss:$12 sps:$4 sm:$0xff]   ;;  %v4718_v62 = vld [vmem:[%s6825_s5 + $0x198] ss:$12 sps:$4 sm:$0xff]  }
  0x23   : > { %4232 = vmatpush3.bf16.msra.mxu1 %v4698_v25  ;;  %v4741_v63 = vld [vmem:[%s6825_s5 + $0x218] ss:$12 sps:$4 sm:$0xff]   ;;  %v4724_v0 = vld [vmem:[%s6825_s5 + $0x1b4] ss:$12 sps:$4 sm:$0xff]   ;;  %v4722_v2 = vld [vmem:[%s6825_s5 + $0x1b0] ss:$12 sps:$4 sm:$0xff]  }
  0x24   : > { %1195 = vmatpush1.bf16.msra.mxu0 %v4667_v15  ;;  %4233 = vmatprep.subr.bf16.mxu1 %v4702_v27  ;;  %v4745_v3 = vld [vmem:[%s6825_s5 + $0x230] ss:$12 sps:$4 sm:$0xff]   ;;  %v4728_v5 = vld [vmem:[%s6825_s5 + $0x1cc] ss:$12 sps:$4 sm:$0xff]   ;;  %v4726_v8 = vld [vmem:[%s6825_s5 + $0x1c8] ss:$12 sps:$4 sm:$0xff]  }
  0x25   : > { %1196 = vmatprep.subr.bf16.mxu0 %v4668_v16  ;;  %v683_v4 = vld [vmem:[%s5275_s17 + $0x10] sm:$0xff]  ;;  %v4746_v9 = vld [vmem:[%s6827_s7] ss:$12 sps:$4 sm:$0xff]   ;;  %v4751_v11 = vld [vmem:[%s6827_s7 + $0x1c] ss:$12 sps:$4 sm:$0xff]   ;;  %vm3672_vm12 = vcmask 257024  }
  0x26   : > { %v4748_v6 = vld [vmem:[%s6827_s7 + $0x4] ss:$12 sps:$4 sm:$0xff]   ;;  %v5389_v7 = vpack.c.bf16 %v683_v4, %v683_v4  ;;  %v4730_v12 = vld [vmem:[%s6825_s5 + $0x1e0] ss:$12 sps:$4 sm:$0xff]   ;;  %v4736_v13 = vld [vmem:[%s6825_s5 + $0x1fc] ss:$12 sps:$4 sm:$0xff]  }
  0x27   : > { %4234 = vmatpush3.bf16.msra.mxu1 %v4703_v30  ;;  %v4732_v10 = vld [vmem:[%s6825_s5 + $0x1e4] ss:$12 sps:$4 sm:$0xff]   ;;  %v4754_v15 = vld [vmem:[%s6827_s7 + $0x34] ss:$12 sps:$4 sm:$0xff]   ;;  %v4744_v21 = vld [vmem:[%s6825_s5 + $0x22c] ss:$12 sps:$4 sm:$0xff]  }
  0x28   : > { %1197 = vmatpush1.bf16.msra.mxu0 %v4670_v19  ;;  %4235 = vmatprep.subr.bf16.mxu1 %v4707_v31  ;;  %v4749_v14 = vld [vmem:[%s6827_s7 + $0x18] ss:$12 sps:$4 sm:$0xff]   ;;  %v4740_v17 = vld [vmem:[%s6825_s5 + $0x214] ss:$12 sps:$4 sm:$0xff]   ;;  %v4752_v18 = vld [vmem:[%s6827_s7 + $0x30] ss:$12 sps:$4 sm:$0xff]  }
  0x29   : > { %1198 = vmatprep.subr.bf16.mxu0 %v4671_v22  ;;  %v4734_v16 = vld [vmem:[%s6825_s5 + $0x1f8] ss:$12 sps:$4 sm:$0xff]   ;;  %v4738_v20 = vld [vmem:[%s6825_s5 + $0x210] ss:$12 sps:$4 sm:$0xff]   ;;  %v4755_v22 = vld [vmem:[%s6827_s7 + $0x48] ss:$12 sps:$4 sm:$0xff]  }
  0x2a   : > { %v4757_v19 = vld [vmem:[%s6827_s7 + $0x4c] ss:$12 sps:$4 sm:$0xff]   ;;  %v4742_v24 = vld [vmem:[%s6825_s5 + $0x228] ss:$12 sps:$4 sm:$0xff]   ;;  %v4806_v40 = vld [vmem:[%s6827_s7 + $0x110] ss:$12 sps:$4 sm:$0xff]  }
  0x2b   : > { %4236 = vmatpush3.bf16.msra.mxu1 %v4708_v34  ;;  %v4758_v25 = vld [vmem:[%s6827_s7 + $0x60] ss:$12 sps:$4 sm:$0xff]   ;;  %v4791_v27 = vld [vmem:[%s6827_s7 + $0xc8] ss:$12 sps:$4 sm:$0xff]   ;;  %s5063_s19 = smov 80   ;;  %s5064_s17 = smov 96  }
  0x2c   : > { %1199 = vmatpush1.bf16.msra.mxu0 %v4673_v23  ;;  %4237 = vmatprep.subr.bf16.mxu1 %v4712_v35  ;;  %v4760_v23 = vld [vmem:[%s6827_s7 + $0x64] ss:$12 sps:$4 sm:$0xff]   ;;  %v4766_v30 = vld [vmem:[%s6827_s7 + $0x94] ss:$12 sps:$4 sm:$0xff]   ;;  %v4795_v4 = vld [vmem:[%s6827_s7 + $0x16c] ss:$12 sps:$4 sm:$0xff]  }
  0x2d   : > { %1200 = vmatprep.subr.bf16.mxu0 %v4674_v26  ;;  %v4763_v26 = vld [vmem:[%s6827_s7 + $0x7c] ss:$12 sps:$4 sm:$0xff]   ;;  %v4796_v31 = vld [vmem:[%s6827_s7 + $0xe0] ss:$12 sps:$4 sm:$0xff]   ;;  %v4801_v35 = vld [vmem:[%s6827_s7 + $0xf8] ss:$12 sps:$4 sm:$0xff]  }
  0x2e   : > { %v4797_v34 = vld [vmem:[%s6827_s7 + $0x20] ss:$12 sps:$4 sm:$0xff]   ;;  %v4767_v36 = vld [vmem:[%s6827_s7 + $0xa8] ss:$12 sps:$4 sm:$0xff]   ;;  %s5066_s29 = smov 48   ;;  %vm3616_vm15 = vcmask 519168  }
  0x2f   : > { %4238 = vmatpush3.bf16.msra.mxu1 %v4713_v38  ;;  %v4802_v38 = vld [vmem:[%s6827_s7 + $0x38] ss:$12 sps:$4 sm:$0xff]  }
  0x30   : > { %1201 = vmatpush1.bf16.msra.mxu0 %v4676_v28  ;;  %4440 = vmatprep.subr.bf16.mxu1 %v6837_v46  ;;  %v4761_v28 = vld [vmem:[%s6827_s7 + $0x78] ss:$12 sps:$4 sm:$0xff]  }
  0x31   : > { %1202 = vmatprep.subr.bf16.mxu0 %v4679_v29  ;;  %v4792_v29 = vld [vmem:[%s6827_s7 + $0x8] ss:$12 sps:$4 sm:$0xff]  }
  0x32   : > { %1299 = vmatmul.mubr.bf16.vlgmr.msra.gmra.mrb[0].mxu1 %v5298_v42 }
  0x33   : > { %4441 = vmatpush3.bf16.msra.mxu1 %v4717_v44  ;;  %4456 = vmatprep.mubr.msk.bf16.mxu1 %vm5060_vm0, %v6837_v46  ;;  %v4807_v44 = vld [vmem:[%s6827_s7 + $0x50] ss:$12 sps:$4 sm:$0xff]  }
  0x34   : > { %1203 = vmatpush1.bf16.msra.mxu0 %v4681_v32  ;;  %4442 = vmatprep.subr.bf16.mxu1 %v6837_v46  ;;  %v4764_v32 = vld [vmem:[%s6827_s7 + $0x90] ss:$12 sps:$4 sm:$0xff]  }
  0x35   : > { %1204 = vmatprep.subr.bf16.mxu0 %v4684_v33  ;;  %v4769_v33 = vld [vmem:[%s6827_s7 + $0xac] ss:$12 sps:$4 sm:$0xff]  }
  0x37   : > { %4443 = vmatpush3.bf16.msra.mxu1 %v4721_v48  ;;  %v4778_v48 = vld [vmem:[%s6827_s7 + $0xf4] ss:$12 sps:$4 sm:$0xff]  }
  0x38   : > { %1205 = vmatpush1.bf16.msra.mxu0 %v4686_v37  ;;  %4444 = vmatprep.subr.bf16.mxu1 %v6837_v46  ;;  %v4772_v37 = vld [vmem:[%s6827_s7 + $0xc4] ss:$12 sps:$4 sm:$0xff]  }
  0x39   : > { %1206 = vmatprep.subr.bf16.mxu0 %v4689_v41  ;;  %v4770_v41 = vld [vmem:[%s6827_s7 + $0xc0] ss:$12 sps:$4 sm:$0xff]  }
  0x3b   : > { %4445 = vmatpush3.bf16.msra.mxu1 %v4725_v51  ;;  %v4776_v51 = vld [vmem:[%s6827_s7 + $0xf0] ss:$12 sps:$4 sm:$0xff]  }
  0x3c   : > { %1207 = vmatpush1.bf16.msra.mxu0 %v4691_v43  ;;  %4446 = vmatprep.subr.bf16.mxu1 %v6837_v46  ;;  %v4775_v43 = vld [vmem:[%s6827_s7 + $0xdc] ss:$12 sps:$4 sm:$0xff]  }
  0x3d   : > { %1208 = vmatprep.subr.bf16.mxu0 %v4694_v45  ;;  %v4811_v45 = vld [vmem:[%s6827_s7 + $0x128] ss:$12 sps:$4 sm:$0xff]  }
  0x3f   : > { %4447 = vmatpush3.bf16.msra.mxu1 %v4729_v54  ;;  %v4821_v54 = vld [vmem:[%s6827_s7 + $0x158] ss:$12 sps:$4 sm:$0xff]  }
  0x40   : > { %1209 = vmatpush1.bf16.msra.mxu0 %v4696_v47  ;;  %4448 = vmatprep.subr.bf16.mxu1 %v6837_v46  ;;  %v4773_v47 = vld [vmem:[%s6827_s7 + $0xd8] ss:$12 sps:$4 sm:$0xff]  }
  0x41   : > { %1210 = vmatprep.subr.bf16.mxu0 %v4699_v49  ;;  %v4812_v49 = vld [vmem:[%s6827_s7 + $0x68] ss:$12 sps:$4 sm:$0xff]  }
  0x43   : > { %4449 = vmatpush3.bf16.msra.mxu1 %v4733_v57  ;;  %v4822_v57 = vld [vmem:[%s6827_s7 + $0x98] ss:$12 sps:$4 sm:$0xff]  }
  0x44   : > { %1211 = vmatpush1.bf16.msra.mxu0 %v4701_v50  ;;  %4450 = vmatprep.subr.bf16.mxu1 %v6837_v46  ;;  %v4816_v50 = vld [vmem:[%s6827_s7 + $0x140] ss:$12 sps:$4 sm:$0xff]  }
  0x45   : > { %1212 = vmatprep.subr.bf16.mxu0 %v4704_v52  ;;  %v4781_v52 = vld [vmem:[%s6827_s7 + $0x10c] ss:$12 sps:$4 sm:$0xff]  }
  0x47   : > { %4451 = vmatpush3.bf16.msra.mxu1 %v4737_v60  ;;  %v4827_v60 = vld [vmem:[%s6827_s7 + $0xb0] ss:$12 sps:$4 sm:$0xff]  }
  0x48   : > { %1213 = vmatpush1.bf16.msra.mxu0 %v4706_v53  ;;  %4452 = vmatprep.subr.bf16.mxu1 %v6837_v46  ;;  %v4817_v53 = vld [vmem:[%s6827_s7 + $0x80] ss:$12 sps:$4 sm:$0xff]  }
  0x49   : > { %1214 = vmatprep.subr.bf16.mxu0 %v4709_v55  ;;  %v4779_v55 = vld [vmem:[%s6827_s7 + $0x108] ss:$12 sps:$4 sm:$0xff]  }
  0x4b   : > { %4453 = vmatpush3.bf16.msra.mxu1 %v4741_v63  ;;  %v4831_v63 = vld [vmem:[%s6827_s7 + $0x188] ss:$12 sps:$4 sm:$0xff]  }
  0x4c   : > { %1215 = vmatpush1.bf16.msra.mxu0 %v4711_v56  ;;  %4454 = vmatprep.subr.bf16.mxu1 %v6837_v46  ;;  %v4784_v56 = vld [vmem:[%s6827_s7 + $0x124] ss:$12 sps:$4 sm:$0xff]  }
  0x4d   : > { %1225 = vmatprep.subr.bf16.mxu0 %v4716_v58  ;;  %v4826_v58 = vld [vmem:[%s6827_s7 + $0x170] ss:$12 sps:$4 sm:$0xff]  }
  0x4f   : > { %1217 = vmatmul.mubr.bf16.vlgmr.msra.gmra.mrb[0].mxu0 %v5298_v42  ;;  %4455 = vmatpush3.bf16.msra.mxu1 %v4745_v3  ;;  %v4835_v3 = vld [vmem:[%s6827_s7 + $0x1a0] ss:$12 sps:$4 sm:$0xff]  }
  0x50   : > { %1226 = vmatpush1.bf16.msra.mxu0 %v4714_v59  ;;  %1257 = vmatprep.mubr.bf16.mxu0 %v6835_v1  ;;  %v4782_v59 = vld [vmem:[%s6827_s7 + $0x120] ss:$12 sps:$4 sm:$0xff]  }
  0x51   : > { %1227 = vmatprep.subr.bf16.mxu0 %v4720_v61  ;;  %1843 = vmatprep.subr.bf16.mxu1 %v4748_v6  ;;  %v4787_v61 = vld [vmem:[%s6827_s7 + $0x13c] ss:$12 sps:$4 sm:$0xff]   ;;  %v4836_v6 = vld [vmem:[%s6827_s7 + $0x1b8] ss:$12 sps:$4 sm:$0xff]  }
  0x52   : > { %4457 = vmatmul.mubr.bf16.vlgmr.msra.gmra.mrb[4].mxu1 %v5389_v7 }
  0x53   : > { %1844 = vmatpush1.bf16.msra.mxu1 %v4746_v9  ;;  %1875 = vmatprep.mubr.bf16.mxu1 %v5290_v39  ;;  %v4798_v9 = vld [vmem:[%s6827_s7 + $0x180] ss:$12 sps:$4 sm:$0xff]  }
  0x54   : > { %1228 = vmatpush1.bf16.msra.mxu0 %v4718_v62  ;;  %1845 = vmatprep.subr.bf16.mxu1 %v4751_v11  ;;  %v4785_v62 = vld [vmem:[%s6827_s7 + $0x138] ss:$12 sps:$4 sm:$0xff]   ;;  %v4837_v11 = vld [vmem:[%s6827_s7 + $0x1d0] ss:$12 sps:$4 sm:$0xff]  }
  0x55   : > { %1229 = vmatprep.subr.bf16.mxu0 %v4724_v0  ;;  %v4790_v0 = vld [vmem:[%s6827_s7 + $0x154] ss:$12 sps:$4 sm:$0xff]  }
  0x57   : > { %1846 = vmatpush1.bf16.msra.mxu1 %v4749_v14  ;;  %v4838_v14 = vld [vmem:[%s6827_s7 + $0x1e8] ss:$12 sps:$4 sm:$0xff]  }
  0x58   : > { %1230 = vmatpush1.bf16.msra.mxu0 %v4722_v2  ;;  %1847 = vmatprep.subr.bf16.mxu1 %v4754_v15  ;;  %v4788_v2 = vld [vmem:[%s6827_s7 + $0x150] ss:$12 sps:$4 sm:$0xff]  }
  0x59   : > { %1231 = vmatprep.subr.bf16.mxu0 %v4728_v5  ;;  %v4793_v5 = vld [vmem:[%s6827_s7 + $0x168] ss:$12 sps:$4 sm:$0xff]   ;;  %v4808_v15 = vld [vmem:[%s6827_s7 + $0x1b0] ss:$12 sps:$4 sm:$0xff]  }
  0x5b   : > { %1848 = vmatpush1.bf16.msra.mxu1 %v4752_v18  ;;  %v4813_v18 = vld [vmem:[%s6827_s7 + $0x1c8] ss:$12 sps:$4 sm:$0xff]  }
  0x5c   : > { %1232 = vmatpush1.bf16.msra.mxu0 %v4726_v8  ;;  %1849 = vmatprep.subr.bf16.mxu1 %v4757_v19  ;;  %v4800_v8 = vld [vmem:[%s6827_s7 + $0x184] ss:$12 sps:$4 sm:$0xff]  }
  0x5d   : > { %1233 = vmatprep.subr.bf16.mxu0 %v4732_v10  ;;  %v4805_v10 = vld [vmem:[%s6827_s7 + $0x19c] ss:$12 sps:$4 sm:$0xff]   ;;  %v4820_v19 = vld [vmem:[%s6827_s7 + $0x1e4] ss:$12 sps:$4 sm:$0xff]  }
  0x5f   : > { %1850 = vmatpush1.bf16.msra.mxu1 %v4755_v22  ;;  %v4825_v22 = vld [vmem:[%s6827_s7 + $0x1fc] ss:$12 sps:$4 sm:$0xff]  }
  0x60   : > { %1234 = vmatpush1.bf16.msra.mxu0 %v4730_v12  ;;  %1851 = vmatprep.subr.bf16.mxu1 %v4760_v23  ;;  %v4803_v12 = vld [vmem:[%s6827_s7 + $0x198] ss:$12 sps:$4 sm:$0xff]   ;;  %v4841_v23 = vld [vmem:[%s6827_s7 + $0x230] ss:$12 sps:$4 sm:$0xff]  }
  0x61   : > { %1235 = vmatprep.subr.bf16.mxu0 %v4736_v13  ;;  %v4810_v13 = vld [vmem:[%s6827_s7 + $0x1b4] ss:$12 sps:$4 sm:$0xff]  }
  0x63   : > { %1852 = vmatpush1.bf16.msra.mxu1 %v4758_v25  ;;  %v4823_v25 = vld [vmem:[%s6827_s7 + $0x1f8] ss:$12 sps:$4 sm:$0xff]  }
  0x64   : > { %1236 = vmatpush1.bf16.msra.mxu0 %v4734_v16  ;;  %1853 = vmatprep.subr.bf16.mxu1 %v4763_v26  ;;  %v4815_v16 = vld [vmem:[%s6827_s7 + $0x1cc] ss:$12 sps:$4 sm:$0xff]   ;;  %v4830_v26 = vld [vmem:[%s6827_s7 + $0x214] ss:$12 sps:$4 sm:$0xff]  }
  0x65   : > { %1237 = vmatprep.subr.bf16.mxu0 %v4740_v17  ;;  %v4839_v17 = vld [vmem:[%s6827_s7 + $0x200] ss:$12 sps:$4 sm:$0xff]  }
  0x67   : > { %1854 = vmatpush1.bf16.msra.mxu1 %v4761_v28  ;;  %v4844_v28 = vld [vmem:[%s6829_s9 + $0x48] sm:$0xff]  }
  0x68   : > { %1238 = vmatpush1.bf16.msra.mxu0 %v4738_v20  ;;  %1855 = vmatprep.subr.bf16.mxu1 %v4766_v30  ;;  %v4840_v20 = vld [vmem:[%s6827_s7 + $0x218] ss:$12 sps:$4 sm:$0xff]  }
  0x69   : > { %1239 = vmatprep.subr.bf16.mxu0 %v4744_v21  ;;  %v4818_v21 = vld [vmem:[%s6827_s7 + $0x1e0] ss:$12 sps:$4 sm:$0xff]  }
  0x6a   : > { %v4834_v30 = vld [vmem:[%s6827_s7 + $0x22c] ss:$12 sps:$4 sm:$0xff]  }
  0x6b   : > { %1856 = vmatpush1.bf16.msra.mxu1 %v4764_v32  ;;  %v4846_v32 = vld [vmem:[%s6829_s9 + $0x50] sm:$0xff]  }
  0x6c   : > { %1240 = vmatpush1.bf16.msra.mxu0 %v4742_v24  ;;  %1857 = vmatprep.subr.bf16.mxu1 %v4769_v33  ;;  %v4842_v24 = vld [vmem:[%s6829_s9 + $0x40] sm:$0xff]   ;;  %v4832_v33 = vld [vmem:[%s6827_s7 + $0x228] ss:$12 sps:$4 sm:$0xff]  }
  0x6d   : > { %4254 = vmatprep.subr.bf16.mxu0 %v4791_v27  ;;  %v4843_v27 = vld [vmem:[%s6829_s9] sm:$0xff]  }
  0x6f   : > { %1258 = vmatmul.mubr.bf16.vlgmr.msra.gmra.mrb[0].mxu0 %v5389_v7  ;;  %1858 = vmatpush1.bf16.msra.mxu1 %v4767_v36  ;;  %v4856_v36 = vld [vmem:[%s6829_s9 + $0x80] sm:$0xff]  }
  0x70   : > { %4255 = vmatpush3.bf16.msra.mxu0 %v4792_v29  ;;  %1957 = vmatprep.mubr.bf16.mxu0 %v5290_v39  ;;  %v4828_v29 = vld [vmem:[%s6827_s7 + $0x210] ss:$12 sps:$4 sm:$0xff]  }
  0x71   : > { %4256 = vmatprep.subr.bf16.mxu0 %v4796_v31  ;;  %1859 = vmatprep.subr.bf16.mxu1 %v4772_v37  ;;  %v4845_v31 = vld [vmem:[%s6829_s9 + $0x8] sm:$0xff]   ;;  %v4850_v37 = vld [vmem:[%s6829_s9 + $0x60] sm:$0xff]  }
  0x73   : > { %1860 = vmatpush1.bf16.msra.mxu1 %v4770_v41  ;;  %v4852_v41 = vld [vmem:[%s6829_s9 + $0x68] sm:$0xff]  }
  0x74   : > { %4257 = vmatpush3.bf16.msra.mxu0 %v4797_v34  ;;  %1861 = vmatprep.subr.bf16.mxu1 %v4775_v43  ;;  %v4847_v34 = vld [vmem:[%s6829_s9 + $0x10] sm:$0xff]  }
  0x75   : > { %4258 = vmatprep.subr.bf16.mxu0 %v4801_v35  ;;  %v4848_v35 = vld [vmem:[%s6829_s9 + $0x58] sm:$0xff]   ;;  %v4863_v43 = vld [vmem:[%s6829_s9 + $0x90] sm:$0xff]  }
  0x77   : > { %1862 = vmatpush1.bf16.msra.mxu1 %v4773_v47  ;;  %v4867_v47 = vld [vmem:[%s6829_s9 + $0x98] sm:$0xff]  }
  0x78   : > { %4259 = vmatpush3.bf16.msra.mxu0 %v4802_v38  ;;  %1863 = vmatprep.subr.bf16.mxu1 %v4778_v48  ;;  %v4859_v38 = vld [vmem:[%s6829_s9 + $0x88] sm:$0xff]   ;;  %v4855_v48 = vld [vmem:[%s6829_s9 + $0x30] sm:$0xff]  }
  0x79   : > { %4260 = vmatprep.subr.bf16.mxu0 %v4806_v40  ;;  %v4851_v40 = vld [vmem:[%s6829_s9 + $0x20] sm:$0xff]  }
  0x7b   : > { %1864 = vmatpush1.bf16.msra.mxu1 %v4776_v51  ;;  %v4858_v51 = vld [vmem:[%s6829_s9 + $0x38] sm:$0xff]  }
  0x7c   : > { %4261 = vmatpush3.bf16.msra.mxu0 %v4807_v44  ;;  %1865 = vmatprep.subr.bf16.mxu1 %v4781_v52  ;;  %v4853_v44 = vld [vmem:[%s6829_s9 + $0x28] sm:$0xff]   ;;  %v5724_v52 = vld [vmem:[%s6831_s11 + $0x4] ss:$12 sps:$4 sm:$0xff]  }
  0x7d   : > { %4262 = vmatprep.subr.bf16.mxu0 %v4811_v45  ;;  %v4854_v45 = vld [vmem:[%s6829_s9 + $0x70] sm:$0xff]  }
  0x7f   : > { %1866 = vmatpush1.bf16.msra.mxu1 %v4779_v55  ;;  %v5739_v55 = vld [vmem:[%s6831_s11 + $0x1c] ss:$12 sps:$4 sm:$0xff]  }
  0x80   : > { %4263 = vmatpush3.bf16.msra.mxu0 %v4812_v49  ;;  %1867 = vmatprep.subr.bf16.mxu1 %v4784_v56  ;;  %v4857_v49 = vld [vmem:[%s6829_s9 + $0x78] sm:$0xff]   ;;  %v4879_v56 = vld [vmem:[%s6829_s9 + $0xb0] sm:$0xff]  }
  0x81   : > { %4264 = vmatprep.subr.bf16.mxu0 %v4816_v50  ;;  %v4871_v50 = vld [vmem:[%s6829_s9 + $0xa0] sm:$0xff]  }
  0x83   : > { %1868 = vmatpush1.bf16.msra.mxu1 %v4782_v59  ;;  %v5765_v59 = vld [vmem:[%s6831_s11 + $0x30] ss:$12 sps:$4 sm:$0xff]  }
  0x84   : > { %4265 = vmatpush3.bf16.msra.mxu0 %v4817_v53  ;;  %1869 = vmatprep.subr.bf16.mxu1 %v4787_v61  ;;  %v4875_v53 = vld [vmem:[%s6829_s9 + $0xa8] sm:$0xff]  }
  0x85   : > { %4266 = vmatprep.subr.bf16.mxu0 %v4821_v54  ;;  %v5732_v54 = vld [vmem:[%s6831_s11] ss:$12 sps:$4 sm:$0xff]  }
  0x86   : > { %v5777_v61 = vld [vmem:[%s6831_s11 + $0x4c] ss:$12 sps:$4 sm:$0xff]  }
  0x87   : > { %1870 = vmatpush1.bf16.msra.mxu1 %v4785_v62  ;;  %v5782_v62 = vld [vmem:[%s6831_s11 + $0x8] ss:$12 sps:$4 sm:$0xff]  }
  0x88   : > { %4267 = vmatpush3.bf16.msra.mxu0 %v4822_v57  ;;  %1871 = vmatprep.subr.bf16.mxu1 %v4790_v0  ;;  %v5749_v57 = vld [vmem:[%s6831_s11 + $0x18] ss:$12 sps:$4 sm:$0xff]   ;;  %v5794_v0 = vld [vmem:[%s6831_s11 + $0xe0] ss:$12 sps:$4 sm:$0xff]  }
  0x89   : > { %4268 = vmatprep.subr.bf16.mxu0 %v4826_v58  ;;  %v4883_v58 = vld [vmem:[%s6829_s9 + $0xb8] sm:$0xff]  }
  0x8b   : > { %1872 = vmatpush1.bf16.msra.mxu1 %v4788_v2  ;;  %v5800_v2 = vld [vmem:[%s6831_s11 + $0x64] ss:$12 sps:$4 sm:$0xff]  }
  0x8c   : > { %4269 = vmatpush3.bf16.msra.mxu0 %v4827_v60  ;;  %1873 = vmatprep.subr.bf16.mxu1 %v4795_v4  ;;  %v5771_v60 = vld [vmem:[%s6831_s11 + $0xc8] ss:$12 sps:$4 sm:$0xff]   ;;  %v5813_v4 = vld [vmem:[%s6831_s11 + $0x60] ss:$12 sps:$4 sm:$0xff]  }
  0x8d   : > { %4460 = vmatprep.subr.bf16.mxu0 %v6837_v46  ;;  %6918 = vst [vmem:[#allocation2_spill] sm:$0xff] %v5771_v60 }
  0x8f   : > { %1958 = vmatmul.mubr.bf16.vlgmr.msra.gmra.mrb[4].mxu0 %v5298_v42  ;;  %1874 = vmatpush1.bf16.msra.mxu1 %v4793_v5  ;;  %v5825_v5 = vld [vmem:[%s6831_s11 + $0x7c] ss:$12 sps:$4 sm:$0xff]  }
  0x90   : > { %4461 = vmatpush3.bf16.msra.mxu0 %v4831_v63  ;;  %4476 = vmatprep.mubr.msk.bf16.mxu0 %vm5060_vm0, %v6837_v46  ;;  %v5788_v63 = vld [vmem:[%s6831_s11 + $0x48] ss:$12 sps:$4 sm:$0xff]  }
  0x91   : > { %4462 = vmatprep.subr.bf16.mxu0 %v6837_v46  ;;  %1884 = vmatprep.subr.bf16.mxu1 %v4800_v8  ;;  %v5837_v8 = vld [vmem:[%s6831_s11 + $0x78] ss:$12 sps:$4 sm:$0xff]  }
  0x92   : > { %1876 = vmatmul.mubr.bf16.vlgmr.msra.gmra.mrb[8].mxu1 %v5298_v42 }
  0x93   : > { %1885 = vmatpush1.bf16.msra.mxu1 %v4798_v9  ;;  %1916 = vmatprep.mubr.bf16.mxu1 %v6835_v1  ;;  %v5843_v9 = vld [vmem:[%s6831_s11 + $0x110] ss:$12 sps:$4 sm:$0xff]  }
  0x94   : > { %4463 = vmatpush3.bf16.msra.mxu0 %v4835_v3  ;;  %1886 = vmatprep.subr.bf16.mxu1 %v4805_v10  ;;  %v5807_v3 = vld [vmem:[%s6831_s11 + $0x20] ss:$12 sps:$4 sm:$0xff]  }
  0x95   : > { %4464 = vmatprep.subr.bf16.mxu0 %v6837_v46  ;;  %v5849_v10 = vld [vmem:[%s6831_s11 + $0x94] ss:$12 sps:$4 sm:$0xff]  }
  0x97   : > { %1887 = vmatpush1.bf16.msra.mxu1 %v4803_v12  ;;  %v5861_v12 = vld [vmem:[%s6831_s11 + $0x90] ss:$12 sps:$4 sm:$0xff]  }
  0x98   : > { %4465 = vmatpush3.bf16.msra.mxu0 %v4836_v6  ;;  %1888 = vmatprep.subr.bf16.mxu1 %v4810_v13  ;;  %v5831_v6 = vld [vmem:[%s6831_s11 + $0x38] ss:$12 sps:$4 sm:$0xff]   ;;  %v5867_v13 = vld [vmem:[%s6831_s11 + $0x128] ss:$12 sps:$4 sm:$0xff]  }
  0x99   : > { %4466 = vmatprep.subr.bf16.mxu0 %v6837_v46 }
  0x9b   : > { %1889 = vmatpush1.bf16.msra.mxu1 %v4808_v15  ;;  %v5879_v15 = vld [vmem:[%s6831_s11 + $0x68] ss:$12 sps:$4 sm:$0xff]  }
  0x9c   : > { %4467 = vmatpush3.bf16.msra.mxu0 %v4837_v11  ;;  %1890 = vmatprep.subr.bf16.mxu1 %v4815_v16  ;;  %v5855_v11 = vld [vmem:[%s6831_s11 + $0x50] ss:$12 sps:$4 sm:$0xff]   ;;  %v5885_v16 = vld [vmem:[%s6831_s11 + $0xa8] ss:$12 sps:$4 sm:$0xff]  }
  0x9d   : > { %4468 = vmatprep.subr.bf16.mxu0 %v6837_v46 }
  0x9f   : > { %1891 = vmatpush1.bf16.msra.mxu1 %v4813_v18  ;;  %v5897_v18 = vld [vmem:[%s6831_s11 + $0xc4] ss:$12 sps:$4 sm:$0xff]  }
  0xa0   : > { %4469 = vmatpush3.bf16.msra.mxu0 %v4838_v14  ;;  %1892 = vmatprep.subr.bf16.mxu1 %v4820_v19  ;;  %v5873_v14 = vld [vmem:[%s6831_s11 + $0xac] ss:$12 sps:$4 sm:$0xff]  }
  0xa1   : > { %4470 = vmatprep.subr.bf16.mxu0 %v6837_v46  ;;  %v5903_v19 = vld [vmem:[%s6831_s11 + $0x80] ss:$12 sps:$4 sm:$0xff]  }
  0xa2   : > { %6919 = vst [vmem:[#allocation3_spill] sm:$0xff] %v5903_v19 }
  0xa3   : > { %1893 = vmatpush1.bf16.msra.mxu1 %v4818_v21  ;;  %v5915_v21 = vld [vmem:[%s6831_s11 + $0x158] ss:$12 sps:$4 sm:$0xff]  }
  0xa4   : > { %4471 = vmatpush3.bf16.msra.mxu0 %v4839_v17  ;;  %1894 = vmatprep.subr.bf16.mxu1 %v4825_v22  ;;  %v5891_v17 = vld [vmem:[%s6831_s11 + $0x140] ss:$12 sps:$4 sm:$0xff]   ;;  %6920 = vst [vmem:[#allocation4_spill] sm:$0xff] %v5915_v21  ;;  %v5921_v22 = vld [vmem:[%s6831_s11 + $0xdc] ss:$12 sps:$4 sm:$0xff]  }
  0xa5   : > { %4472 = vmatprep.subr.bf16.mxu0 %v6837_v46 }
  0xa7   : > { %1895 = vmatpush1.bf16.msra.mxu1 %v4823_v25  ;;  %v5939_v25 = vld [vmem:[%s6831_s11 + $0x170] ss:$12 sps:$4 sm:$0xff]  }
  0xa8   : > { %4473 = vmatpush3.bf16.msra.mxu0 %v4840_v20  ;;  %1896 = vmatprep.subr.bf16.mxu1 %v4830_v26  ;;  %v5909_v20 = vld [vmem:[%s6831_s11 + $0xc0] ss:$12 sps:$4 sm:$0xff]  }
  0xa9   : > { %4474 = vmatprep.subr.bf16.mxu0 %v6837_v46  ;;  %v5945_v26 = vld [vmem:[%s6831_s11 + $0xf4] ss:$12 sps:$4 sm:$0xff]  }
  0xab   : > { %1897 = vmatpush1.bf16.msra.mxu1 %v4828_v29  ;;  %v5964_v29 = vld [vmem:[%s6831_s11 + $0x10c] ss:$12 sps:$4 sm:$0xff]  }
  0xac   : > { %4475 = vmatpush3.bf16.msra.mxu0 %v4841_v23  ;;  %1898 = vmatprep.subr.bf16.mxu1 %v4834_v30  ;;  %v5927_v23 = vld [vmem:[%s6831_s11 + $0x98] ss:$12 sps:$4 sm:$0xff]   ;;  %v5971_v30 = vld [vmem:[%s6831_s11 + $0x108] ss:$12 sps:$4 sm:$0xff]  }
  0xad   : > { %4285 = vmatprep.subr.bf16.mxu0 %v4842_v24  ;;  %v5933_v24 = vld [vmem:[%s6831_s11 + $0xd8] ss:$12 sps:$4 sm:$0xff]  }
  0xaf   : > { %4477 = vmatmul.mubr.bf16.vlgmr.msra.gmra.mrb[8].mxu0 %v5389_v7  ;;  %1899 = vmatpush1.bf16.msra.mxu1 %v4832_v33  ;;  %v5990_v33 = vld [vmem:[%s6831_s11 + $0x13c] ss:$12 sps:$4 sm:$0xff]  }
  0xb0   : > { %4286 = vmatpush3.bf16.msra.mxu0 %v4843_v27  ;;  %2236 = vmatprep.mubr.bf16.mxu0 %v5290_v39  ;;  %v4849_v39 = vld [vmem:[%s6829_s9 + $0x18] sm:$0xff]   ;;  %6922 = vst [vmem:[#allocation6_spill] sm:$0xff] %v5990_v33 }
  0xb1   : > { %4287 = vmatprep.subr.bf16.mxu0 %v4844_v28  ;;  %4480 = vmatprep.subr.bf16.mxu1 %v6837_v46  ;;  %v5951_v27 = vld [vmem:[%s6831_s11 + $0xb0] ss:$12 sps:$4 sm:$0xff]  }
  0xb2   : > { %1917 = vmatmul.mubr.bf16.vlgmr.msra.gmra.mrb[8].mxu1 %v5389_v7  ;;  %v5957_v28 = vld [vmem:[%s6831_s11 + $0xf0] ss:$12 sps:$4 sm:$0xff]  }
  0xb3   : > { %4481 = vmatpush3.bf16.msra.mxu1 %v4856_v36  ;;  %4496 = vmatprep.mubr.msk.bf16.mxu1 %vm5060_vm0, %v6837_v46  ;;  %v6008_v36 = vld [vmem:[%s6831_s11 + $0x150] ss:$12 sps:$4 sm:$0xff]  }
  0xb4   : > { %4288 = vmatpush3.bf16.msra.mxu0 %v4845_v31  ;;  %4482 = vmatprep.subr.bf16.mxu1 %v6837_v46  ;;  %v5978_v31 = vld [vmem:[%s6831_s11 + $0x124] ss:$12 sps:$4 sm:$0xff]   ;;  %6925 = vst [vmem:[#allocation9_spill] sm:$0xff] %v6008_v36 }
  0xb5   : > { %4289 = vmatprep.subr.bf16.mxu0 %v4846_v32  ;;  %v5984_v32 = vld [vmem:[%s6831_s11 + $0x120] ss:$12 sps:$4 sm:$0xff]  }
  0xb6   : > { %6921 = vst [vmem:[#allocation5_spill] sm:$0xff] %v5984_v32 }
  0xb7   : > { %4483 = vmatpush3.bf16.msra.mxu1 %v4859_v38  ;;  %v6026_v38 = vld [vmem:[%s6831_s11 + $0x184] ss:$12 sps:$4 sm:$0xff]  }
  0xb8   : > { %4290 = vmatpush3.bf16.msra.mxu0 %v4847_v34  ;;  %4484 = vmatprep.subr.bf16.mxu1 %v6837_v46  ;;  %v5996_v34 = vld [vmem:[%s6831_s11 + $0x138] ss:$12 sps:$4 sm:$0xff]   ;;  %6928 = vst [vmem:[#allocation12_spill] sm:$0xff] %v6026_v38 }
  0xb9   : > { %4291 = vmatprep.subr.bf16.mxu0 %v4848_v35  ;;  %6923 = vst [vmem:[#allocation7_spill] sm:$0xff] %v5996_v34  ;;  %v6002_v35 = vld [vmem:[%s6831_s11 + $0x154] ss:$12 sps:$4 sm:$0xff]  }
  0xba   : > { %6924 = vst [vmem:[#allocation8_spill] sm:$0xff] %v6002_v35 }
  0xbb   : > { %4485 = vmatpush3.bf16.msra.mxu1 %v4863_v43 }
  0xbc   : > { %4292 = vmatpush3.bf16.msra.mxu0 %v4849_v39  ;;  %4486 = vmatprep.subr.bf16.mxu1 %v6837_v46  ;;  %v6014_v39 = vld [vmem:[%s6831_s11 + $0x16c] ss:$12 sps:$4 sm:$0xff]  }
  0xbd   : > { %4293 = vmatprep.subr.bf16.mxu0 %v4850_v37  ;;  %6926 = vst [vmem:[#allocation10_spill] sm:$0xff] %v6014_v39  ;;  %v6020_v37 = vld [vmem:[%s6831_s11 + $0x168] ss:$12 sps:$4 sm:$0xff]  }
  0xbe   : > { %6927 = vst [vmem:[#allocation11_spill] sm:$0xff] %v6020_v37 }
  0xbf   : > { %4487 = vmatpush3.bf16.msra.mxu1 %v4867_v47  ;;  %v785_v47 = vlaneseq }
  0xc0   : > { %4294 = vmatpush3.bf16.msra.mxu0 %v4851_v40  ;;  %4488 = vmatprep.subr.bf16.mxu1 %v6837_v46 }
  0xc1   : > { %4295 = vmatprep.subr.bf16.mxu0 %v4852_v41 }
  0xc3   : > { %4489 = vmatpush3.bf16.msra.mxu1 %v4871_v50  ;;  %v783_v50 = vld [vmem:[%s6826_s6] sm:$0x7] }
  0xc4   : > { %4296 = vmatpush3.bf16.msra.mxu0 %v4853_v44  ;;  %4490 = vmatprep.subr.bf16.mxu1 %v6837_v46 }
  0xc5   : > { %4297 = vmatprep.subr.bf16.mxu0 %v4854_v45 }
  0xc7   : > { %4491 = vmatpush3.bf16.msra.mxu1 %v4875_v53 }
  0xc8   : > { %4298 = vmatpush3.bf16.msra.mxu0 %v4855_v48  ;;  %4492 = vmatprep.subr.bf16.mxu1 %v6837_v46  ;;  %v6030_v48 = vshrl.u32 %v785_v47, 7 }
  0xc9   : > { %4299 = vmatprep.subr.bf16.mxu0 %v4857_v49 }
  0xca   : > { %v6839_v49 = vsub.s32 2, %v6030_v48 }
  0xcb   : > { %4493 = vmatpush3.bf16.msra.mxu1 %v4879_v56 }
  0xcc   : > { %4300 = vmatpush3.bf16.msra.mxu0 %v4858_v51  ;;  %4494 = vmatprep.subr.bf16.mxu1 %v6837_v46  ;;  %v796_v51 = vrot.slane %v783_v50, %v6839_v49 }
  0xcd   : > { %2816 = vmatprep.subr.bf16.mxu0 %v5724_v52 }
  0xcf   : > { %2237 = vmatmul.mubr.bf16.vlgmr.msra.gmra.mrb[12].mxu0 %v5298_v42  ;;  %v5756_v42 = vld [vmem:[%s6831_s11 + $0x34] ss:$12 sps:$4 sm:$0xff]   ;;  %4495 = vmatpush3.bf16.msra.mxu1 %v4883_v58 }
  0xd0   : > { %2817 = vmatpush1.bf16.msra.mxu0 %v5732_v54  ;;  %4316 = vmatprep.subr.bf16.mxu1 %v5771_v60 }
  0xd1   : > { %2818 = vmatprep.subr.bf16.mxu0 %v5739_v55 }
  0xd2   : > { %4497 = vmatmul.mubr.bf16.vlgmr.msra.gmra.mrb[12].mxu1 %v5389_v7  ;;  %v5819_v7 = vld [vmem:[%s6831_s11 + $0xf8] ss:$12 sps:$4 sm:$0xff]  }
  0xd3   : > { %4317 = vmatpush3.bf16.msra.mxu1 %v5782_v62 }
  0xd4   : > { %2819 = vmatpush1.bf16.msra.mxu0 %v5749_v57  ;;  %4318 = vmatprep.subr.bf16.mxu1 %v5794_v0 }
  0xd5   : > { %2820 = vmatprep.subr.bf16.mxu0 %v5756_v42 }
  0xd7   : > { %4319 = vmatpush3.bf16.msra.mxu1 %v5807_v3 }
  0xd8   : > { %2821 = vmatpush1.bf16.msra.mxu0 %v5765_v59  ;;  %4320 = vmatprep.subr.bf16.mxu1 %v5819_v7 }
  0xd9   : > { %2822 = vmatprep.subr.bf16.mxu0 %v5777_v61 }
  0xdb   : > { %4321 = vmatpush3.bf16.msra.mxu1 %v5831_v6 }
  0xdc   : > { %2823 = vmatpush1.bf16.msra.mxu0 %v5788_v63  ;;  %4322 = vmatprep.subr.bf16.mxu1 %v5843_v9 }
  0xdd   : > { %2824 = vmatprep.subr.bf16.mxu0 %v5800_v2 }
  0xdf   : > { %4323 = vmatpush3.bf16.msra.mxu1 %v5855_v11 }
  0xe0   : > { %2825 = vmatpush1.bf16.msra.mxu0 %v5813_v4  ;;  %4324 = vmatprep.subr.bf16.mxu1 %v5867_v13 }
  0xe1   : > { %2826 = vmatprep.subr.bf16.mxu0 %v5825_v5 }
  0xe3   : > { %4325 = vmatpush3.bf16.msra.mxu1 %v5879_v15 }
  0xe4   : > { %2827 = vmatpush1.bf16.msra.mxu0 %v5837_v8  ;;  %4326 = vmatprep.subr.bf16.mxu1 %v5891_v17 }
  0xe5   : > { %2828 = vmatprep.subr.bf16.mxu0 %v5849_v10 }
  0xe7   : > { %4327 = vmatpush3.bf16.msra.mxu1 %v5903_v19 }
  0xe8   : > { %2829 = vmatpush1.bf16.msra.mxu0 %v5861_v12  ;;  %4328 = vmatprep.subr.bf16.mxu1 %v5915_v21 }
  0xe9   : > { %2830 = vmatprep.subr.bf16.mxu0 %v5873_v14 }
  0xeb   : > { %4329 = vmatpush3.bf16.msra.mxu1 %v5927_v23 }
  0xec   : > { %2831 = vmatpush1.bf16.msra.mxu0 %v5885_v16  ;;  %4330 = vmatprep.subr.bf16.mxu1 %v5939_v25 }
  0xed   : > { %2832 = vmatprep.subr.bf16.mxu0 %v5897_v18 }
  0xef   : > { %4331 = vmatpush3.bf16.msra.mxu1 %v5951_v27 }
  0xf0   : > { %2833 = vmatpush1.bf16.msra.mxu0 %v5909_v20  ;;  %4500 = vmatprep.subr.bf16.mxu1 %v6837_v46 }
  0xf1   : > { %2834 = vmatprep.subr.bf16.mxu0 %v5921_v22 }
  0xf4   : > { %2835 = vmatpush1.bf16.msra.mxu0 %v5933_v24 }
  0xf5   : > { %2836 = vmatprep.subr.bf16.mxu0 %v5945_v26 }
  0xf8   : > { %2837 = vmatpush1.bf16.msra.mxu0 %v5957_v28 }
  0xf9   : > { %2838 = vmatprep.subr.bf16.mxu0 %v5964_v29 }
  0xfc   : > { %2839 = vmatpush1.bf16.msra.mxu0 %v5971_v30 }
  0xfd   : > { %2840 = vmatprep.subr.bf16.mxu0 %v5978_v31 }
 0x100   : > { %2841 = vmatpush1.bf16.msra.mxu0 %v5984_v32 }
 0x101   : > { %2842 = vmatprep.subr.bf16.mxu0 %v5990_v33 }
 0x104   : > { %2843 = vmatpush1.bf16.msra.mxu0 %v5996_v34  ;;  %v6939_v34 = vmov 0  }
 0x105   : > { %2844 = vmatprep.subr.bf16.mxu0 %v6002_v35  ;;  %v4239_v40 = vpop.f32.mrb[0].mxu1 }
 0x106   : > { %v4240_v41 = vpop.f32.mrb[1].mxu1 }
 0x107   : > { %v4241_v43 = vadd.f32 %v4240_v41, %v4239_v40  ;;  %v4242_v44 = vpop.f32.mrb[2].mxu1 }
 0x108   : > { %2845 = vmatpush1.bf16.msra.mxu0 %v6008_v36  ;;  %v4243_v45 = vpop.f32.mrb[3].mxu1  ;;  %v6846_v44 = vsub.s32 0, %v6030_v48 }
 0x109   : > { %2846 = vmatprep.subr.bf16.mxu0 %v6014_v39  ;;  %v1301_v53 = vadd.f32 %v4241_v43, %v796_v51  ;;  %v6847_v45 = vsub.s32 1, %v6030_v48  ;;  %v2386_v43 = vld [vmem:[%s636_s20 + $0x8] sm:$0xf]  ;;  %v6929_v39 = vmov 0.0  }
 0x10c   : > { %2847 = vmatpush1.bf16.msra.mxu0 %v6020_v37 }
 0x10d   : > { %2857 = vmatprep.subr.bf16.mxu0 %v6026_v38 }
 0x125   : > { %v1340_v56 = vpop.f32.mrb[4].mxu1 }
 0x126   : > { %v1341_v58 = vadd.f32 %v1340_v56, %v1301_v53  ;;  %v4458_v1 = vpop.f32.mrb[5].mxu1  ;;  %v2389_v56 = vunpack.c.l.bf16 %v2386_v43 }
 0x127   : > { %v1343_v46 = vpop.f32.mrb[6].mxu1  ;;  %v792_v1 = vrot.slane %v783_v50, %v6847_v45 }
 0x128   : > { %4962 = vtanh.f32 %v1341_v58  ;;  %v4459_v40 = vpop.f32.mrb[7].mxu1  ;;  %v788_v46 = vrot.slane %v783_v50, %v6846_v44 }
 0x132   : > { %v4963_v41 = vpop.eup %4962 }
 0x133   : > { %v2395_v47 = vmul.f32 0.5, %v4963_v41 }
 0x135   : > { %v6047_v51 = vadd.f32 0.5, %v2395_v47 }
 0x137   : > { %v2401_v53 = vmax.f32 %v6047_v51, 0.0 }
 0x139   : > { %v6054_v40 = vmin.f32 %v2401_v53, 1.0  ;;  %v2380_v53 = vld [vmem:[%s6066_s22] sm:$0xff] }
 0x13a   : > { %v2383_v45 = vunpack.c.h.bf16 %v2380_v53 }
 0x13b   : > { %vm2416_vm1 = vcmp.lt.f32.partialorder %v2389_v56, %v6054_v40 }
 0x13c   : > { %v6058_v44 = vsel %vm2416_vm1, 1.0, %v6929_v39 }
 0x13d   : > { %6930 = vst [vmem:[#allocation13_spill] sm:$0xff] %v6058_v44 }
 0x142   : > { %v1259_v58 = vpop.f32.mrb[0].mxu0 }
 0x143   : > { %v4580_v49 = vadd.f32 %v1259_v58, %v788_v46  ;;  %v1261_v38 = vpop.f32.mrb[1].mxu0 }
 0x144   : > { %v4581_v37 = vadd.f32 %v1261_v38, %v792_v1  ;;  %v1263_v41 = vpop.f32.mrb[2].mxu0 }
 0x145   : > { %4964 = vtanh.f32 %v4580_v49  ;;  %v1264_v47 = vpop.f32.mrb[3].mxu0  ;;  %v6069_v49 = vld [vmem:[%s636_s20] sm:$0xff]  ;;  %v2382_v41 = vunpack.c.l.bf16 %v2380_v53  ;;  %s6297_s20 = scalar_lea.vmem %s6823_s3, %s6039_s18 }
 0x146   : > { %4966 = vtanh.f32 %v4581_v37  ;;  %v2387_v47 = vunpack.c.l.bf16 %v6069_v49 }
 0x14f   : > { %v4965_v43 = vpop.eup %4964 }
 0x150   : > { %v4967_v38 = vpop.eup %4966  ;;  %v2393_v46 = vmul.f32 0.5, %v4965_v43 }
 0x151   : > { %v2394_v1 = vmul.f32 0.5, %v4967_v38 }
 0x152   : > { %v6071_v56 = vadd.f32 0.5, %v2393_v46 }
 0x153   : > { %v6073_v58 = vadd.f32 0.5, %v2394_v1 }
 0x154   : > { %v2399_v37 = vmax.f32 %v6071_v56, 0.0 }
 0x155   : > { %v2400_v50 = vmax.f32 %v6073_v58, 0.0 }
 0x156   : > { %v2402_v44 = vmin.f32 %v2399_v37, 1.0 }
 0x157   : > { %v6078_v36 = vmin.f32 %v2400_v50, 1.0  ;;  %v6109_v50 = vld [vmem:[%s6831_s11 + $0x19c] ss:$12 sps:$4 sm:$0xff]  }
 0x158   : > { %vm2405_vm2 = vcmp.lt.f32.partialorder %v2382_v41, %v2402_v44  ;;  %vm2414_vm3 = vcmp.lt.f32.partialorder %v2387_v47, %v2402_v44  ;;  %v6099_v41 = vld [vmem:[%s6831_s11 + $0x180] ss:$12 sps:$4 sm:$0xff]   ;;  %v6104_v47 = vld [vmem:[%s6831_s11 + $0x188] ss:$12 sps:$4 sm:$0xff]   ;;  %6935 = vst [vmem:[#allocation18_spill] sm:$0xff] %v6109_v50 }
 0x159   : > { %vm2406_vm4 = vcmp.lt.f32.partialorder %v2383_v45, %v6078_v36  ;;  %v6082_v43 = vsel %vm2405_vm2, 1.0, %v6929_v39  ;;  %v6085_v38 = vsel %vm2414_vm3, 1.0, %v6929_v39  ;;  %6934 = vst [vmem:[#allocation17_spill] sm:$0xff] %v6099_v41 }
 0x15a   : > { %6931 = vst [vmem:[#allocation14_spill] sm:$0xff] %v6082_v43  ;;  %6932 = vst [vmem:[#allocation15_spill] sm:$0xff] %v6085_v38  ;;  %v6088_v46 = vsel %vm2406_vm4, 1.0, %v6929_v39  ;;  %v2423_v1 = vsub.f32 %v6071_v56, %v6082_v43 }
 0x15b   : > { %6933 = vst [vmem:[#allocation16_spill] sm:$0xff] %v6088_v46  ;;  %v2424_v44 = vsub.f32 %v6073_v58, %v6088_v46 }
 0x15c   : > { %v2426_v53 = vand.u32 2147483647, %v2423_v1  ;;  %v6114_v1 = vld [vmem:[%s6828_s8] sm:$0x7] }
 0x15d   : > { %v2427_v45 = vand.u32 2147483647, %v2424_v44 }
 0x15e   : > { %v2429_v43 = vpack.c.bf16 %v2426_v53, %v2426_v53  ;;  %v6124_v53 = vld [vmem:[%s6831_s11 + $0x198] ss:$12 sps:$4 sm:$0xff]  }
 0x15f   : > { %v2430_v37 = vpack.c.bf16 %v2427_v45, %v2427_v45  ;;  %v6936_v45 = vsub.s32 2, %v6030_v48  ;;  %6937 = vst [vmem:[#allocation19_spill] sm:$0xff] %v6124_v53 }
 0x161   : > { %2848 = vmatprep.mubr.bf16.mxu0 %v2430_v37  ;;  %2930 = vmatprep.mubr.bf16.mxu1 %v2430_v37  ;;  %v1455_v46 = vrot.slane %v6114_v1, %v6936_v45  ;;  %v6129_v37 = vld [vmem:[%s6831_s11 + $0x1a0] ss:$12 sps:$4 sm:$0xff]  }
 0x162   : > { %2849 = vmatmul.mubr.bf16.vlgmr.msra.gmra.mrb[16].mxu0 %v2429_v43  ;;  %2931 = vmatmul.mubr.bf16.vlgmr.msra.gmra.mrb[16].mxu1 %v2429_v43  ;;  %v4270_v44 = vpop.f32.mrb[4].mxu0  ;;  %v6136_v45 = vld [vmem:[%s6831_s11 + $0x1b4] ss:$12 sps:$4 sm:$0xff]  }
 0x163   : > { %2858 = vmatpush1.bf16.msra.mxu0 %v6099_v41  ;;  %4501 = vmatpush3.bf16.msra.mxu1 %v6104_v47  ;;  %v4271_v43 = vpop.f32.mrb[5].mxu0  ;;  %6938 = vst [vmem:[#allocation20_spill] sm:$0xff] %v6136_v45 }
 0x164   : > { %2859 = vmatprep.subr.bf16.mxu0 %v6109_v50  ;;  %4502 = vmatprep.subr.bf16.mxu1 %v6929_v39  ;;  %v4272_v41 = vadd.f32 %v4271_v43, %v4270_v44  ;;  %v4273_v35 = vpop.f32.mrb[6].mxu0  ;;  %v6148_v50 = vld [vmem:[%s6831_s11 + $0x1b0] ss:$12 sps:$4 sm:$0xff]  }
 0x165   : > { %2889 = vmatprep.mubr.bf16.mxu0 %v6939_v34  ;;  %4516 = vmatprep.mubr.msk.bf16.mxu1 %vm5060_vm0, %v6929_v39  ;;  %v4274_v33 = vpop.f32.mrb[7].mxu0  ;;  %6940 = vst [vmem:[#allocation21_spill] sm:$0xff] %v6148_v50  ;;  %v6153_v35 = vld [vmem:[%s6831_s11 + $0x1b8] ss:$12 sps:$4 sm:$0xff]   ;;  %v6173_v44 = vld [vmem:[%s6831_s11 + $0x1d0] ss:$12 sps:$4 sm:$0xff]  }
 0x166   : > { %v6141_v32 = vadd.f32 %v4272_v41, %v1455_v46  ;;  %6941 = vst [vmem:[#allocation22_spill] sm:$0xff] %v6153_v35  ;;  %v6160_v33 = vld [vmem:[%s6831_s11 + $0x1cc] ss:$12 sps:$4 sm:$0xff]   ;;  %v2381_v46 = vld [vmem:[%s6066_s22 + $0x8] sm:$0xf]  ;;  %6944 = vst [vmem:[#allocation25_spill] sm:$0xff] %v6173_v44 }
 0x167   : > { %2860 = vmatpush1.bf16.msra.mxu0 %v6124_v53  ;;  %4503 = vmatpush3.bf16.msra.mxu1 %v6129_v37  ;;  %6942 = vst [vmem:[#allocation23_spill] sm:$0xff] %v6160_v33  ;;  %v6168_v41 = vld [vmem:[%s6831_s11 + $0x1c8] ss:$12 sps:$4 sm:$0xff]   ;;  %v6180_v43 = vld [vmem:[%s6831_s11 + $0x1e4] ss:$12 sps:$4 sm:$0xff]   ;;  %v2388_v53 = vunpack.c.h.bf16 %v6069_v49  ;;  %s5062_s22 = smov 112  }
 0x168   : > { %2861 = vmatprep.subr.bf16.mxu0 %v6136_v45  ;;  %4504 = vmatprep.subr.bf16.mxu1 %v6929_v39  ;;  %6943 = vst [vmem:[#allocation24_spill] sm:$0xff] %v6168_v41  ;;  %6945 = vst [vmem:[#allocation26_spill] sm:$0xff] %v6180_v43  ;;  %v6187_v45 = vld [vmem:[%s6831_s11 + $0x1e0] ss:$12 sps:$4 sm:$0xff]   ;;  %v6262_v34 = vld [vmem:[%s6831_s11 + $0x230] ss:$12 sps:$4 sm:$0xff]  }
 0x169   : > { %6946 = vst [vmem:[#allocation27_spill] sm:$0xff] %v6187_v45  ;;  %v6213_v49 = vld [vmem:[%s6831_s11 + $0x200] ss:$12 sps:$4 sm:$0xff]   ;;  %vm2415_vm6 = vcmp.lt.f32.partialorder %v2388_v53, %v6078_v36  ;;  %v6234_v36 = vld [vmem:[%s6831_s11 + $0x210] ss:$12 sps:$4 sm:$0xff]  }
 0x16a   : > { %6950 = vst [vmem:[#allocation31_spill] sm:$0xff] %v6213_v49  ;;  %6954 = vst [vmem:[#allocation35_spill] sm:$0xff] %v6234_v36  ;;  %v6239_v53 = vld [vmem:[%s6831_s11 + $0x218] ss:$12 sps:$4 sm:$0xff]  }
 0x16b   : > { %2862 = vmatpush1.bf16.msra.mxu0 %v6148_v50  ;;  %4505 = vmatpush3.bf16.msra.mxu1 %v6153_v35  ;;  %v2384_v50 = vunpack.c.l.bf16 %v2381_v46  ;;  %v6200_v46 = vld [vmem:[%s6831_s11 + $0x1fc] ss:$12 sps:$4 sm:$0xff]   ;;  %6955 = vst [vmem:[#allocation36_spill] sm:$0xff] %v6239_v53 }
 0x16c   : > { %2863 = vmatprep.subr.bf16.mxu0 %v6160_v33  ;;  %4506 = vmatprep.subr.bf16.mxu1 %v6929_v39  ;;  %v6192_v33 = vld [vmem:[%s6831_s11 + $0x1e8] ss:$12 sps:$4 sm:$0xff]   ;;  %6948 = vst [vmem:[#allocation29_spill] sm:$0xff] %v6200_v46 }
 0x16d   : > { %6947 = vst [vmem:[#allocation28_spill] sm:$0xff] %v6192_v33  ;;  %vm2407_vm5 = vcmp.lt.f32.partialorder %v2384_v50, %v6054_v40  ;;  %v6221_v40 = vld [vmem:[%s6831_s11 + $0x214] ss:$12 sps:$4 sm:$0xff]  }
 0x16e   : > { %6951 = vst [vmem:[#allocation32_spill] sm:$0xff] %v6221_v40  ;;  %v6224_v50 = vsel %vm2407_vm5, 1.0, %v6929_v39 }
 0x16f   : > { %2864 = vmatpush1.bf16.msra.mxu0 %v6168_v41  ;;  %4507 = vmatpush3.bf16.msra.mxu1 %v6173_v44  ;;  %v6208_v41 = vld [vmem:[%s6831_s11 + $0x1f8] ss:$12 sps:$4 sm:$0xff]   ;;  %6952 = vst [vmem:[#allocation33_spill] sm:$0xff] %v6224_v50 }
 0x170   : > { %2865 = vmatprep.subr.bf16.mxu0 %v6180_v43  ;;  %4508 = vmatprep.subr.bf16.mxu1 %v6929_v39  ;;  %6949 = vst [vmem:[#allocation30_spill] sm:$0xff] %v6208_v41 }
 0x173   : > { %2866 = vmatpush1.bf16.msra.mxu0 %v6187_v45  ;;  %4509 = vmatpush3.bf16.msra.mxu1 %v6192_v33  ;;  %v6227_v45 = vsel %vm2415_vm6, 1.0, %v6929_v39 }
 0x174   : > { %2867 = vmatprep.subr.bf16.mxu0 %v6200_v46  ;;  %4510 = vmatprep.subr.bf16.mxu1 %v6929_v39  ;;  %6953 = vst [vmem:[#allocation34_spill] sm:$0xff] %v6227_v45  ;;  %v2425_v46 = vsub.f32 %v6047_v51, %v6224_v50  ;;  %v2979_v43 = vsub.f32 %v6073_v58, %v6227_v45 }
 0x176   : > { %v2428_v50 = vand.u32 2147483647, %v2425_v46  ;;  %v2982_v58 = vand.u32 2147483647, %v2979_v43 }
 0x177   : > { %2868 = vmatpush1.bf16.msra.mxu0 %v6208_v41  ;;  %4511 = vmatpush3.bf16.msra.mxu1 %v6213_v49  ;;  %v6246_v41 = vld [vmem:[%s6831_s11 + $0x22c] ss:$12 sps:$4 sm:$0xff]  }
 0x178   : > { %2869 = vmatprep.subr.bf16.mxu0 %v6221_v40  ;;  %4512 = vmatprep.subr.bf16.mxu1 %v6929_v39  ;;  %6956 = vst [vmem:[#allocation37_spill] sm:$0xff] %v6246_v41  ;;  %v6257_v40 = vld [vmem:[%s6831_s11 + $0x228] ss:$12 sps:$4 sm:$0xff]   ;;  %v2431_v45 = vpack.c.bf16 %v2428_v50, %v2428_v50 }
 0x17b   : > { %2870 = vmatpush1.bf16.msra.mxu0 %v6234_v36  ;;  %4513 = vmatpush3.bf16.msra.mxu1 %v6239_v53  ;;  %v2985_v36 = vpack.c.bf16 %v2982_v58, %v2982_v58 }
 0x17c   : > { %2871 = vmatprep.subr.bf16.mxu0 %v6246_v41  ;;  %4514 = vmatprep.subr.bf16.mxu1 %v6929_v39 }
 0x17f   : > { %2872 = vmatpush1.bf16.msra.mxu0 %v6257_v40  ;;  %4515 = vmatpush3.bf16.msra.mxu1 %v6262_v34 }
 0x180   : > { %2987 = vmatprep.subr.bf16.mxu1 %v5724_v52  ;;  %4347 = vmatprep.subr.bf16.mxu0 %v5771_v60 }
 0x182   : > { %2890 = vmatmul.mubr.bf16.vlgmr.msra.gmra.mrb[16].mxu0 %v2431_v45  ;;  %4517 = vmatmul.mubr.bf16.vlgmr.msra.gmra.mrb[20].mxu1 %v2431_v45  ;;  %v1999_v41 = vpop.f32.mrb[8].mxu0 }
 0x183   : > { %2988 = vmatpush1.bf16.msra.mxu1 %v5732_v54  ;;  %3019 = vmatprep.mubr.bf16.mxu1 %v2985_v36  ;;  %v2000_v43 = vadd.f32 %v1999_v41, %v6141_v32  ;;  %v4478_v46 = vpop.f32.mrb[9].mxu0  ;;  %v6957_v32 = vsub.s32 0, %v6030_v48 }
 0x184   : > { %4348 = vmatpush3.bf16.msra.mxu0 %v5782_v62  ;;  %3101 = vmatprep.mubr.bf16.mxu0 %v2985_v36  ;;  %v2002_v50 = vpop.f32.mrb[10].mxu0 }
 0x185   : > { %2989 = vmatprep.subr.bf16.mxu1 %v5739_v55  ;;  %4349 = vmatprep.subr.bf16.mxu0 %v5794_v0  ;;  %4968 = vtanh.f32 %v2000_v43  ;;  %v4479_v60 = vpop.f32.mrb[11].mxu0  ;;  %v1447_v45 = vrot.slane %v6114_v1, %v6957_v32  ;;  %v1918_v36 = vpop.f32.mrb[8].mxu1 }
 0x186   : > { %v6958_v60 = vsub.s32 1, %v6030_v48  ;;  %v1920_v43 = vpop.f32.mrb[9].mxu1 }
 0x187   : > { %2990 = vmatpush1.bf16.msra.mxu1 %v5749_v57  ;;  %v4582_v58 = vadd.f32 %v1918_v36, %v1447_v45  ;;  %v1922_v32 = vpop.f32.mrb[10].mxu1  ;;  %v3186_v45 = vld [vmem:[%s6297_s20 + $0x8] sm:$0xf] }
 0x188   : > { %4350 = vmatpush3.bf16.msra.mxu0 %v5807_v3  ;;  %2991 = vmatprep.subr.bf16.mxu1 %v5756_v42  ;;  %v1451_v41 = vrot.slane %v6114_v1, %v6958_v60  ;;  %v1923_v48 = vpop.f32.mrb[11].mxu1  ;;  %v3191_v60 = vld [vmem:[%s6303_s23 + $0x8] sm:$0xf] }
 0x189   : > { %4351 = vmatprep.subr.bf16.mxu0 %v5819_v7  ;;  %4970 = vtanh.f32 %v4582_v58  ;;  %v3189_v58 = vunpack.c.l.bf16 %v3186_v45 }
 0x18a   : > { %v4583_v50 = vadd.f32 %v1920_v43, %v1451_v41  ;;  %v3194_v43 = vunpack.c.l.bf16 %v3191_v60 }
 0x18b   : > { %2992 = vmatpush1.bf16.msra.mxu1 %v5765_v59 }
 0x18c   : > { %4352 = vmatpush3.bf16.msra.mxu0 %v5831_v6  ;;  %2993 = vmatprep.subr.bf16.mxu1 %v5777_v61  ;;  %4972 = vtanh.f32 %v4583_v50 }
 0x18d   : > { %4353 = vmatprep.subr.bf16.mxu0 %v5843_v9 }
 0x18f   : > { %2994 = vmatpush1.bf16.msra.mxu1 %v5788_v63  ;;  %v4969_v46 = vpop.eup %4968 }
 0x190   : > { %4354 = vmatpush3.bf16.msra.mxu0 %v5855_v11  ;;  %2995 = vmatprep.subr.bf16.mxu1 %v5800_v2  ;;  %v3200_v1 = vmul.f32 0.5, %v4969_v46 }
 0x191   : > { %4355 = vmatprep.subr.bf16.mxu0 %v5867_v13 }
 0x192   : > { %v6308_v41 = vadd.f32 0.5, %v3200_v1 }
 0x193   : > { %2996 = vmatpush1.bf16.msra.mxu1 %v5813_v4  ;;  %v4971_v48 = vpop.eup %4970 }
 0x194   : > { %6959 = vst [vmem:[#allocation38_spill] sm:$0xff] %v6308_v41  ;;  %4356 = vmatpush3.bf16.msra.mxu0 %v5879_v15  ;;  %2997 = vmatprep.subr.bf16.mxu1 %v5825_v5  ;;  %v3206_v36 = vmax.f32 %v6308_v41, 0.0 }
 0x195   : > { %4357 = vmatprep.subr.bf16.mxu0 %v5891_v17 }
 0x196   : > { %v3209_v46 = vmin.f32 %v3206_v36, 1.0  ;;  %v4973_v60 = vpop.eup %4972  ;;  %v3198_v36 = vmul.f32 0.5, %v4971_v48 }
 0x197   : > { %2998 = vmatpush1.bf16.msra.mxu1 %v5837_v8 }
 0x198   : > { %4358 = vmatpush3.bf16.msra.mxu0 %v5903_v19  ;;  %2999 = vmatprep.subr.bf16.mxu1 %v5849_v10  ;;  %vm3212_vm7 = vcmp.lt.f32.partialorder %v3189_v58, %v3209_v46  ;;  %vm3221_vm8 = vcmp.lt.f32.partialorder %v3194_v43, %v3209_v46  ;;  %v6962_v58 = vsub.f32 %v6071_v56, %v6085_v38  ;;  %v3199_v46 = vmul.f32 0.5, %v4973_v60 }
 0x199   : > { %4359 = vmatprep.subr.bf16.mxu0 %v5915_v21  ;;  %v6319_v50 = vsel %vm3212_vm7, 1.0, %v6929_v39  ;;  %v6322_v32 = vsel %vm3221_vm8, 1.0, %v6929_v39  ;;  %v3190_v21 = vld [vmem:[%s6303_s23] sm:$0xff]  ;;  %v6336_v19 = vadd.f32 0.5, %v3198_v36 }
 0x19a   : > { %6960 = vst [vmem:[#allocation39_spill] sm:$0xff] %v6319_v50  ;;  %6961 = vst [vmem:[#allocation40_spill] sm:$0xff] %v6322_v32  ;;  %v2981_v43 = vand.u32 2147483647, %v6962_v58  ;;  %v6339_v1 = vadd.f32 0.5, %v3199_v46  ;;  %v3192_v45 = vunpack.c.l.bf16 %v3190_v21  ;;  %v3193_v60 = vunpack.c.h.bf16 %v3190_v21 }
 0x19b   : > { %3000 = vmatpush1.bf16.msra.mxu1 %v5861_v12  ;;  %v3204_v48 = vmax.f32 %v6336_v19, 0.0 }
 0x19c   : > { %4360 = vmatpush3.bf16.msra.mxu0 %v5927_v23  ;;  %3001 = vmatprep.subr.bf16.mxu1 %v5873_v14  ;;  %6963 = vst [vmem:[#allocation41_spill] sm:$0xff] %v6339_v1  ;;  %v6344_v32 = vpack.c.bf16 %v2981_v43, %v2981_v43  ;;  %v3205_v56 = vmax.f32 %v6339_v1, 0.0 }
 0x19d   : > { %4361 = vmatprep.subr.bf16.mxu0 %v5939_v25  ;;  %v6348_v36 = vmin.f32 %v3204_v48, 1.0 }
 0x19e   : > { %v3208_v58 = vmin.f32 %v3205_v56, 1.0 }
 0x19f   : > { %3002 = vmatpush1.bf16.msra.mxu1 %v5885_v16  ;;  %vm3219_vm9 = vcmp.lt.f32.partialorder %v3192_v45, %v6348_v36 }
 0x1a0   : > { %4362 = vmatpush3.bf16.msra.mxu0 %v5951_v27  ;;  %3003 = vmatprep.subr.bf16.mxu1 %v5897_v18  ;;  %vm3220_vm10 = vcmp.lt.f32.partialorder %v3193_v60, %v3208_v58  ;;  %v6362_v50 = vsel %vm3219_vm9, 1.0, %v6929_v39 }
 0x1a1   : > { %4520 = vmatprep.subr.bf16.mxu0 %v6929_v39  ;;  %v6359_v56 = vsel %vm3220_vm10, 1.0, %v6929_v39  ;;  %6965 = vst [vmem:[#allocation43_spill] sm:$0xff] %v6362_v50 }
 0x1a2   : > { %v4301_v46 = vpop.f32.mrb[12].mxu0  ;;  %6964 = vst [vmem:[#allocation42_spill] sm:$0xff] %v6359_v56  ;;  %v6966_v56 = vld [vmem:[#allocation5_spill] sm:$0xff] }
 0x1a3   : > { %3102 = vmatmul.mubr.bf16.vlgmr.msra.gmra.mrb[20].mxu0 %v6344_v32  ;;  %3004 = vmatpush1.bf16.msra.mxu1 %v5909_v20  ;;  %v4302_v38 = vpop.f32.mrb[13].mxu0 }
 0x1a4   : > { %4521 = vmatpush3.bf16.msra.mxu0 %v6104_v47  ;;  %3005 = vmatprep.subr.bf16.mxu1 %v5921_v22  ;;  %v4303_v21 = vadd.f32 %v4302_v38, %v4301_v46  ;;  %v4304_v43 = vpop.f32.mrb[14].mxu0  ;;  %v4100_v38 = vld [vmem:[%s6830_s10] ss:$0 sm:$0xff] }
 0x1a5   : > { %4522 = vmatprep.subr.bf16.mxu0 %v6929_v39  ;;  %4536 = vmatprep.mubr.msk.bf16.mxu0 %vm5060_vm0, %v6929_v39  ;;  %v4305_v48 = vpop.f32.mrb[15].mxu0  ;;  %v6379_v46 = vld [vmem:[%s6297_s20] sm:$0xff]  ;;  %v2278_v43 = vpop.f32.mrb[12].mxu1  ;;  %s5065_s20 = smov 64  }
 0x1a6   : > { %v2239_v60 = vadd.f32 %v4303_v21, %v4100_v38  ;;  %v3188_v48 = vunpack.c.h.bf16 %v6379_v46  ;;  %v4498_v45 = vpop.f32.mrb[13].mxu1 }
 0x1a7   : > { %3006 = vmatpush1.bf16.msra.mxu1 %v5933_v24  ;;  %v2281_v21 = vpop.f32.mrb[14].mxu1 }
 0x1a8   : > { %4523 = vmatpush3.bf16.msra.mxu0 %v6129_v37  ;;  %3007 = vmatprep.subr.bf16.mxu1 %v5945_v26  ;;  %v2279_v41 = vadd.f32 %v2278_v43, %v2239_v60  ;;  %v4499_v50 = vpop.f32.mrb[15].mxu1  ;;  %vm3211_vm13 = vcmp.lt.f32.partialorder %v3188_v48, %v3208_v58  ;;  %v6967_v60 = vld [vmem:[#allocation6_spill] sm:$0xff]  ;;  %v6970_v58 = vld [vmem:[#allocation8_spill] sm:$0xff]  ;;  %v6971_v48 = vld [vmem:[#allocation9_spill] sm:$0xff] }
 0x1a9   : > { %4524 = vmatprep.subr.bf16.mxu0 %v6929_v39  ;;  %v6969_v50 = vld [vmem:[#allocation7_spill] sm:$0xff]  ;;  %v6972_v21 = vld [vmem:[#allocation10_spill] sm:$0xff] }
 0x1aa   : > { %v3603_v38 = vpack.c.bf16 %v2279_v41, %v2279_v41  ;;  %v6401_v41 = vsel %vm3211_vm13, 1.0, %v6929_v39 }
 0x1ab   : > { %3008 = vmatpush1.bf16.msra.mxu1 %v5957_v28  ;;  %6968 = vst [vmem:[#allocation5_spill] sm:$0xff] %v6401_v41  ;;  %v3229_v43 = vsub.f32 %v6339_v1, %v6401_v41  ;;  %v6976_v41 = vld [vmem:[#allocation12_spill] sm:$0xff] }
 0x1ac   : > { %4525 = vmatpush3.bf16.msra.mxu0 %v6153_v35  ;;  %3009 = vmatprep.subr.bf16.mxu1 %v5964_v29  ;;  %v3644_v45 = vsel %vm3641_vm11, %v3603_v38, 1065369472  ;;  %v6975_v35 = vld [vmem:[#allocation11_spill] sm:$0xff] }
 0x1ad   : > { %4526 = vmatprep.subr.bf16.mxu0 %v6929_v39  ;;  %3647 = vrot.lane.b32.xlu0 %v3603_v38, %s5062_s22  ;;  %3673 = vst.msk [vmem:[%s6391_s28] sm:$0xf] %vm3672_vm12, %v3644_v45  ;;  %v6973_v45 = vld [vmem:[#allocation13_spill] sm:$0xff] }
 0x1ae   : > { %3657 = vrot.lane.b32.xlu1 %v3603_v38, %s5063_s19  ;;  %s6792_s19 = scalar_lea.vmem %s6833_s13, %s5254_s27 }
 0x1af   : > { %3010 = vmatpush1.bf16.msra.mxu1 %v5971_v30 }
 0x1b0   : > { %4527 = vmatpush3.bf16.msra.mxu0 %v6173_v44  ;;  %3011 = vmatprep.subr.bf16.mxu1 %v5978_v31  ;;  %v3232_v44 = vand.u32 2147483647, %v3229_v43  ;;  %v6980_v43 = vld [vmem:[#allocation19_spill] sm:$0xff] }
 0x1b1   : > { %4528 = vmatprep.subr.bf16.mxu0 %v6929_v39  ;;  %3652 = vrot.lane.b32.xlu0 %v3603_v38, %s5064_s17 }
 0x1b2   : > { %3662 = vrot.lane.b32.xlu1 %v3603_v38, %s5065_s20 }
 0x1b3   : > { %3012 = vmatpush1.bf16.msra.mxu1 %v6966_v56 }
 0x1b4   : > { %4529 = vmatpush3.bf16.msra.mxu0 %v6192_v33  ;;  %3013 = vmatprep.subr.bf16.mxu1 %v6967_v60 }
 0x1b5   : > { %4530 = vmatprep.subr.bf16.mxu0 %v6929_v39  ;;  %3667 = vrot.lane.b32.xlu0 %v3603_v38, %s5066_s29  ;;  %v3235_v38 = vpack.c.bf16 %v3232_v44, %v3232_v44  ;;  %v6985_v44 = vld [vmem:[#allocation26_spill] sm:$0xff] }
 0x1b7   : > { %3014 = vmatpush1.bf16.msra.mxu1 %v6969_v50 }
 0x1b8   : > { %4531 = vmatpush3.bf16.msra.mxu0 %v6213_v49  ;;  %3015 = vmatprep.subr.bf16.mxu1 %v6970_v58  ;;  %v6974_v49 = vsub.f32 %v6047_v51, %v6973_v45  ;;  %v6978_v51 = vld [vmem:[#allocation18_spill] sm:$0xff] }
 0x1b9   : > { %4532 = vmatprep.subr.bf16.mxu0 %v6929_v39 }
 0x1ba   : > { %v2983_v33 = vand.u32 2147483647, %v6974_v49  ;;  %v6979_v49 = vmov 0  }
 0x1bb   : > { %3016 = vmatpush1.bf16.msra.mxu1 %v6971_v48 }
 0x1bc   : > { %4533 = vmatpush3.bf16.msra.mxu0 %v6239_v53  ;;  %3017 = vmatprep.subr.bf16.mxu1 %v6972_v21  ;;  %v2986_v1 = vpack.c.bf16 %v2983_v33, %v2983_v33  ;;  %v6977_v53 = vld [vmem:[#allocation17_spill] sm:$0xff] }
 0x1bd   : > { %4534 = vmatprep.subr.bf16.mxu0 %v6929_v39  ;;  %v6982_v33 = vld [vmem:[#allocation21_spill] sm:$0xff] }
 0x1bf   : > { %3018 = vmatpush1.bf16.msra.mxu1 %v6975_v35 }
 0x1c0   : > { %4535 = vmatpush3.bf16.msra.mxu0 %v6262_v34  ;;  %3028 = vmatprep.subr.bf16.mxu1 %v6976_v41 }
 0x1c1   : > { %3237 = vmatprep.subr.bf16.mxu0 %v5724_v52  ;;  %v6981_v52 = vld [vmem:[#allocation20_spill] sm:$0xff] }
 0x1c2   : > { %3020 = vmatmul.mubr.bf16.vlgmr.msra.gmra.mrb[24].mxu1 %v6344_v32 }
 0x1c3   : > { %4537 = vmatmul.mubr.bf16.vlgmr.msra.gmra.mrb[24].mxu0 %v2986_v1  ;;  %3029 = vmatpush1.bf16.msra.mxu1 %v6977_v53 }
 0x1c4   : > { %3238 = vmatpush1.bf16.msra.mxu0 %v5732_v54  ;;  %3030 = vmatprep.subr.bf16.mxu1 %v6978_v51  ;;  %v6983_v54 = vld [vmem:[#allocation23_spill] sm:$0xff] }
 0x1c5   : > { %3239 = vmatprep.subr.bf16.mxu0 %v5739_v55  ;;  %3269 = vmatprep.mubr.bf16.mxu0 %v3235_v38  ;;  %v6984_v55 = vld [vmem:[#allocation24_spill] sm:$0xff] }
 0x1c6   : > { %3060 = vmatprep.mubr.bf16.mxu1 %v6979_v49 }
 0x1c7   : > { %3031 = vmatpush1.bf16.msra.mxu1 %v6980_v43 }
 0x1c8   : > { %3240 = vmatpush1.bf16.msra.mxu0 %v5749_v57  ;;  %3032 = vmatprep.subr.bf16.mxu1 %v6981_v52  ;;  %v6986_v57 = vld [vmem:[#allocation27_spill] sm:$0xff] }
 0x1c9   : > { %3241 = vmatprep.subr.bf16.mxu0 %v5756_v42  ;;  %v6987_v42 = vld [vmem:[#allocation29_spill] sm:$0xff] }
 0x1cb   : > { %3033 = vmatpush1.bf16.msra.mxu1 %v6982_v33 }
 0x1cc   : > { %3242 = vmatpush1.bf16.msra.mxu0 %v5765_v59  ;;  %3034 = vmatprep.subr.bf16.mxu1 %v6983_v54  ;;  %v6988_v59 = vld [vmem:[#allocation30_spill] sm:$0xff] }
 0x1cd   : > { %3243 = vmatprep.subr.bf16.mxu0 %v5777_v61  ;;  %v6989_v61 = vld [vmem:[#allocation32_spill] sm:$0xff] }
 0x1cf   : > { %3035 = vmatpush1.bf16.msra.mxu1 %v6984_v55 }
 0x1d0   : > { %3244 = vmatpush1.bf16.msra.mxu0 %v5788_v63  ;;  %3036 = vmatprep.subr.bf16.mxu1 %v6985_v44  ;;  %v6990_v63 = vld [vmem:[#allocation35_spill] sm:$0xff] }
 0x1d1   : > { %3245 = vmatprep.subr.bf16.mxu0 %v5800_v2  ;;  %v6991_v2 = vld [vmem:[#allocation37_spill] sm:$0xff] }
 0x1d3   : > { %3037 = vmatpush1.bf16.msra.mxu1 %v6986_v57 }
 0x1d4   : > { %3246 = vmatpush1.bf16.msra.mxu0 %v5813_v4  ;;  %3038 = vmatprep.subr.bf16.mxu1 %v6987_v42  ;;  %v6992_v4 = vld [vmem:[#allocation2_spill] sm:$0xff] }
 0x1d5   : > { %3247 = vmatprep.subr.bf16.mxu0 %v5825_v5 }
 0x1d7   : > { %3039 = vmatpush1.bf16.msra.mxu1 %v6988_v59 }
 0x1d8   : > { %3248 = vmatpush1.bf16.msra.mxu0 %v5837_v8  ;;  %3040 = vmatprep.subr.bf16.mxu1 %v6989_v61 }
 0x1d9   : > { %3249 = vmatprep.subr.bf16.mxu0 %v5849_v10  ;;  %v6996_v10 = vld [vmem:[#allocation25_spill] sm:$0xff] }
 0x1db   : > { %3041 = vmatpush1.bf16.msra.mxu1 %v6990_v63 }
 0x1dc   : > { %3250 = vmatpush1.bf16.msra.mxu0 %v5861_v12  ;;  %3042 = vmatprep.subr.bf16.mxu1 %v6991_v2  ;;  %v6998_v12 = vld [vmem:[#allocation31_spill] sm:$0xff] }
 0x1dd   : > { %3251 = vmatprep.subr.bf16.mxu0 %v5873_v14  ;;  %v7000_v14 = vld [vmem:[#allocation38_spill] sm:$0xff] }
 0x1df   : > { %3043 = vmatpush1.bf16.msra.mxu1 %v6257_v40 }
 0x1e0   : > { %3252 = vmatpush1.bf16.msra.mxu0 %v5885_v16  ;;  %4378 = vmatprep.subr.bf16.mxu1 %v6992_v4  ;;  %v4998_v4 = vld [vmem:[%s6831_s11 + $0x4c] ss:$12 sps:$4 sm:$0xff]  }
 0x1e1   : > { %3253 = vmatprep.subr.bf16.mxu0 %v5897_v18  ;;  %v7003_v18 = vld [vmem:[#allocation41_spill] sm:$0xff] }
 0x1e2   : > { %3061 = vmatmul.mubr.bf16.vlgmr.msra.gmra.mrb[24].mxu1 %v2986_v1  ;;  %v4992_v1 = vld [vmem:[%s6831_s11 + $0x18] ss:$12 sps:$4 sm:$0xff]  }
 0x1e3   : > { %4379 = vmatpush3.bf16.msra.mxu1 %v5782_v62  ;;  %3351 = vmatprep.mubr.bf16.mxu1 %v3235_v38  ;;  %v3187_v62 = vunpack.c.l.bf16 %v6379_v46  ;;  %v4994_v46 = vld [vmem:[%s6831_s11 + $0x34] ss:$12 sps:$4 sm:$0xff]   ;;  %v4997_v38 = vld [vmem:[%s6831_s11 + $0x38] ss:$12 sps:$4 sm:$0xff]  }
 0x1e4   : > { %3254 = vmatpush1.bf16.msra.mxu0 %v5909_v20  ;;  %4380 = vmatprep.subr.bf16.mxu1 %v5794_v0  ;;  %v7004_v20 = vld [vmem:[#allocation42_spill] sm:$0xff] }
 0x1e5   : > { %3255 = vmatprep.subr.bf16.mxu0 %v5921_v22  ;;  %vm3210_vm14 = vcmp.lt.f32.partialorder %v3187_v62, %v6348_v36  ;;  %v7005_v22 = vsub.f32 %v7003_v18, %v7004_v20  ;;  %v5004_v18 = vld [vmem:[%s6831_s11 + $0x60] ss:$12 sps:$4 sm:$0xff]  }
 0x1e6   : > { %v6478_v0 = vsel %vm3210_vm14, 1.0, %v6929_v39 }
 0x1e7   : > { %4381 = vmatpush3.bf16.msra.mxu1 %v5807_v3  ;;  %v6993_v3 = vld [vmem:[#allocation3_spill] sm:$0xff]  ;;  %v3228_v5 = vsub.f32 %v6336_v19, %v6478_v0 }
 0x1e8   : > { %3256 = vmatpush1.bf16.msra.mxu0 %v5933_v24  ;;  %4382 = vmatprep.subr.bf16.mxu1 %v5819_v7  ;;  %v6994_v7 = vld [vmem:[#allocation4_spill] sm:$0xff] }
 0x1e9   : > { %3257 = vmatprep.subr.bf16.mxu0 %v5945_v26  ;;  %v4987_v26 = vld [vmem:[%s6831_s11 + $0xc8] ss:$12 sps:$4 sm:$0xff]  }
 0x1eb   : > { %4383 = vmatpush3.bf16.msra.mxu1 %v5831_v6  ;;  %v3231_v6 = vand.u32 2147483647, %v3228_v5 }
 0x1ec   : > { %3258 = vmatpush1.bf16.msra.mxu0 %v5957_v28  ;;  %4384 = vmatprep.subr.bf16.mxu1 %v5843_v9  ;;  %v6995_v9 = vld [vmem:[#allocation22_spill] sm:$0xff] }
 0x1ed   : > { %3259 = vmatprep.subr.bf16.mxu0 %v5964_v29  ;;  %v3234_v8 = vpack.c.bf16 %v3231_v6, %v3231_v6  ;;  %v4988_v28 = vld [vmem:[%s6831_s11] ss:$12 sps:$4 sm:$0xff]   ;;  %v4989_v29 = vld [vmem:[%s6831_s11 + $0x8] ss:$12 sps:$4 sm:$0xff]  }
 0x1ee   : > { %v5000_v6 = vld [vmem:[%s6831_s11 + $0x48] ss:$12 sps:$4 sm:$0xff]  }
 0x1ef   : > { %4385 = vmatpush3.bf16.msra.mxu1 %v5855_v11  ;;  %v6997_v11 = vld [vmem:[#allocation28_spill] sm:$0xff] }
 0x1f0   : > { %3260 = vmatpush1.bf16.msra.mxu0 %v5971_v30  ;;  %4386 = vmatprep.subr.bf16.mxu1 %v5867_v13  ;;  %v6999_v13 = vld [vmem:[#allocation36_spill] sm:$0xff]  ;;  %v4990_v30 = vld [vmem:[%s6831_s11 + $0x1c] ss:$12 sps:$4 sm:$0xff]  }
 0x1f1   : > { %3261 = vmatprep.subr.bf16.mxu0 %v5978_v31 }
 0x1f3   : > { %4387 = vmatpush3.bf16.msra.mxu1 %v5879_v15  ;;  %v7001_v15 = vld [vmem:[#allocation39_spill] sm:$0xff] }
 0x1f4   : > { %3262 = vmatpush1.bf16.msra.mxu0 %v6966_v56  ;;  %4388 = vmatprep.subr.bf16.mxu1 %v5891_v17  ;;  %v7002_v16 = vsub.f32 %v7000_v14, %v7001_v15  ;;  %v4993_v56 = vld [vmem:[%s6831_s11 + $0x20] ss:$12 sps:$4 sm:$0xff]  }
 0x1f5   : > { %3263 = vmatprep.subr.bf16.mxu0 %v6967_v60 }
 0x1f6   : > { %v3233_v17 = vand.u32 2147483647, %v7002_v16  ;;  %v5002_v16 = vld [vmem:[%s6831_s11 + $0x64] ss:$12 sps:$4 sm:$0xff]  }
 0x1f7   : > { %4389 = vmatpush3.bf16.msra.mxu1 %v6993_v3  ;;  %v4999_v3 = vld [vmem:[%s6831_s11 + $0x110] ss:$12 sps:$4 sm:$0xff]  }
 0x1f8   : > { %3264 = vmatpush1.bf16.msra.mxu0 %v6969_v50  ;;  %4390 = vmatprep.subr.bf16.mxu1 %v6994_v7  ;;  %v3236_v24 = vpack.c.bf16 %v3233_v17, %v3233_v17  ;;  %v5003_v17 = vld [vmem:[%s6831_s11 + $0x128] ss:$12 sps:$4 sm:$0xff]  }
 0x1f9   : > { %3265 = vmatprep.subr.bf16.mxu0 %v6970_v58 }
 0x1fb   : > { %4391 = vmatpush3.bf16.msra.mxu1 %v5927_v23  ;;  %v3403_v23 = vand.u32 2147483647, %v7005_v22  ;;  %v5005_v22 = vld [vmem:[%s6831_s11 + $0x68] ss:$12 sps:$4 sm:$0xff]  }
 0x1fc   : > { %3266 = vmatpush1.bf16.msra.mxu0 %v6971_v48  ;;  %4392 = vmatprep.subr.bf16.mxu1 %v5939_v25  ;;  %v4986_v25 = vld [vmem:[%s6831_s11 + $0x4] ss:$12 sps:$4 sm:$0xff]  }
 0x1fd   : > { %3267 = vmatprep.subr.bf16.mxu0 %v6972_v21  ;;  %v4996_v48 = vld [vmem:[%s6831_s11 + $0x30] ss:$12 sps:$4 sm:$0xff]  }
 0x1ff   : > { %4393 = vmatpush3.bf16.msra.mxu1 %v5951_v27  ;;  %v3406_v27 = vpack.c.bf16 %v3403_v23, %v3403_v23  ;;  %v5006_v23 = vld [vmem:[%s6831_s11 + $0x7c] ss:$12 sps:$4 sm:$0xff]  }
 0x200   : > { %3268 = vmatpush1.bf16.msra.mxu0 %v6975_v35  ;;  %4540 = vmatprep.subr.bf16.mxu1 %v6929_v39  ;;  %v4991_v35 = vld [vmem:[%s6831_s11 + $0xe0] ss:$12 sps:$4 sm:$0xff]  }
 0x201   : > { %3278 = vmatprep.subr.bf16.mxu0 %v6976_v41  ;;  %v4995_v41 = vld [vmem:[%s6831_s11 + $0xf8] ss:$12 sps:$4 sm:$0xff]  }
 0x202   : > { %3352 = vmatmul.mubr.bf16.vlgmr.msra.gmra.mrb[28].mxu1 %v3234_v8 }
 0x203   : > { %3270 = vmatmul.mubr.bf16.vlgmr.msra.gmra.mrb[28].mxu0 %v3234_v8  ;;  %4541 = vmatpush3.bf16.msra.mxu1 %v6104_v47  ;;  %v5001_v8 = vld [vmem:[%s6831_s11 + $0x50] ss:$12 sps:$4 sm:$0xff]  }
 0x204   : > { %3279 = vmatpush1.bf16.msra.mxu0 %v6977_v53  ;;  %4542 = vmatprep.subr.bf16.mxu1 %v6929_v39 }
 0x205   : > { %3280 = vmatprep.subr.bf16.mxu0 %v6978_v51  ;;  %3310 = vmatprep.mubr.bf16.mxu0 %v6979_v49 }
 0x206   : > { %4556 = vmatprep.mubr.msk.bf16.mxu1 %vm5060_vm0, %v6929_v39 }
 0x207   : > { %4543 = vmatpush3.bf16.msra.mxu1 %v6129_v37 }
 0x208   : > { %3281 = vmatpush1.bf16.msra.mxu0 %v6980_v43  ;;  %4544 = vmatprep.subr.bf16.mxu1 %v6929_v39 }
 0x209   : > { %3282 = vmatprep.subr.bf16.mxu0 %v6981_v52 }
 0x20b   : > { %4545 = vmatpush3.bf16.msra.mxu1 %v6995_v9 }
 0x20c   : > { %3283 = vmatpush1.bf16.msra.mxu0 %v6982_v33  ;;  %4546 = vmatprep.subr.bf16.mxu1 %v6929_v39 }
 0x20d   : > { %3284 = vmatprep.subr.bf16.mxu0 %v6983_v54 }
 0x20f   : > { %4547 = vmatpush3.bf16.msra.mxu1 %v6996_v10 }
 0x210   : > { %3285 = vmatpush1.bf16.msra.mxu0 %v6984_v55  ;;  %4548 = vmatprep.subr.bf16.mxu1 %v6929_v39 }
 0x211   : > { %3286 = vmatprep.subr.bf16.mxu0 %v6985_v44 }
 0x213   : > { %4549 = vmatpush3.bf16.msra.mxu1 %v6997_v11 }
 0x214   : > { %3287 = vmatpush1.bf16.msra.mxu0 %v6986_v57  ;;  %4550 = vmatprep.subr.bf16.mxu1 %v6929_v39 }
 0x215   : > { %3288 = vmatprep.subr.bf16.mxu0 %v6987_v42 }
 0x217   : > { %4551 = vmatpush3.bf16.msra.mxu1 %v6998_v12 }
 0x218   : > { %3289 = vmatpush1.bf16.msra.mxu0 %v6988_v59  ;;  %4552 = vmatprep.subr.bf16.mxu1 %v6929_v39 }
 0x219   : > { %3290 = vmatprep.subr.bf16.mxu0 %v6989_v61 }
 0x21b   : > { %4553 = vmatpush3.bf16.msra.mxu1 %v6999_v13 }
 0x21c   : > { %3291 = vmatpush1.bf16.msra.mxu0 %v6990_v63  ;;  %4554 = vmatprep.subr.bf16.mxu1 %v6929_v39 }
 0x21d   : > { %3292 = vmatprep.subr.bf16.mxu0 %v6991_v2 }
 0x21f   : > { %4555 = vmatpush3.bf16.msra.mxu1 %v6262_v34  ;;  %v3648_v31 = vpop.permute.xlu0 %3647 }
 0x220   : > { %3293 = vmatpush1.bf16.msra.mxu0 %v6257_v40  ;;  %3408 = vmatprep.subr.bf16.mxu1 %v4986_v25  ;;  %v3650_v32 = vsel %vm3641_vm11, %v3648_v31, 1065369472  ;;  %v3658_v36 = vpop.permute.xlu1 %3657  ;;  %v5007_v25 = vld [vmem:[%s6831_s11 + $0x140] ss:$12 sps:$4 sm:$0xff]  }
 0x221   : > { %4409 = vmatprep.subr.bf16.mxu0 %v4987_v26  ;;  %3674 = vst.msk [vmem:[%s6391_s28 + $0x4] sm:$0xf] %vm3672_vm12, %v3650_v32  ;;  %v3660_v60 = vsel %vm3641_vm11, %v3658_v36, 1065369472  ;;  %v5011_v32 = vld [vmem:[%s6831_s11 + $0x158] ss:$12 sps:$4 sm:$0xff]  }
 0x222   : > { %4557 = vmatmul.mubr.bf16.vlgmr.msra.gmra.mrb[32].mxu1 %v3236_v24  ;;  %3676 = vst.msk [vmem:[%s6391_s28 + $0xc] sm:$0xf] %vm3672_vm12, %v3660_v60  ;;  %v5013_v36 = vld [vmem:[%s6831_s11 + $0x98] ss:$12 sps:$4 sm:$0xff]   ;;  %v7006_v60 = vld [vmem:[#allocation43_spill] sm:$0xff] }
 0x223   : > { %3311 = vmatmul.mubr.bf16.vlgmr.msra.gmra.mrb[28].mxu0 %v3236_v24  ;;  %3409 = vmatpush1.bf16.msra.mxu1 %v4988_v28  ;;  %v3653_v50 = vpop.permute.xlu0 %3652  ;;  %v5008_v28 = vld [vmem:[%s6831_s11 + $0x78] ss:$12 sps:$4 sm:$0xff]  }
 0x224   : > { %3440 = vmatprep.mubr.bf16.mxu1 %v3406_v27  ;;  %4410 = vmatpush3.bf16.msra.mxu0 %v4989_v29  ;;  %v3655_v58 = vsel %vm3641_vm11, %v3653_v50, 1065369472  ;;  %v3663_v21 = vpop.permute.xlu1 %3662 }
 0x225   : > { %3522 = vmatprep.mubr.bf16.mxu0 %v3406_v27  ;;  %3410 = vmatprep.subr.bf16.mxu1 %v4990_v30  ;;  %3675 = vst.msk [vmem:[%s6391_s28 + $0x8] sm:$0xf] %vm3672_vm12, %v3655_v58  ;;  %v3665_v62 = vsel %vm3641_vm11, %v3663_v21, 1065369472  ;;  %v5009_v30 = vld [vmem:[%s6831_s11 + $0x80] ss:$12 sps:$4 sm:$0xff]  }
 0x226   : > { %4411 = vmatprep.subr.bf16.mxu0 %v4991_v35  ;;  %3677 = vst.msk [vmem:[%s6391_s28 + $0x10] sm:$0xf] %vm3672_vm12, %v3665_v62  ;;  %v5010_v35 = vld [vmem:[%s6831_s11 + $0x94] ss:$12 sps:$4 sm:$0xff]   ;;  %v5018_v21 = vld [vmem:[%s6831_s11 + $0xc4] ss:$12 sps:$4 sm:$0xff]  }
 0x227   : > { %3411 = vmatpush1.bf16.msra.mxu1 %v4992_v1  ;;  %v3668_v7 = vpop.permute.xlu0 %3667  ;;  %v5012_v1 = vld [vmem:[%s6831_s11 + $0x90] ss:$12 sps:$4 sm:$0xff]   ;;  %v5016_v58 = vld [vmem:[%s6831_s11 + $0xa8] ss:$12 sps:$4 sm:$0xff]   ;;  %v5021_v62 = vld [vmem:[%s6831_s11 + $0xd8] ss:$12 sps:$4 sm:$0xff]  }
 0x228   : > { %4412 = vmatpush3.bf16.msra.mxu0 %v4993_v56  ;;  %3412 = vmatprep.subr.bf16.mxu1 %v4994_v46  ;;  %v3670_v5 = vsel %vm3641_vm11, %v3668_v7, 1065369472  ;;  %v5014_v56 = vld [vmem:[%s6831_s11 + $0xac] ss:$12 sps:$4 sm:$0xff]   ;;  %v5015_v46 = vld [vmem:[%s6831_s11 + $0x170] ss:$12 sps:$4 sm:$0xff]  }
 0x229   : > { %4413 = vmatprep.subr.bf16.mxu0 %v4995_v41  ;;  %3678 = vst.msk [vmem:[%s6391_s28 + $0x14] sm:$0xf] %vm3672_vm12, %v3670_v5  ;;  %v7007_v41 = vsub.f32 %v6336_v19, %v7006_v60  ;;  %v5019_v19 = vld [vmem:[%s6831_s11 + $0xc0] ss:$12 sps:$4 sm:$0xff]   ;;  %v5026_v5 = vld [vmem:[%s6831_s11 + $0x124] ss:$12 sps:$4 sm:$0xff]  }
 0x22a   : > { %v5024_v7 = vld [vmem:[%s6831_s11 + $0x10c] ss:$12 sps:$4 sm:$0xff]  }
 0x22b   : > { %3413 = vmatpush1.bf16.msra.mxu1 %v4996_v48  ;;  %v3402_v50 = vand.u32 2147483647, %v7007_v41  ;;  %v5017_v48 = vld [vmem:[%s6831_s11 + $0xb0] ss:$12 sps:$4 sm:$0xff]   ;;  %v5030_v41 = vld [vmem:[%s6831_s11 + $0x154] ss:$12 sps:$4 sm:$0xff]  }
 0x22c   : > { %4414 = vmatpush3.bf16.msra.mxu0 %v4997_v38  ;;  %3414 = vmatprep.subr.bf16.mxu1 %v4998_v4  ;;  %v5020_v4 = vld [vmem:[%s6831_s11 + $0xdc] ss:$12 sps:$4 sm:$0xff]  }
 0x22d   : > { %4415 = vmatprep.subr.bf16.mxu0 %v4999_v3  ;;  %v6650_v38 = vpack.c.bf16 %v3402_v50, %v3402_v50  ;;  %v5023_v3 = vld [vmem:[%s6831_s11 + $0xf0] ss:$12 sps:$4 sm:$0xff]  }
 0x22f   : > { %3415 = vmatpush1.bf16.msra.mxu1 %v5000_v6 }
 0x230   : > { %4416 = vmatpush3.bf16.msra.mxu0 %v5001_v8  ;;  %3416 = vmatprep.subr.bf16.mxu1 %v5002_v16  ;;  %v3160_v8 = vmul.f32 2.0, %v6973_v45  ;;  %v5027_v16 = vld [vmem:[%s6831_s11 + $0x120] ss:$12 sps:$4 sm:$0xff]  }
 0x231   : > { %4417 = vmatprep.subr.bf16.mxu0 %v5003_v17  ;;  %v7009_v17 = vld [vmem:[#allocation34_spill] sm:$0xff] }
 0x233   : > { %3417 = vmatpush1.bf16.msra.mxu1 %v5004_v18  ;;  %v3159_v18 = vmul.f32 2.0, %v7009_v17 }
 0x234   : > { %4418 = vmatpush3.bf16.msra.mxu0 %v5005_v22  ;;  %3418 = vmatprep.subr.bf16.mxu1 %v5006_v23 }
 0x235   : > { %v4332_v24 = vpop.f32.mrb[16].mxu1  ;;  %4419 = vmatprep.subr.bf16.mxu0 %v5007_v25 }
 0x236   : > { %v4333_v26 = vpop.f32.mrb[17].mxu1 }
 0x237   : > { %v4334_v27 = vadd.f32 %v4333_v26, %v4332_v24  ;;  %3419 = vmatpush1.bf16.msra.mxu1 %v5008_v28  ;;  %v4335_v29 = vpop.f32.mrb[18].mxu1  ;;  %v4208_v28 = vadd.f32 -1.0, %v3160_v8 }
 0x238   : > { %4420 = vmatpush3.bf16.msra.mxu0 %v5009_v30  ;;  %v4336_v31 = vpop.f32.mrb[19].mxu1  ;;  %3420 = vmatprep.subr.bf16.mxu1 %v5010_v35 }
 0x239   : > { %4421 = vmatprep.subr.bf16.mxu0 %v5011_v32  ;;  %v2933_v22 = vadd.f32 1e-12, %v4334_v27  ;;  %v5029_v32 = vld [vmem:[%s6831_s11 + $0x138] ss:$12 sps:$4 sm:$0xff]  }
 0x23b   : > { %3421 = vmatpush1.bf16.msra.mxu1 %v5012_v1 }
 0x23c   : > { %4422 = vmatpush3.bf16.msra.mxu0 %v5013_v36  ;;  %3422 = vmatprep.subr.bf16.mxu1 %v5014_v56 }
 0x23d   : > { %4423 = vmatprep.subr.bf16.mxu0 %v5015_v46 }
 0x23f   : > { %3423 = vmatpush1.bf16.msra.mxu1 %v5016_v58  ;;  %v5031_v58 = vld [vmem:[%s6831_s11 + $0x150] ss:$12 sps:$4 sm:$0xff]  }
 0x240   : > { %4424 = vmatpush3.bf16.msra.mxu0 %v5017_v48  ;;  %3424 = vmatprep.subr.bf16.mxu1 %v5018_v21  ;;  %v7010_v48 = vld [vmem:[#allocation40_spill] sm:$0xff] }
 0x241   : > { %4560 = vmatprep.subr.bf16.mxu0 %v6929_v39  ;;  %v7011_v21 = vsub.f32 %v7000_v14, %v7010_v48 }
 0x243   : > { %3523 = vmatmul.mubr.bf16.vlgmr.msra.gmra.mrb[32].mxu0 %v6650_v38  ;;  %3425 = vmatpush1.bf16.msra.mxu1 %v5019_v19  ;;  %v3404_v19 = vand.u32 2147483647, %v7011_v21 }
 0x244   : > { %4561 = vmatpush3.bf16.msra.mxu0 %v6104_v47  ;;  %3426 = vmatprep.subr.bf16.mxu1 %v5020_v4  ;;  %v5022_v47 = vld [vmem:[%s6831_s11 + $0xf4] ss:$12 sps:$4 sm:$0xff]  }
 0x245   : > { %4562 = vmatprep.subr.bf16.mxu0 %v6929_v39  ;;  %4576 = vmatprep.mubr.msk.bf16.mxu0 %vm5060_vm0, %v6929_v39  ;;  %v5033_v4 = vld [vmem:[%s6831_s11 + $0x168] ss:$12 sps:$4 sm:$0xff]  }
 0x247   : > { %3427 = vmatpush1.bf16.msra.mxu1 %v5021_v62  ;;  %v3407_v62 = vpack.c.bf16 %v3404_v19, %v3404_v19  ;;  %v3580_v19 = vmul.f32 2.0, %v7004_v20 }
 0x248   : > { %4563 = vmatpush3.bf16.msra.mxu0 %v6129_v37  ;;  %3428 = vmatprep.subr.bf16.mxu1 %v5022_v47  ;;  %v5025_v37 = vld [vmem:[%s6831_s11 + $0x108] ss:$12 sps:$4 sm:$0xff]  }
 0x249   : > { %4564 = vmatprep.subr.bf16.mxu0 %v6929_v39 }
 0x24b   : > { %3429 = vmatpush1.bf16.msra.mxu1 %v5023_v3  ;;  %v7013_v3 = vld [vmem:[#allocation14_spill] sm:$0xff] }
 0x24c   : > { %4565 = vmatpush3.bf16.msra.mxu0 %v6995_v9  ;;  %3430 = vmatprep.subr.bf16.mxu1 %v5024_v7  ;;  %v7008_v9 = vld [vmem:[#allocation15_spill] sm:$0xff]  ;;  %v3149_v7 = vmul.f32 2.0, %v7013_v3 }
 0x24d   : > { %4566 = vmatprep.subr.bf16.mxu0 %v6929_v39  ;;  %v3158_v6 = vmul.f32 2.0, %v7008_v9 }
 0x24e   : > { %v4203_v8 = vadd.f32 -1.0, %v3149_v7 }
 0x24f   : > { %3431 = vmatpush1.bf16.msra.mxu1 %v5025_v37  ;;  %v4206_v25 = vadd.f32 -1.0, %v3158_v6  ;;  %v7014_v37 = vld [vmem:[#allocation16_spill] sm:$0xff] }
 0x250   : > { %4567 = vmatpush3.bf16.msra.mxu0 %v6996_v10  ;;  %3432 = vmatprep.subr.bf16.mxu1 %v5026_v5  ;;  %v5028_v10 = vld [vmem:[%s6831_s11 + $0x13c] ss:$12 sps:$4 sm:$0xff]   ;;  %v3150_v5 = vmul.f32 2.0, %v7014_v37 }
 0x251   : > { %4568 = vmatprep.subr.bf16.mxu0 %v6929_v39 }
 0x253   : > { %3433 = vmatpush1.bf16.msra.mxu1 %v5027_v16 }
 0x254   : > { %4569 = vmatpush3.bf16.msra.mxu0 %v6997_v11  ;;  %3434 = vmatprep.subr.bf16.mxu1 %v5028_v10  ;;  %v4207_v11 = vadd.f32 -1.0, %v3159_v18  ;;  %v4204_v18 = vadd.f32 -1.0, %v3150_v5 }
 0x255   : > { %v2891_v23 = vpop.f32.mrb[16].mxu0  ;;  %v2972_v24 = vpop.f32.mrb[20].mxu1  ;;  %4570 = vmatprep.subr.bf16.mxu0 %v6929_v39 }
 0x256   : > { %v6699_v45 = vadd.f32 1e-12, %v2891_v23  ;;  %v6701_v26 = vadd.f32 %v2972_v24, %v2933_v22  ;;  %v2893_v29 = vpop.f32.mrb[17].mxu0  ;;  %v4518_v30 = vpop.f32.mrb[21].mxu1 }
 0x257   : > { %v6703_v27 = vadd.f32 1e-12, %v2893_v29  ;;  %v2895_v31 = vpop.f32.mrb[18].mxu0  ;;  %v2975_v35 = vpop.f32.mrb[22].mxu1  ;;  %3435 = vmatpush1.bf16.msra.mxu1 %v5029_v32 }
 0x258   : > { %v6709_v1 = vmul.f32 %v6699_v45, %v4206_v25  ;;  %v3166_v36 = vmul.f32 %v4208_v28, %v6701_v26  ;;  %4571 = vmatpush3.bf16.msra.mxu0 %v6998_v12  ;;  %v2896_v56 = vpop.f32.mrb[19].mxu0  ;;  %v4519_v46 = vpop.f32.mrb[23].mxu1  ;;  %3436 = vmatprep.subr.bf16.mxu1 %v5030_v41  ;;  %v5032_v12 = vld [vmem:[%s6831_s11 + $0x16c] ss:$12 sps:$4 sm:$0xff]  }
 0x259   : > { %v6717_v50 = vmul.f32 %v6703_v27, %v4207_v11  ;;  %4572 = vmatprep.subr.bf16.mxu0 %v6929_v39 }
 0x25b   : > { %3437 = vmatpush1.bf16.msra.mxu1 %v5031_v58  ;;  %v3581_v58 = vmul.f32 2.0, %v7010_v48 }
 0x25c   : > { %4573 = vmatpush3.bf16.msra.mxu0 %v6999_v13  ;;  %3438 = vmatprep.subr.bf16.mxu1 %v5032_v12  ;;  %v5034_v13 = vld [vmem:[%s6831_s11 + $0x184] ss:$12 sps:$4 sm:$0xff]   ;;  %v3579_v12 = vmul.f32 2.0, %v7006_v60 }
 0x25d   : > { %4574 = vmatprep.subr.bf16.mxu0 %v6929_v39 }
 0x25f   : > { %3439 = vmatpush1.bf16.msra.mxu1 %v5033_v4 }
 0x260   : > { %4575 = vmatpush3.bf16.msra.mxu0 %v6262_v34  ;;  %3449 = vmatprep.subr.bf16.mxu1 %v5034_v13 }
 0x262   : > { %3441 = vmatmul.mubr.bf16.vlgmr.msra.gmra.mrb[36].mxu1 %v6650_v38 }
 0x263   : > { %4577 = vmatmul.mubr.bf16.vlgmr.msra.gmra.mrb[36].mxu0 %v3407_v62  ;;  %3450 = vmatpush1.bf16.msra.mxu1 %v6977_v53 }
 0x264   : > { %3451 = vmatprep.subr.bf16.mxu1 %v6978_v51  ;;  %3481 = vmatprep.mubr.bf16.mxu1 %v6979_v49 }
 0x267   : > { %3452 = vmatpush1.bf16.msra.mxu1 %v6980_v43  ;;  %v7012_v43 = vld [vmem:[#allocation33_spill] sm:$0xff] }
 0x268   : > { %3453 = vmatprep.subr.bf16.mxu1 %v6981_v52  ;;  %v3151_v52 = vmul.f32 2.0, %v7012_v43 }
 0x26b   : > { %3454 = vmatpush1.bf16.msra.mxu1 %v6982_v33 }
 0x26c   : > { %3455 = vmatprep.subr.bf16.mxu1 %v6983_v54 }
 0x26f   : > { %3456 = vmatpush1.bf16.msra.mxu1 %v6984_v55 }
 0x270   : > { %3457 = vmatprep.subr.bf16.mxu1 %v6985_v44  ;;  %v4205_v44 = vadd.f32 -1.0, %v3151_v52 }
 0x273   : > { %3458 = vmatpush1.bf16.msra.mxu1 %v6986_v57 }
 0x274   : > { %3459 = vmatprep.subr.bf16.mxu1 %v6987_v42 }
 0x276   : > { %v4363_v34 = vpop.f32.mrb[20].mxu0 }
 0x277   : > { %v4364_v39 = vpop.f32.mrb[21].mxu0  ;;  %3460 = vmatpush1.bf16.msra.mxu1 %v6988_v59 }
 0x278   : > { %v4365_v53 = vadd.f32 %v4364_v39, %v4363_v34  ;;  %v4366_v51 = vpop.f32.mrb[22].mxu0  ;;  %3461 = vmatprep.subr.bf16.mxu1 %v6989_v61  ;;  %v4220_v34 = vadd.f32 -1.0, %v3581_v58 }
 0x279   : > { %v4367_v49 = vpop.f32.mrb[23].mxu0  ;;  %v4218_v51 = vadd.f32 -1.0, %v3579_v12 }
 0x27a   : > { %v3104_v33 = vadd.f32 1e-12, %v4365_v53 }
 0x27b   : > { %3462 = vmatpush1.bf16.msra.mxu1 %v6990_v63 }
 0x27c   : > { %3463 = vmatprep.subr.bf16.mxu1 %v6991_v2 }
 0x27f   : > { %3464 = vmatpush1.bf16.msra.mxu1 %v6257_v40 }
 0x282   : > { %3482 = vmatmul.mubr.bf16.vlgmr.msra.gmra.mrb[36].mxu1 %v3407_v62 }
 0x296   : > { %v3143_v54 = vpop.f32.mrb[24].mxu0 }
 0x297   : > { %v3144_v55 = vadd.f32 %v3143_v54, %v3104_v33  ;;  %v4538_v57 = vpop.f32.mrb[25].mxu0  ;;  %v4219_v54 = vadd.f32 -1.0, %v3580_v19 }
 0x298   : > { %v3146_v42 = vpop.f32.mrb[26].mxu0 }
 0x299   : > { %v3157_v59 = vmul.f32 %v4205_v44, %v3144_v55  ;;  %v3172_v61 = vadd.f32 %v3144_v55, %v6701_v26  ;;  %v4539_v14 = vpop.f32.mrb[27].mxu0 }
 0x29b   : > { %v3169_v38 = vadd.f32 %v3166_v36, %v3157_v59  ;;  %4974 = vrcp.f32 %v3172_v61 }
 0x2a5   : > { %v4975_v63 = vpop.eup %4974 }
 0x2a6   : > { %v3178_v2 = vmul.f32 %v4975_v63, %v3169_v38  ;;  %v3572_v63 = vmul.f32 2.0, %v7001_v15 }
 0x2a8   : > { %v3181_v47 = vmul.f32 0.125, %v3178_v2  ;;  %v4217_v3 = vadd.f32 -1.0, %v3572_v63 }
 0x2aa   : > { %v3184_v40 = vpack.c.bf16 %v3181_v47, %v3181_v47 }
 0x2ac   : > { %3613 = vrot.lane.b32.xlu1 %v3184_v40, %s5065_s20  ;;  %3621 = vst.msk [vmem:[%s6761_s25 + $0x10] sm:$0xf] %vm3616_vm15, %v3184_v40 }
 0x2b5   : > { %v3062_v9 = vpop.f32.mrb[24].mxu1 }
 0x2b6   : > { %v4586_v6 = vadd.f32 1e-12, %v3062_v9  ;;  %v3064_v16 = vpop.f32.mrb[25].mxu1 }
 0x2b7   : > { %v4587_v17 = vadd.f32 1e-12, %v3064_v16  ;;  %v3066_v22 = vpop.f32.mrb[26].mxu1 }
 0x2b8   : > { %v3155_v10 = vmul.f32 %v4586_v6, %v4203_v8  ;;  %v3170_v23 = vadd.f32 %v4586_v6, %v6699_v45  ;;  %v3067_v24 = vpop.f32.mrb[27].mxu1 }
 0x2b9   : > { %v3156_v25 = vmul.f32 %v4587_v17, %v4204_v18  ;;  %v3171_v26 = vadd.f32 %v4587_v17, %v6703_v27 }
 0x2ba   : > { %v3167_v28 = vadd.f32 %v6709_v1, %v3155_v10  ;;  %4976 = vrcp.f32 %v3170_v23  ;;  %v3570_v10 = vmul.f32 2.0, %v6478_v0  ;;  %v7015_v23 = vld [vmem:[#allocation5_spill] sm:$0xff] }
 0x2bb   : > { %v3168_v29 = vadd.f32 %v6717_v50, %v3156_v25  ;;  %4978 = vrcp.f32 %v3171_v26  ;;  %v3571_v24 = vmul.f32 2.0, %v7015_v23 }
 0x2c4   : > { %v4977_v30 = vpop.eup %4976 }
 0x2c5   : > { %v4979_v11 = vpop.eup %4978  ;;  %v3174_v31 = vmul.f32 %v4977_v30, %v3167_v28  ;;  %v4215_v28 = vadd.f32 -1.0, %v3570_v10 }
 0x2c6   : > { %v3176_v35 = vmul.f32 %v4979_v11, %v3168_v29  ;;  %v4216_v11 = vadd.f32 -1.0, %v3571_v24 }
 0x2c7   : > { %v3179_v32 = vmul.f32 0.125, %v3174_v31 }
 0x2c8   : > { %v3180_v36 = vmul.f32 0.125, %v3176_v35 }
 0x2c9   : > { %v3182_v56 = vpack.c.bf16 %v3179_v32, %v3179_v32 }
 0x2ca   : > { %v3183_v45 = vpack.c.bf16 %v3180_v36, %v3180_v36 }
 0x2cb   : > { %3605 = vrot.lane.b32.xlu1 %v3182_v56, %s5065_s20  ;;  %3617 = vst.msk [vmem:[%s6761_s25] sm:$0xf] %vm3616_vm15, %v3182_v56 }
 0x2cc   : > { %3609 = vrot.lane.b32.xlu0 %v3183_v45, %s5065_s20  ;;  %3619 = vst.msk [vmem:[%s6761_s25 + $0x8] sm:$0xf] %vm3616_vm15, %v3183_v45 }
 0x2d5   : > { %v4394_v27 = vpop.f32.mrb[28].mxu1 }
 0x2d6   : > { %v4395_v1 = vpop.f32.mrb[29].mxu1 }
 0x2d7   : > { %v4396_v46 = vadd.f32 %v4395_v1, %v4394_v27  ;;  %v4397_v41 = vpop.f32.mrb[30].mxu1 }
 0x2d8   : > { %v4398_v50 = vpop.f32.mrb[31].mxu1 }
 0x2d9   : > { %v3354_v21 = vadd.f32 1e-12, %v4396_v46 }
 0x2f5   : > { %v3393_v4 = vpop.f32.mrb[32].mxu1 }
 0x2f6   : > { %v3312_v13 = vpop.f32.mrb[28].mxu0  ;;  %v3394_v62 = vadd.f32 %v3393_v4, %v3354_v21  ;;  %v4558_v39 = vpop.f32.mrb[33].mxu1 }
 0x2f7   : > { %v4588_v53 = vadd.f32 1e-12, %v3312_v13  ;;  %v3314_v49 = vpop.f32.mrb[29].mxu0  ;;  %v3396_v43 = vpop.f32.mrb[34].mxu1 }
 0x2f8   : > { %v3587_v52 = vmul.f32 %v4220_v34, %v3394_v62  ;;  %v4589_v33 = vadd.f32 1e-12, %v3314_v49  ;;  %v3316_v55 = vpop.f32.mrb[30].mxu0  ;;  %v4559_v48 = vpop.f32.mrb[35].mxu1 }
 0x2f9   : > { %v3585_v44 = vmul.f32 %v4588_v53, %v4218_v51  ;;  %v3317_v60 = vpop.f32.mrb[31].mxu0 }
 0x2fa   : > { %v3586_v57 = vmul.f32 %v4589_v33, %v4219_v54 }
 0x316   : > { %v4425_v42 = vpop.f32.mrb[32].mxu0 }
 0x317   : > { %v4426_v20 = vpop.f32.mrb[33].mxu0 }
 0x318   : > { %v4427_v59 = vadd.f32 %v4426_v20, %v4425_v42  ;;  %v4428_v61 = vpop.f32.mrb[34].mxu0 }
 0x319   : > { %v4429_v14 = vpop.f32.mrb[35].mxu0 }
 0x31a   : > { %v3525_v2 = vadd.f32 1e-12, %v4427_v59 }
 0x31e   : > { %v3614_v38 = vpop.permute.xlu1 %3613 }
 0x31f   : > { %3622 = vst.msk [vmem:[%s6761_s25 + $0x14] sm:$0xf] %vm3616_vm15, %v3614_v38 }
 0x336   : > { %v3564_v47 = vpop.f32.mrb[36].mxu0 }
 0x337   : > { %v3565_v40 = vadd.f32 %v3564_v47, %v3525_v2  ;;  %v4578_v7 = vpop.f32.mrb[37].mxu0 }
 0x338   : > { %v3567_v37 = vpop.f32.mrb[38].mxu0 }
 0x339   : > { %v3578_v5 = vmul.f32 %v4217_v3, %v3565_v40  ;;  %v3593_v9 = vadd.f32 %v3565_v40, %v3394_v62  ;;  %v4579_v6 = vpop.f32.mrb[39].mxu0 }
 0x33b   : > { %v3590_v8 = vadd.f32 %v3587_v52, %v3578_v5  ;;  %4980 = vrcp.f32 %v3593_v9 }
 0x33d   : > { %v3606_v16 = vpop.permute.xlu1 %3605 }
 0x33e   : > { %3618 = vst.msk [vmem:[%s6761_s25 + $0x4] sm:$0xf] %vm3616_vm15, %v3606_v16  ;;  %v3610_v17 = vpop.permute.xlu0 %3609 }
 0x33f   : > { %3620 = vst.msk [vmem:[%s6761_s25 + $0xc] sm:$0xf] %vm3616_vm15, %v3610_v17 }
 0x345   : > { %v4981_v18 = vpop.eup %4980 }
 0x346   : > { %v3599_v15 = vmul.f32 %v4981_v18, %v3590_v8 }
 0x348   : > { %v3602_v22 = vpack.c.bf16 %v3599_v15, %v3599_v15 }
 0x34a   : > { %3639 = vst.msk [vmem:[%s6792_s19 + $0x10] sm:$0xf] %vm3616_vm15, %v3602_v22 }
 0x355   : > { %v3483_v25 = vpop.f32.mrb[36].mxu1 }
 0x356   : > { %v4590_v26 = vadd.f32 1e-12, %v3483_v25  ;;  %v3485_v29 = vpop.f32.mrb[37].mxu1 }
 0x357   : > { %v4591_v30 = vadd.f32 1e-12, %v3485_v29  ;;  %v3487_v31 = vpop.f32.mrb[38].mxu1 }
 0x358   : > { %v3576_v35 = vmul.f32 %v4590_v26, %v4215_v28  ;;  %v3591_v32 = vadd.f32 %v4590_v26, %v4588_v53  ;;  %v3488_v36 = vpop.f32.mrb[39].mxu1 }
 0x359   : > { %v3577_v56 = vmul.f32 %v4591_v30, %v4216_v11  ;;  %v3592_v45 = vadd.f32 %v4591_v30, %v4589_v33 }
 0x35a   : > { %v3588_v27 = vadd.f32 %v3585_v44, %v3576_v35  ;;  %4982 = vrcp.f32 %v3591_v32 }
 0x35b   : > { %v3589_v0 = vadd.f32 %v3586_v57, %v3577_v56  ;;  %4984 = vrcp.f32 %v3592_v45 }
 0x364   : > { %v4983_v1 = vpop.eup %4982 }
 0x365   : > { %v4985_v46 = vpop.eup %4984  ;;  %v3595_v41 = vmul.f32 %v4983_v1, %v3588_v27 }
 0x366   : > { %v3597_v50 = vmul.f32 %v4985_v46, %v3589_v0 }
 0x367   : > { %v3600_v58 = vpack.c.bf16 %v3595_v41, %v3595_v41 }
 0x368   : > { %v3601_v12 = vpack.c.bf16 %v3597_v50, %v3597_v50 }
 0x369   : > { %3635 = vst.msk [vmem:[%s6792_s19] sm:$0xf] %vm3616_vm15, %v3600_v58  ;;  %3624 = vrot.lane.b32.xlu0 %v3600_v58, %s5065_s20 }
 0x36a   : > { %3637 = vst.msk [vmem:[%s6792_s19 + $0x8] sm:$0xf] %vm3616_vm15, %v3601_v12  ;;  %3628 = vrot.lane.b32.xlu1 %v3601_v12, %s5065_s20 }
 0x36d   : > { %3632 = vrot.lane.b32.xlu0 %v3602_v22, %s5065_s20 }
 0x3db   : > { %v3625_v21 = vpop.permute.xlu0 %3624 }
 0x3dc   : > { %3636 = vst.msk [vmem:[%s6792_s19 + $0x4] sm:$0xf] %vm3616_vm15, %v3625_v21  ;;  %v3629_v19 = vpop.permute.xlu1 %3628 }
 0x3dd   : > { %3638 = vst.msk [vmem:[%s6792_s19 + $0xc] sm:$0xf] %vm3616_vm15, %v3629_v19 }
 0x3df   : > { %v3633_v4 = vpop.permute.xlu0 %3632 }
 0x3e0   : > { %3640 = vst.msk [vmem:[%s6792_s19 + $0x14] sm:$0xf] %vm3616_vm15, %v3633_v4 }
 0x3e1 PF: > { %s25_s15 = sadd.s32 1, %s5057_s15   ;;  %s7016_s29 = smov %s5053_s30 }
 0x3e2   : > { %p22_p5 = scmp.ge.s32.totalorder %s25_s15, 4   ;;  %s7017_s30 = smov %s7019_s16 }
 0x3e4   :  { %24 = sbr.rel (!%p22_p5) target bundleno = 2 (0x2), region = 134 }

</bundles_post_ra>
